<compile_context>
chip_gen: v5e
topology: v5e:2x2
jax: 0.10.0
libtpu: 0.0.40
codegen_flags: <defaults>
</compile_context>

<pallas_src>
import functools

import jax
import jax.numpy as jnp
from jax.experimental import pallas as pl
from jax.experimental.pallas import tpu as pltpu

_PREC = jax.lax.Precision.HIGHEST


# --------------------------------------------------------------------------
# Fused BasicBlock kernel (one grid step per batch tile)
# --------------------------------------------------------------------------
def _basic_block_kernel(*refs, stride, has_proj, precision, Ho, Wo, cin, cout):
    it = iter(refs)
    x_ref = next(it)        # stride==1: (B, H, W*cin); else (B, s*s, Hp, Wp*cin)
    w1_ref = next(it)       # (9, Wo*cin,  Wo*cout)  bn1 scale folded, block-diag
    w2_ref = next(it)       # (9, Wo*cout, Wo*cout)  bn2 scale folded, block-diag
    b_ref = next(it)        # (2, Wo*cout) f32 : [bn1 bias ; bn2 bias], lane-tiled
    wsc_ref = next(it) if has_proj else None   # (Wo*cin, Wo*cout) block-diag 1x1
    o_ref = next(it)        # (B, Ho, Wo*cout)  lane-dense output slab
    xpad_ref = next(it) if stride == 1 else None   # (B, H+2, (W+2)*cin) scratch
    hpad_ref = next(it)     # (B, Ho+2, (Wo+2)*cout) scratch

    B = o_ref.shape[0]
    M = B * Ho
    cdt = hpad_ref.dtype
    dot = functools.partial(jnp.dot, preferred_element_type=jnp.float32,
                            precision=precision)

    # ---- conv1 (+ folded bn1 scale): 9 shift-and-accumulate matmuls ----------
    acc = jnp.zeros((M, Wo * cout), jnp.float32)
    if stride == 1:
        # zero-pad the input in a VMEM scratch window (no host pad, no concats)
        xpad_ref[...] = jnp.zeros(xpad_ref.shape, cdt)
        xpad_ref[:, 1:Ho + 1, cin:(Wo + 1) * cin] = x_ref[...]
        for ky in range(3):
            for kx in range(3):
                tap = xpad_ref[:, ky:ky + Ho, kx * cin:(kx + Wo) * cin]
                acc += dot(tap.reshape(M, Wo * cin), w1_ref[ky * 3 + kx])
    else:
        # exact polyphase decomposition of the zero-padded input:
        #   comp[by*s+bx][m, n*cin+c] == x_pad[s*m+by, s*n+bx, c]
        for ky in range(3):
            ay, by = divmod(ky, stride)
            for kx in range(3):
                ax, bx = divmod(kx, stride)
                tap = x_ref[:, by * stride + bx, ay:ay + Ho,
                            ax * cin:(ax + Wo) * cin]
                acc += dot(tap.reshape(M, Wo * cin), w1_ref[ky * 3 + kx])
    h = jnp.maximum(acc + b_ref[0:1, :], 0.0)        # bn1 bias + relu
    # dropout: inference-mode identity.

    # ---- zero-pad conv1 activation via VMEM scratch (no concat copies) -------
    hpad_ref[...] = jnp.zeros(hpad_ref.shape, cdt)
    hpad_ref[:, 1:Ho + 1, cout:(Wo + 1) * cout] = (
        h.astype(cdt).reshape(B, Ho, Wo * cout))

    # ---- conv2 (+ folded bn2 scale) ------------------------------------------
    acc2 = jnp.zeros((M, Wo * cout), jnp.float32)
    for ky in range(3):
        for kx in range(3):
            tap = hpad_ref[:, ky:ky + Ho, kx * cout:(kx + Wo) * cout]
            acc2 += dot(tap.reshape(M, Wo * cout), w2_ref[ky * 3 + kx])
    y = acc2 + b_ref[1:2, :]

    # ---- shortcut, read straight from the conv1 input stream -----------------
    if has_proj:
        if stride == 1:
            sc_in = x_ref[...].reshape(M, Wo * cin)
        else:
            # x[::s, ::s] == polyphase component (by=1, bx=1) == index s+1
            sc_in = x_ref[:, stride + 1, 0:Ho, 0:Wo * cin].reshape(M, Wo * cin)
        y = y + dot(sc_in, wsc_ref[...])
    else:
        y = y + x_ref[...].reshape(M, Wo * cout).astype(jnp.float32)

    # ---- residual relu + lane-dense store -------------------------------------
    o_ref[...] = jnp.maximum(y, 0.0).reshape(B, Ho, Wo * cout).astype(o_ref.dtype)


# --------------------------------------------------------------------------
# Host-side helpers
# --------------------------------------------------------------------------
def _pick_batch_tile(n, max_tile=8):
    """Biggest divisor of n that keeps >=2 grid steps (feeds both v7x TCs via
    the 'parallel' axis) while amortizing the ~0.35us/step grid overhead on
    single-core v5e/v6e."""
    cap = max(1, min(max_tile, n // 2))
    for bt in range(cap, 0, -1):
        if n % bt == 0:
            return bt
    return 1


def _polyphase_pack(x_nhwc, stride):
    """Zero-pad by 1, split into stride*stride polyphase components and fold
    (W, C) into the lane axis.  Returns (N, s*s, Hp, Wp*C) with
    comp[by*s+bx][m, n*C+c] == x_pad[s*m+by, s*n+bx, c]."""
    N, H, W, C = x_nhwc.shape
    xp = jnp.pad(x_nhwc, ((0, 0), (1, 1), (1, 1), (0, 0)))
    Hp = -(-(H + 2) // stride)
    Wp = -(-(W + 2) // stride)
    comps = []
    for by in range(stride):
        for bx in range(stride):
            c = xp[:, by::stride, bx::stride, :]
            c = jnp.pad(c, ((0, 0), (0, Hp - c.shape[1]),
                            (0, Wp - c.shape[2]), (0, 0)))
            comps.append(c)
    xpp = jnp.stack(comps, axis=1)                    # (N, s*s, Hp, Wp, C)
    return xpp.reshape(N, stride * stride, Hp, Wp * C)


def _bn_scale_bias(params, name, cout, use_bn):
    if use_bn:
        bn = params[name]
        s = bn["gamma"] / jnp.sqrt(bn["var"] + 1e-5)
        b = bn["beta"] - bn["mean"] * s
    else:
        s = jnp.ones((cout,), jnp.float32)
        b = jnp.zeros((cout,), jnp.float32)
    return s, b


def _kron_taps(w_oihw, scale, wo, cdt):
    """OIHW 3x3 conv weight (+ folded per-out-channel BN scale) ->
    (9, wo*Cin, wo*Cout) block-diagonal per-tap matmul weights kron(I_wo, w_tap)."""
    cout, cin = w_oihw.shape[:2]
    w = (w_oihw.astype(jnp.float32) * scale[:, None, None, None])
    w = jnp.transpose(w, (2, 3, 1, 0)).reshape(9, cin, cout)   # (tap, Cin, Cout)
    eye = jnp.eye(wo, dtype=jnp.float32)
    wk = jnp.einsum("xy,tio->txiyo", eye, w).reshape(9, wo * cin, wo * cout)
    return wk.astype(cdt)


def init_basic_block_params(key, in_channels, out_channels, stride, use_bn):
    keys = jax.random.split(key, 8)
    same_shape = (in_channels == out_channels) and stride == 1
    p = {
        "w1": 0.1 * jax.random.normal(keys[0], (out_channels, in_channels, 3, 3), jnp.float32),
        "w2": 0.1 * jax.random.normal(keys[1], (out_channels, out_channels, 3, 3), jnp.float32),
    }
    if not same_shape:
        p["w_sc"] = 0.1 * jax.random.normal(keys[2], (out_channels, in_channels, 1, 1), jnp.float32)
    if use_bn:
        for i, name in enumerate(("bn1", "bn2")):
            k = jax.random.split(keys[3 + i], 4)
            p[name] = {
                "gamma": 1.0 + 0.1 * jax.random.normal(k[0], (out_channels,), jnp.float32),
                "beta": 0.1 * jax.random.normal(k[1], (out_channels,), jnp.float32),
                "mean": 0.1 * jax.random.normal(k[2], (out_channels,), jnp.float32),
                "var": 1.0 + 0.1 * jax.random.uniform(k[3], (out_channels,), jnp.float32),
            }
    return p


# --------------------------------------------------------------------------
# BasicBlock forward (single fused pallas_call; grid over batch tiles)
# --------------------------------------------------------------------------
def basic_block_forward(x_nchw, params, *, in_channels, out_channels, stride,
                        use_bn, use_dropout, compute_dtype=jnp.bfloat16,
                        batch_tile=8):
    cin, cout = in_channels, out_channels
    same_shape = (cin == cout) and stride == 1
    cdt = jnp.dtype(compute_dtype)
    precision = _PREC if cdt == jnp.dtype(jnp.float32) else None

    x = jnp.transpose(x_nchw, (0, 2, 3, 1)).astype(cdt)          # NCHW -> NHWC
    N, H, W, _ = x.shape
    Ho = (H - 1) // stride + 1
    Wo = (W - 1) // stride + 1
    B = _pick_batch_tile(N, batch_tile)

    # BN folded into the weights; biases merged into one lane-tiled (2, Wo*cout).
    s1, b1 = _bn_scale_bias(params, "bn1", cout, use_bn)
    s2, b2 = _bn_scale_bias(params, "bn2", cout, use_bn)
    w1k = _kron_taps(params["w1"], s1, Wo, cdt)                  # (9, Wo*cin,  Wo*cout)
    w2k = _kron_taps(params["w2"], s2, Wo, cdt)                  # (9, Wo*cout, Wo*cout)
    biases = jnp.stack([jnp.tile(b1, Wo), jnp.tile(b2, Wo)]).astype(jnp.float32)

    inputs, in_specs = [], []
    if stride == 1:
        # unpadded, lane-folded input; the 1-pixel zero pad is done in-kernel.
        xin = x.reshape(N, H, W * cin)                           # free, contiguous
        inputs.append(xin)
        in_specs.append(pl.BlockSpec((B, H, W * cin), lambda n: (n, 0, 0)))
    else:
        xpp = _polyphase_pack(x, stride)                         # (N, s*s, Hp, Wp*cin)
        inputs.append(xpp)
        in_specs.append(pl.BlockSpec((B,) + xpp.shape[1:], lambda n: (n, 0, 0, 0)))

    inputs += [w1k, w2k, biases]
    in_specs += [pl.BlockSpec(w1k.shape, lambda n: (0, 0, 0)),
                 pl.BlockSpec(w2k.shape, lambda n: (0, 0, 0)),
                 pl.BlockSpec(biases.shape, lambda n: (0, 0))]
    if not same_shape:
        wsc = params["w_sc"][:, :, 0, 0].T.astype(jnp.float32)   # (cin, cout)
        eye = jnp.eye(Wo, dtype=jnp.float32)
        wsck = jnp.einsum("xy,io->xiyo", eye, wsc).reshape(Wo * cin, Wo * cout).astype(cdt)
        inputs.append(wsck)
        in_specs.append(pl.BlockSpec(wsck.shape, lambda n: (0, 0)))

    scratch = []
    if stride == 1:
        scratch.append(pltpu.VMEM((B, H + 2, (W + 2) * cin), cdt))
    scratch.append(pltpu.VMEM((B, Ho + 2, (Wo + 2) * cout), cdt))

    kern = functools.partial(
        _basic_block_kernel, stride=stride, has_proj=not same_shape,
        precision=precision, Ho=Ho, Wo=Wo, cin=cin, cout=cout)

    out = pl.pallas_call(
        kern,
        out_shape=jax.ShapeDtypeStruct((N, Ho, Wo * cout), cdt),  # lane-dense slab
        grid=(N // B,),
        in_specs=in_specs,
        out_specs=pl.BlockSpec((B, Ho, Wo * cout), lambda n: (n, 0, 0)),
        scratch_shapes=scratch,
        compiler_params=pltpu.CompilerParams(
            dimension_semantics=("parallel",),
            vmem_limit_bytes=64 * 1024 * 1024),
    )(*inputs)

    out = out.reshape(N, Ho, Wo, cout)
    return jnp.transpose(out, (0, 3, 1, 2))                      # NHWC -> NCHW


# --------------------------------------------------------------------------
# Pure-JAX reference (mirrors the kernel's quantization points)
# --------------------------------------------------------------------------
def basic_block_reference(x_nchw, params, *, in_channels, out_channels, stride,
                          use_bn, use_dropout, compute_dtype=jnp.bfloat16):
    cdt = jnp.dtype(compute_dtype)
    precision = _PREC if cdt == jnp.dtype(jnp.float32) else None
    same_shape = (in_channels == out_channels) and stride == 1
    x = jnp.transpose(x_nchw, (0, 2, 3, 1)).astype(cdt)          # NHWC

    s1, b1 = _bn_scale_bias(params, "bn1", out_channels, use_bn)
    s2, b2 = _bn_scale_bias(params, "bn2", out_channels, use_bn)

    def conv(inp, w_oihw, scale, s, pad):
        w = (w_oihw.astype(jnp.float32) * scale[:, None, None, None]).astype(cdt)
        w = jnp.transpose(w, (2, 3, 1, 0))                       # OIHW -> HWIO
        return jax.lax.conv_general_dilated(
            inp, w, window_strides=(s, s), padding=[(pad, pad), (pad, pad)],
            dimension_numbers=("NHWC", "HWIO", "NHWC"),
            preferred_element_type=jnp.float32, precision=precision)

    h = jax.nn.relu(conv(x, params["w1"], s1, stride, 1) + b1)
    # dropout: inference-mode identity
    y = conv(h.astype(cdt), params["w2"], s2, 1, 1) + b2
    if same_shape:
        sc = x.astype(jnp.float32)
    else:
        ones = jnp.ones((out_channels,), jnp.float32)
        sc = conv(x, params["w_sc"], ones, stride, 0)
    y = jax.nn.relu(y + sc)
    return jnp.transpose(y, (0, 3, 1, 2)).astype(jnp.float32)    # NCHW, f32


# --------------------------------------------------------------------------
if __name__ == "__main__":
    key = jax.random.PRNGKey(0)
    kx, kp1, kp2, kp3 = jax.random.split(key, 4)
    x = jax.random.normal(kx, (2, 4, 16, 16), jnp.float32)       # NCHW like PyTorch

    configs = [
        # downsampling block with 1x1-conv shortcut (stride 2)
        dict(in_channels=4, out_channels=8, stride=2, use_bn=True, use_dropout=False),
        # identity-shortcut block
        dict(in_channels=4, out_channels=4, stride=1, use_bn=True, use_dropout=False),
        # stride-1 projection block, no BN, dropout (inference identity)
        dict(in_channels=4, out_channels=8, stride=1, use_bn=False, use_dropout=True),
    ]
    param_keys = [kp1, kp2, kp3]

    ok = True
    for cfg, pk in zip(configs, param_keys):
        params = init_basic_block_params(pk, cfg["in_channels"], cfg["out_channels"],
                                         cfg["stride"], cfg["use_bn"])
        # f32 path: exact-ish vs f32 reference; bf16 path: fast MXU path, looser tol.
        for cdt, tol in ((jnp.float32, 1e-3), (jnp.bfloat16, 3e-2)):
            y = jax.block_until_ready(
                basic_block_forward(x, params, compute_dtype=cdt, **cfg))
            y_ref = jax.block_until_ready(
                basic_block_reference(x, params, compute_dtype=cdt, **cfg))
            yf = y.astype(jnp.float32)
            if yf.shape != y_ref.shape or not jnp.allclose(yf, y_ref, rtol=tol, atol=tol):
                ok = False
                print("MISMATCH", cfg, str(jnp.dtype(cdt)),
                      float(jnp.max(jnp.abs(yf - y_ref))))

    if ok:
        print("KERNEL_OK")
</pallas_src>

<mosaic_0001>
module attributes {stable_mosaic.version = 11 : i64} {
  func.func @_basic_block_kernel(%arg0: i32, %arg1: memref<1x4x9x36xf32, #tpu.memory_space<vmem>>, %arg2: memref<9x32x64xf32, #tpu.memory_space<vmem>>, %arg3: memref<9x64x64xf32, #tpu.memory_space<vmem>>, %arg4: memref<2x64xf32, #tpu.memory_space<vmem>>, %arg5: memref<32x64xf32, #tpu.memory_space<vmem>>, %arg6: memref<1x8x64xf32, #tpu.memory_space<vmem>>, %arg7: memref<1x10x80xf32, #tpu.memory_space<vmem>>) attributes {dimension_semantics = [#tpu.dimension_semantics<parallel>], iteration_bounds = array<i64: 2>, scalar_prefetch = 0 : i64, scratch_operands = 1 : i64, tpu.core_type = #tpu.core_type<tc>, window_params = [{transform_indices = @transform_0, window_bounds = array<i64: 1, 4, 9, 36>}, {pipeline_mode = #tpu.pipeline_mode<synchronous>, transform_indices = @transform_1, window_bounds = array<i64: 9, 32, 64>}, {pipeline_mode = #tpu.pipeline_mode<synchronous>, transform_indices = @transform_2, window_bounds = array<i64: 9, 64, 64>}, {pipeline_mode = #tpu.pipeline_mode<synchronous>, transform_indices = @transform_3, window_bounds = array<i64: 2, 64>}, {pipeline_mode = #tpu.pipeline_mode<synchronous>, transform_indices = @transform_4, window_bounds = array<i64: 32, 64>}, {transform_indices = @transform_5, window_bounds = array<i64: 1, 8, 64>}]} {
    %cst = arith.constant 0.000000e+00 : f32
    %0 = vector.broadcast %cst : f32 to vector<8x64xf32>
    %c0 = arith.constant 0 : index
    %c0_0 = arith.constant 0 : index
    %c0_1 = arith.constant 0 : index
    %c0_2 = arith.constant 0 : index
    %1 = vector.load %arg1[%c0, %c0_0, %c0_1, %c0_2] : memref<1x4x9x36xf32, #tpu.memory_space<vmem>>, vector<1x1x8x32xf32>
    %2 = vector.shape_cast %1 : vector<1x1x8x32xf32> to vector<1x8x32xf32>
    %3 = vector.shape_cast %2 : vector<1x8x32xf32> to vector<8x32xf32>
    %c0_3 = arith.constant 0 : index
    %c0_4 = arith.constant 0 : index
    %c0_5 = arith.constant 0 : index
    %4 = vector.load %arg2[%c0_3, %c0_4, %c0_5] : memref<9x32x64xf32, #tpu.memory_space<vmem>>, vector<1x32x64xf32>
    %5 = vector.shape_cast %4 : vector<1x32x64xf32> to vector<32x64xf32>
    %cst_6 = arith.constant dense<0.000000e+00> : vector<8x64xf32>
    %6 = tpu.matmul %3, %5, %cst_6 {dimension_numbers = #tpu.dot_dimension_numbers<[1], [0], [0], [1], [0, 0, 1, 1], [], []>, precision = #tpu.contract_precision<fp32>} : vector<8x32xf32>, vector<32x64xf32>, vector<8x64xf32> -> vector<8x64xf32>
    %7 = arith.addf %0, %6 : vector<8x64xf32>
    %c0_7 = arith.constant 0 : index
    %c1 = arith.constant 1 : index
    %c0_8 = arith.constant 0 : index
    %c0_9 = arith.constant 0 : index
    %8 = vector.load %arg1[%c0_7, %c1, %c0_8, %c0_9] : memref<1x4x9x36xf32, #tpu.memory_space<vmem>>, vector<1x1x8x32xf32>
    %9 = vector.shape_cast %8 : vector<1x1x8x32xf32> to vector<1x8x32xf32>
    %10 = vector.shape_cast %9 : vector<1x8x32xf32> to vector<8x32xf32>
    %c1_10 = arith.constant 1 : index
    %c0_11 = arith.constant 0 : index
    %c0_12 = arith.constant 0 : index
    %11 = vector.load %arg2[%c1_10, %c0_11, %c0_12] : memref<9x32x64xf32, #tpu.memory_space<vmem>>, vector<1x32x64xf32>
    %12 = vector.shape_cast %11 : vector<1x32x64xf32> to vector<32x64xf32>
    %cst_13 = arith.constant dense<0.000000e+00> : vector<8x64xf32>
    %13 = tpu.matmul %10, %12, %cst_13 {dimension_numbers = #tpu.dot_dimension_numbers<[1], [0], [0], [1], [0, 0, 1, 1], [], []>, precision = #tpu.contract_precision<fp32>} : vector<8x32xf32>, vector<32x64xf32>, vector<8x64xf32> -> vector<8x64xf32>
    %14 = arith.addf %7, %13 : vector<8x64xf32>
    %c0_14 = arith.constant 0 : index
    %c0_15 = arith.constant 0 : index
    %c0_16 = arith.constant 0 : index
    %c4 = arith.constant 4 : index
    %15 = vector.load %arg1[%c0_14, %c0_15, %c0_16, %c4] : memref<1x4x9x36xf32, #tpu.memory_space<vmem>>, vector<1x1x8x32xf32>
    %16 = vector.shape_cast %15 : vector<1x1x8x32xf32> to vector<1x8x32xf32>
    %17 = vector.shape_cast %16 : vector<1x8x32xf32> to vector<8x32xf32>
    %c2 = arith.constant 2 : index
    %c0_17 = arith.constant 0 : index
    %c0_18 = arith.constant 0 : index
    %18 = vector.load %arg2[%c2, %c0_17, %c0_18] : memref<9x32x64xf32, #tpu.memory_space<vmem>>, vector<1x32x64xf32>
    %19 = vector.shape_cast %18 : vector<1x32x64xf32> to vector<32x64xf32>
    %cst_19 = arith.constant dense<0.000000e+00> : vector<8x64xf32>
    %20 = tpu.matmul %17, %19, %cst_19 {dimension_numbers = #tpu.dot_dimension_numbers<[1], [0], [0], [1], [0, 0, 1, 1], [], []>, precision = #tpu.contract_precision<fp32>} : vector<8x32xf32>, vector<32x64xf32>, vector<8x64xf32> -> vector<8x64xf32>
    %21 = arith.addf %14, %20 : vector<8x64xf32>
    %c0_20 = arith.constant 0 : index
    %c2_21 = arith.constant 2 : index
    %c0_22 = arith.constant 0 : index
    %c0_23 = arith.constant 0 : index
    %22 = vector.load %arg1[%c0_20, %c2_21, %c0_22, %c0_23] : memref<1x4x9x36xf32, #tpu.memory_space<vmem>>, vector<1x1x8x32xf32>
    %23 = vector.shape_cast %22 : vector<1x1x8x32xf32> to vector<1x8x32xf32>
    %24 = vector.shape_cast %23 : vector<1x8x32xf32> to vector<8x32xf32>
    %c3 = arith.constant 3 : index
    %c0_24 = arith.constant 0 : index
    %c0_25 = arith.constant 0 : index
    %25 = vector.load %arg2[%c3, %c0_24, %c0_25] : memref<9x32x64xf32, #tpu.memory_space<vmem>>, vector<1x32x64xf32>
    %26 = vector.shape_cast %25 : vector<1x32x64xf32> to vector<32x64xf32>
    %cst_26 = arith.constant dense<0.000000e+00> : vector<8x64xf32>
    %27 = tpu.matmul %24, %26, %cst_26 {dimension_numbers = #tpu.dot_dimension_numbers<[1], [0], [0], [1], [0, 0, 1, 1], [], []>, precision = #tpu.contract_precision<fp32>} : vector<8x32xf32>, vector<32x64xf32>, vector<8x64xf32> -> vector<8x64xf32>
    %28 = arith.addf %21, %27 : vector<8x64xf32>
    %c0_27 = arith.constant 0 : index
    %c3_28 = arith.constant 3 : index
    %c0_29 = arith.constant 0 : index
    %c0_30 = arith.constant 0 : index
    %29 = vector.load %arg1[%c0_27, %c3_28, %c0_29, %c0_30] : memref<1x4x9x36xf32, #tpu.memory_space<vmem>>, vector<1x1x8x32xf32>
    %30 = vector.shape_cast %29 : vector<1x1x8x32xf32> to vector<1x8x32xf32>
    %31 = vector.shape_cast %30 : vector<1x8x32xf32> to vector<8x32xf32>
    %c4_31 = arith.constant 4 : index
    %c0_32 = arith.constant 0 : index
    %c0_33 = arith.constant 0 : index
    %32 = vector.load %arg2[%c4_31, %c0_32, %c0_33] : memref<9x32x64xf32, #tpu.memory_space<vmem>>, vector<1x32x64xf32>
    %33 = vector.shape_cast %32 : vector<1x32x64xf32> to vector<32x64xf32>
    %cst_34 = arith.constant dense<0.000000e+00> : vector<8x64xf32>
    %34 = tpu.matmul %31, %33, %cst_34 {dimension_numbers = #tpu.dot_dimension_numbers<[1], [0], [0], [1], [0, 0, 1, 1], [], []>, precision = #tpu.contract_precision<fp32>} : vector<8x32xf32>, vector<32x64xf32>, vector<8x64xf32> -> vector<8x64xf32>
    %35 = arith.addf %28, %34 : vector<8x64xf32>
    %c0_35 = arith.constant 0 : index
    %c2_36 = arith.constant 2 : index
    %c0_37 = arith.constant 0 : index
    %c4_38 = arith.constant 4 : index
    %36 = vector.load %arg1[%c0_35, %c2_36, %c0_37, %c4_38] : memref<1x4x9x36xf32, #tpu.memory_space<vmem>>, vector<1x1x8x32xf32>
    %37 = vector.shape_cast %36 : vector<1x1x8x32xf32> to vector<1x8x32xf32>
    %38 = vector.shape_cast %37 : vector<1x8x32xf32> to vector<8x32xf32>
    %c5 = arith.constant 5 : index
    %c0_39 = arith.constant 0 : index
    %c0_40 = arith.constant 0 : index
    %39 = vector.load %arg2[%c5, %c0_39, %c0_40] : memref<9x32x64xf32, #tpu.memory_space<vmem>>, vector<1x32x64xf32>
    %40 = vector.shape_cast %39 : vector<1x32x64xf32> to vector<32x64xf32>
    %cst_41 = arith.constant dense<0.000000e+00> : vector<8x64xf32>
    %41 = tpu.matmul %38, %40, %cst_41 {dimension_numbers = #tpu.dot_dimension_numbers<[1], [0], [0], [1], [0, 0, 1, 1], [], []>, precision = #tpu.contract_precision<fp32>} : vector<8x32xf32>, vector<32x64xf32>, vector<8x64xf32> -> vector<8x64xf32>
    %42 = arith.addf %35, %41 : vector<8x64xf32>
    %c0_42 = arith.constant 0 : index
    %c0_43 = arith.constant 0 : index
    %c1_44 = arith.constant 1 : index
    %c0_45 = arith.constant 0 : index
    %43 = vector.load %arg1[%c0_42, %c0_43, %c1_44, %c0_45] : memref<1x4x9x36xf32, #tpu.memory_space<vmem>>, vector<1x1x8x32xf32>
    %44 = vector.shape_cast %43 : vector<1x1x8x32xf32> to vector<1x8x32xf32>
    %45 = vector.shape_cast %44 : vector<1x8x32xf32> to vector<8x32xf32>
    %c6 = arith.constant 6 : index
    %c0_46 = arith.constant 0 : index
    %c0_47 = arith.constant 0 : index
    %46 = vector.load %arg2[%c6, %c0_46, %c0_47] : memref<9x32x64xf32, #tpu.memory_space<vmem>>, vector<1x32x64xf32>
    %47 = vector.shape_cast %46 : vector<1x32x64xf32> to vector<32x64xf32>
    %cst_48 = arith.constant dense<0.000000e+00> : vector<8x64xf32>
    %48 = tpu.matmul %45, %47, %cst_48 {dimension_numbers = #tpu.dot_dimension_numbers<[1], [0], [0], [1], [0, 0, 1, 1], [], []>, precision = #tpu.contract_precision<fp32>} : vector<8x32xf32>, vector<32x64xf32>, vector<8x64xf32> -> vector<8x64xf32>
    %49 = arith.addf %42, %48 : vector<8x64xf32>
    %c0_49 = arith.constant 0 : index
    %c1_50 = arith.constant 1 : index
    %c1_51 = arith.constant 1 : index
    %c0_52 = arith.constant 0 : index
    %50 = vector.load %arg1[%c0_49, %c1_50, %c1_51, %c0_52] : memref<1x4x9x36xf32, #tpu.memory_space<vmem>>, vector<1x1x8x32xf32>
    %51 = vector.shape_cast %50 : vector<1x1x8x32xf32> to vector<1x8x32xf32>
    %52 = vector.shape_cast %51 : vector<1x8x32xf32> to vector<8x32xf32>
    %c7 = arith.constant 7 : index
    %c0_53 = arith.constant 0 : index
    %c0_54 = arith.constant 0 : index
    %53 = vector.load %arg2[%c7, %c0_53, %c0_54] : memref<9x32x64xf32, #tpu.memory_space<vmem>>, vector<1x32x64xf32>
    %54 = vector.shape_cast %53 : vector<1x32x64xf32> to vector<32x64xf32>
    %cst_55 = arith.constant dense<0.000000e+00> : vector<8x64xf32>
    %55 = tpu.matmul %52, %54, %cst_55 {dimension_numbers = #tpu.dot_dimension_numbers<[1], [0], [0], [1], [0, 0, 1, 1], [], []>, precision = #tpu.contract_precision<fp32>} : vector<8x32xf32>, vector<32x64xf32>, vector<8x64xf32> -> vector<8x64xf32>
    %56 = arith.addf %49, %55 : vector<8x64xf32>
    %c0_56 = arith.constant 0 : index
    %c0_57 = arith.constant 0 : index
    %c1_58 = arith.constant 1 : index
    %c4_59 = arith.constant 4 : index
    %57 = vector.load %arg1[%c0_56, %c0_57, %c1_58, %c4_59] : memref<1x4x9x36xf32, #tpu.memory_space<vmem>>, vector<1x1x8x32xf32>
    %58 = vector.shape_cast %57 : vector<1x1x8x32xf32> to vector<1x8x32xf32>
    %59 = vector.shape_cast %58 : vector<1x8x32xf32> to vector<8x32xf32>
    %c8 = arith.constant 8 : index
    %c0_60 = arith.constant 0 : index
    %c0_61 = arith.constant 0 : index
    %60 = vector.load %arg2[%c8, %c0_60, %c0_61] : memref<9x32x64xf32, #tpu.memory_space<vmem>>, vector<1x32x64xf32>
    %61 = vector.shape_cast %60 : vector<1x32x64xf32> to vector<32x64xf32>
    %cst_62 = arith.constant dense<0.000000e+00> : vector<8x64xf32>
    %62 = tpu.matmul %59, %61, %cst_62 {dimension_numbers = #tpu.dot_dimension_numbers<[1], [0], [0], [1], [0, 0, 1, 1], [], []>, precision = #tpu.contract_precision<fp32>} : vector<8x32xf32>, vector<32x64xf32>, vector<8x64xf32> -> vector<8x64xf32>
    %63 = arith.addf %56, %62 : vector<8x64xf32>
    %c0_63 = arith.constant 0 : index
    %c0_64 = arith.constant 0 : index
    %64 = vector.load %arg4[%c0_63, %c0_64] : memref<2x64xf32, #tpu.memory_space<vmem>>, vector<1x64xf32>
    %65 = vector.broadcast %64 : vector<1x64xf32> to vector<8x64xf32>
    %66 = arith.addf %63, %65 : vector<8x64xf32>
    %cst_65 = arith.constant 0.000000e+00 : f32
    %67 = vector.broadcast %cst_65 : f32 to vector<8x64xf32>
    %68 = arith.maximumf %66, %67 : vector<8x64xf32>
    %cst_66 = arith.constant 0.000000e+00 : f32
    %69 = vector.broadcast %cst_66 : f32 to vector<1x10x80xf32>
    %c0_67 = arith.constant 0 : index
    %c0_68 = arith.constant 0 : index
    %c0_69 = arith.constant 0 : index
    %70 = vector.load %arg7[%c0_67, %c0_68, %c0_69] : memref<1x10x80xf32, #tpu.memory_space<vmem>>, vector<1x10x80xf32>
    tpu.vector_store %arg7[%c0_67, %c0_68, %c0_69], %69 {strides = array<i32>} : memref<1x10x80xf32, #tpu.memory_space<vmem>>, vector<1x10x80xf32>,
    %71 = vector.shape_cast %68 : vector<8x64xf32> to vector<1x8x64xf32>
    %c0_70 = arith.constant 0 : index
    %c1_71 = arith.constant 1 : index
    %c8_72 = arith.constant 8 : index
    %72 = vector.load %arg7[%c0_70, %c1_71, %c8_72] : memref<1x10x80xf32, #tpu.memory_space<vmem>>, vector<1x8x64xf32>
    tpu.vector_store %arg7[%c0_70, %c1_71, %c8_72], %71 {strides = array<i32>} : memref<1x10x80xf32, #tpu.memory_space<vmem>>, vector<1x8x64xf32>,
    %cst_73 = arith.constant 0.000000e+00 : f32
    %73 = vector.broadcast %cst_73 : f32 to vector<8x64xf32>
    %c0_74 = arith.constant 0 : index
    %c0_75 = arith.constant 0 : index
    %c0_76 = arith.constant 0 : index
    %74 = vector.load %arg7[%c0_74, %c0_75, %c0_76] : memref<1x10x80xf32, #tpu.memory_space<vmem>>, vector<1x8x64xf32>
    %75 = vector.shape_cast %74 : vector<1x8x64xf32> to vector<8x64xf32>
    %c0_77 = arith.constant 0 : index
    %c0_78 = arith.constant 0 : index
    %c0_79 = arith.constant 0 : index
    %76 = vector.load %arg3[%c0_77, %c0_78, %c0_79] : memref<9x64x64xf32, #tpu.memory_space<vmem>>, vector<1x64x64xf32>
    %77 = vector.shape_cast %76 : vector<1x64x64xf32> to vector<64x64xf32>
    %cst_80 = arith.constant dense<0.000000e+00> : vector<8x64xf32>
    %78 = tpu.matmul %75, %77, %cst_80 {dimension_numbers = #tpu.dot_dimension_numbers<[1], [0], [0], [1], [0, 0, 1, 1], [], []>, precision = #tpu.contract_precision<fp32>} : vector<8x64xf32>, vector<64x64xf32>, vector<8x64xf32> -> vector<8x64xf32>
    %79 = arith.addf %73, %78 : vector<8x64xf32>
    %c0_81 = arith.constant 0 : index
    %c0_82 = arith.constant 0 : index
    %c8_83 = arith.constant 8 : index
    %80 = vector.load %arg7[%c0_81, %c0_82, %c8_83] : memref<1x10x80xf32, #tpu.memory_space<vmem>>, vector<1x8x64xf32>
    %81 = vector.shape_cast %80 : vector<1x8x64xf32> to vector<8x64xf32>
    %c1_84 = arith.constant 1 : index
    %c0_85 = arith.constant 0 : index
    %c0_86 = arith.constant 0 : index
    %82 = vector.load %arg3[%c1_84, %c0_85, %c0_86] : memref<9x64x64xf32, #tpu.memory_space<vmem>>, vector<1x64x64xf32>
    %83 = vector.shape_cast %82 : vector<1x64x64xf32> to vector<64x64xf32>
    %cst_87 = arith.constant dense<0.000000e+00> : vector<8x64xf32>
    %84 = tpu.matmul %81, %83, %cst_87 {dimension_numbers = #tpu.dot_dimension_numbers<[1], [0], [0], [1], [0, 0, 1, 1], [], []>, precision = #tpu.contract_precision<fp32>} : vector<8x64xf32>, vector<64x64xf32>, vector<8x64xf32> -> vector<8x64xf32>
    %85 = arith.addf %79, %84 : vector<8x64xf32>
    %c0_88 = arith.constant 0 : index
    %c0_89 = arith.constant 0 : index
    %c16 = arith.constant 16 : index
    %86 = vector.load %arg7[%c0_88, %c0_89, %c16] : memref<1x10x80xf32, #tpu.memory_space<vmem>>, vector<1x8x64xf32>
    %87 = vector.shape_cast %86 : vector<1x8x64xf32> to vector<8x64xf32>
    %c2_90 = arith.constant 2 : index
    %c0_91 = arith.constant 0 : index
    %c0_92 = arith.constant 0 : index
    %88 = vector.load %arg3[%c2_90, %c0_91, %c0_92] : memref<9x64x64xf32, #tpu.memory_space<vmem>>, vector<1x64x64xf32>
    %89 = vector.shape_cast %88 : vector<1x64x64xf32> to vector<64x64xf32>
    %cst_93 = arith.constant dense<0.000000e+00> : vector<8x64xf32>
    %90 = tpu.matmul %87, %89, %cst_93 {dimension_numbers = #tpu.dot_dimension_numbers<[1], [0], [0], [1], [0, 0, 1, 1], [], []>, precision = #tpu.contract_precision<fp32>} : vector<8x64xf32>, vector<64x64xf32>, vector<8x64xf32> -> vector<8x64xf32>
    %91 = arith.addf %85, %90 : vector<8x64xf32>
    %c0_94 = arith.constant 0 : index
    %c1_95 = arith.constant 1 : index
    %c0_96 = arith.constant 0 : index
    %92 = vector.load %arg7[%c0_94, %c1_95, %c0_96] : memref<1x10x80xf32, #tpu.memory_space<vmem>>, vector<1x8x64xf32>
    %93 = vector.shape_cast %92 : vector<1x8x64xf32> to vector<8x64xf32>
    %c3_97 = arith.constant 3 : index
    %c0_98 = arith.constant 0 : index
    %c0_99 = arith.constant 0 : index
    %94 = vector.load %arg3[%c3_97, %c0_98, %c0_99] : memref<9x64x64xf32, #tpu.memory_space<vmem>>, vector<1x64x64xf32>
    %95 = vector.shape_cast %94 : vector<1x64x64xf32> to vector<64x64xf32>
    %cst_100 = arith.constant dense<0.000000e+00> : vector<8x64xf32>
    %96 = tpu.matmul %93, %95, %cst_100 {dimension_numbers = #tpu.dot_dimension_numbers<[1], [0], [0], [1], [0, 0, 1, 1], [], []>, precision = #tpu.contract_precision<fp32>} : vector<8x64xf32>, vector<64x64xf32>, vector<8x64xf32> -> vector<8x64xf32>
    %97 = arith.addf %91, %96 : vector<8x64xf32>
    %c0_101 = arith.constant 0 : index
    %c1_102 = arith.constant 1 : index
    %c8_103 = arith.constant 8 : index
    %98 = vector.load %arg7[%c0_101, %c1_102, %c8_103] : memref<1x10x80xf32, #tpu.memory_space<vmem>>, vector<1x8x64xf32>
    %99 = vector.shape_cast %98 : vector<1x8x64xf32> to vector<8x64xf32>
    %c4_104 = arith.constant 4 : index
    %c0_105 = arith.constant 0 : index
    %c0_106 = arith.constant 0 : index
    %100 = vector.load %arg3[%c4_104, %c0_105, %c0_106] : memref<9x64x64xf32, #tpu.memory_space<vmem>>, vector<1x64x64xf32>
    %101 = vector.shape_cast %100 : vector<1x64x64xf32> to vector<64x64xf32>
    %cst_107 = arith.constant dense<0.000000e+00> : vector<8x64xf32>
    %102 = tpu.matmul %99, %101, %cst_107 {dimension_numbers = #tpu.dot_dimension_numbers<[1], [0], [0], [1], [0, 0, 1, 1], [], []>, precision = #tpu.contract_precision<fp32>} : vector<8x64xf32>, vector<64x64xf32>, vector<8x64xf32> -> vector<8x64xf32>
    %103 = arith.addf %97, %102 : vector<8x64xf32>
    %c0_108 = arith.constant 0 : index
    %c1_109 = arith.constant 1 : index
    %c16_110 = arith.constant 16 : index
    %104 = vector.load %arg7[%c0_108, %c1_109, %c16_110] : memref<1x10x80xf32, #tpu.memory_space<vmem>>, vector<1x8x64xf32>
    %105 = vector.shape_cast %104 : vector<1x8x64xf32> to vector<8x64xf32>
    %c5_111 = arith.constant 5 : index
    %c0_112 = arith.constant 0 : index
    %c0_113 = arith.constant 0 : index
    %106 = vector.load %arg3[%c5_111, %c0_112, %c0_113] : memref<9x64x64xf32, #tpu.memory_space<vmem>>, vector<1x64x64xf32>
    %107 = vector.shape_cast %106 : vector<1x64x64xf32> to vector<64x64xf32>
    %cst_114 = arith.constant dense<0.000000e+00> : vector<8x64xf32>
    %108 = tpu.matmul %105, %107, %cst_114 {dimension_numbers = #tpu.dot_dimension_numbers<[1], [0], [0], [1], [0, 0, 1, 1], [], []>, precision = #tpu.contract_precision<fp32>} : vector<8x64xf32>, vector<64x64xf32>, vector<8x64xf32> -> vector<8x64xf32>
    %109 = arith.addf %103, %108 : vector<8x64xf32>
    %c0_115 = arith.constant 0 : index
    %c2_116 = arith.constant 2 : index
    %c0_117 = arith.constant 0 : index
    %110 = vector.load %arg7[%c0_115, %c2_116, %c0_117] : memref<1x10x80xf32, #tpu.memory_space<vmem>>, vector<1x8x64xf32>
    %111 = vector.shape_cast %110 : vector<1x8x64xf32> to vector<8x64xf32>
    %c6_118 = arith.constant 6 : index
    %c0_119 = arith.constant 0 : index
    %c0_120 = arith.constant 0 : index
    %112 = vector.load %arg3[%c6_118, %c0_119, %c0_120] : memref<9x64x64xf32, #tpu.memory_space<vmem>>, vector<1x64x64xf32>
    %113 = vector.shape_cast %112 : vector<1x64x64xf32> to vector<64x64xf32>
    %cst_121 = arith.constant dense<0.000000e+00> : vector<8x64xf32>
    %114 = tpu.matmul %111, %113, %cst_121 {dimension_numbers = #tpu.dot_dimension_numbers<[1], [0], [0], [1], [0, 0, 1, 1], [], []>, precision = #tpu.contract_precision<fp32>} : vector<8x64xf32>, vector<64x64xf32>, vector<8x64xf32> -> vector<8x64xf32>
    %115 = arith.addf %109, %114 : vector<8x64xf32>
    %c0_122 = arith.constant 0 : index
    %c2_123 = arith.constant 2 : index
    %c8_124 = arith.constant 8 : index
    %116 = vector.load %arg7[%c0_122, %c2_123, %c8_124] : memref<1x10x80xf32, #tpu.memory_space<vmem>>, vector<1x8x64xf32>
    %117 = vector.shape_cast %116 : vector<1x8x64xf32> to vector<8x64xf32>
    %c7_125 = arith.constant 7 : index
    %c0_126 = arith.constant 0 : index
    %c0_127 = arith.constant 0 : index
    %118 = vector.load %arg3[%c7_125, %c0_126, %c0_127] : memref<9x64x64xf32, #tpu.memory_space<vmem>>, vector<1x64x64xf32>
    %119 = vector.shape_cast %118 : vector<1x64x64xf32> to vector<64x64xf32>
    %cst_128 = arith.constant dense<0.000000e+00> : vector<8x64xf32>
    %120 = tpu.matmul %117, %119, %cst_128 {dimension_numbers = #tpu.dot_dimension_numbers<[1], [0], [0], [1], [0, 0, 1, 1], [], []>, precision = #tpu.contract_precision<fp32>} : vector<8x64xf32>, vector<64x64xf32>, vector<8x64xf32> -> vector<8x64xf32>
    %121 = arith.addf %115, %120 : vector<8x64xf32>
    %c0_129 = arith.constant 0 : index
    %c2_130 = arith.constant 2 : index
    %c16_131 = arith.constant 16 : index
    %122 = vector.load %arg7[%c0_129, %c2_130, %c16_131] : memref<1x10x80xf32, #tpu.memory_space<vmem>>, vector<1x8x64xf32>
    %123 = vector.shape_cast %122 : vector<1x8x64xf32> to vector<8x64xf32>
    %c8_132 = arith.constant 8 : index
    %c0_133 = arith.constant 0 : index
    %c0_134 = arith.constant 0 : index
    %124 = vector.load %arg3[%c8_132, %c0_133, %c0_134] : memref<9x64x64xf32, #tpu.memory_space<vmem>>, vector<1x64x64xf32>
    %125 = vector.shape_cast %124 : vector<1x64x64xf32> to vector<64x64xf32>
    %cst_135 = arith.constant dense<0.000000e+00> : vector<8x64xf32>
    %126 = tpu.matmul %123, %125, %cst_135 {dimension_numbers = #tpu.dot_dimension_numbers<[1], [0], [0], [1], [0, 0, 1, 1], [], []>, precision = #tpu.contract_precision<fp32>} : vector<8x64xf32>, vector<64x64xf32>, vector<8x64xf32> -> vector<8x64xf32>
    %127 = arith.addf %121, %126 : vector<8x64xf32>
    %c1_136 = arith.constant 1 : index
    %c0_137 = arith.constant 0 : index
    %128 = vector.load %arg4[%c1_136, %c0_137] : memref<2x64xf32, #tpu.memory_space<vmem>>, vector<1x64xf32>
    %129 = vector.broadcast %128 : vector<1x64xf32> to vector<8x64xf32>
    %130 = arith.addf %127, %129 : vector<8x64xf32>
    %c0_138 = arith.constant 0 : index
    %c3_139 = arith.constant 3 : index
    %c0_140 = arith.constant 0 : index
    %c0_141 = arith.constant 0 : index
    %131 = vector.load %arg1[%c0_138, %c3_139, %c0_140, %c0_141] : memref<1x4x9x36xf32, #tpu.memory_space<vmem>>, vector<1x1x8x32xf32>
    %132 = vector.shape_cast %131 : vector<1x1x8x32xf32> to vector<1x8x32xf32>
    %133 = vector.shape_cast %132 : vector<1x8x32xf32> to vector<8x32xf32>
    %c0_142 = arith.constant 0 : index
    %c0_143 = arith.constant 0 : index
    %134 = vector.load %arg5[%c0_142, %c0_143] : memref<32x64xf32, #tpu.memory_space<vmem>>, vector<32x64xf32>
    %cst_144 = arith.constant dense<0.000000e+00> : vector<8x64xf32>
    %135 = tpu.matmul %133, %134, %cst_144 {dimension_numbers = #tpu.dot_dimension_numbers<[1], [0], [0], [1], [0, 0, 1, 1], [], []>, precision = #tpu.contract_precision<fp32>} : vector<8x32xf32>, vector<32x64xf32>, vector<8x64xf32> -> vector<8x64xf32>
    %136 = arith.addf %130, %135 : vector<8x64xf32>
    %cst_145 = arith.constant 0.000000e+00 : f32
    %137 = vector.broadcast %cst_145 : f32 to vector<8x64xf32>
    %138 = arith.maximumf %136, %137 : vector<8x64xf32>
    %139 = vector.shape_cast %138 : vector<8x64xf32> to vector<1x8x64xf32>
    %c0_146 = arith.constant 0 : index
    %c0_147 = arith.constant 0 : index
    %c0_148 = arith.constant 0 : index
    %140 = vector.load %arg6[%c0_146, %c0_147, %c0_148] : memref<1x8x64xf32, #tpu.memory_space<vmem>>, vector<1x8x64xf32>
    tpu.vector_store %arg6[%c0_146, %c0_147, %c0_148], %139 {strides = array<i32>} : memref<1x8x64xf32, #tpu.memory_space<vmem>>, vector<1x8x64xf32>,
    return
  }
  func.func @transform_0(%arg0: i32) -> (i32, i32, i32, i32) {
    %c0_i32 = arith.constant 0 : i32
    %c0_i32_0 = arith.constant 0 : i32
    %c0_i32_1 = arith.constant 0 : i32
    %c0_i32_2 = arith.constant 0 : i32
    return %arg0, %c0_i32, %c0_i32_0, %c0_i32_1 : i32, i32, i32, i32
  }
  func.func @transform_1(%arg0: i32) -> (i32, i32, i32) {
    %c0_i32 = arith.constant 0 : i32
    %c0_i32_0 = arith.constant 0 : i32
    %c0_i32_1 = arith.constant 0 : i32
    %c0_i32_2 = arith.constant 0 : i32
    return %c0_i32, %c0_i32_0, %c0_i32_1 : i32, i32, i32
  }
  func.func @transform_2(%arg0: i32) -> (i32, i32, i32) {
    %c0_i32 = arith.constant 0 : i32
    %c0_i32_0 = arith.constant 0 : i32
    %c0_i32_1 = arith.constant 0 : i32
    %c0_i32_2 = arith.constant 0 : i32
    return %c0_i32, %c0_i32_0, %c0_i32_1 : i32, i32, i32
  }
  func.func @transform_3(%arg0: i32) -> (i32, i32) {
    %c0_i32 = arith.constant 0 : i32
    %c0_i32_0 = arith.constant 0 : i32
    %c0_i32_1 = arith.constant 0 : i32
    return %c0_i32, %c0_i32_0 : i32, i32
  }
  func.func @transform_4(%arg0: i32) -> (i32, i32) {
    %c0_i32 = arith.constant 0 : i32
    %c0_i32_0 = arith.constant 0 : i32
    %c0_i32_1 = arith.constant 0 : i32
    return %c0_i32, %c0_i32_0 : i32, i32
  }
  func.func @transform_5(%arg0: i32) -> (i32, i32, i32) {
    %c0_i32 = arith.constant 0 : i32
    %c0_i32_0 = arith.constant 0 : i32
    %c0_i32_1 = arith.constant 0 : i32
    return %arg0, %c0_i32, %c0_i32_0 : i32, i32, i32
  }
}

</mosaic_0001>

<bundles_post_ra>
// kernel: tpu_custom_call.1
= control target key start
LH: loop header
LB: loop body
LE: loop exit
PB: predicated region body
PF: predicated region fallthrough
CT: control target
= control target key end

     0   :  { %10 = vsyncpa [#allocation4], 0  ;;  %s6811_s0 = inlined_call_operand.vmem [shape: f32[2,4,9,36], index: 0, kind: input, shape index: {}]   ;;  %s6812_s1 = inlined_call_operand.hbm [shape: f32[9,32,64], index: 1, kind: input, shape index: {}]   ;;  %s6813_s2 = inlined_call_operand.hbm [shape: f32[9,64,64], index: 2, kind: input, shape index: {}]   ;;  %s6814_s3 = inlined_call_operand.vmem [shape: f32[2,64], index: 3, kind: input, shape index: {}]   ;;  %s6815_s4 = inlined_call_operand.vmem [shape: f32[32,64], index: 4, kind: input, shape index: {}]   ;;  %s6816_s5 = inlined_call_operand.hbm [shape: f32[2,8,64], index: 5, kind: output, shape index: {}]  }
   0x1   :  { %11 = vsyncpa [#allocation7], 0 }
   0x2   :  { %12 = vsyncpa [#allocation5], 0 }
   0x3   :  { %14 = vsyncpa [#allocation5 + $0x1], 0  ;;  %s4842_s18 = smov 0   ;;  %s4844_s19 = smov 0  }
   0x4   :  { %s4846_s20 = smov 0   ;;  %s4848_s21 = smov 0  }
   0x5 LB: > { %s4863_s22 = sadd.s32 4294967295, %s4801_s21   ;;  %s4580_s23 = sadd.s32 4294967294, %s4801_s21   ;;  %s4801_s21 = sphi %s4848_s21, %s6823_s21   ;;  %s4797_s20 = sphi %s4846_s20, %s6822_s20   ;;  %s4793_s19 = sphi %s4844_s19, %s6821_s19   ;;  %s4789_s18 = sphi %s4842_s18, %s6820_s18  }
   0x6   : > { %s4867_s24 = sadd.s32 1, %s4801_s21   ;;  %s137_s25 = sadd.s32 1, %s4797_s20 }
   0x7   : > { %s134_s26 = ssub.s32 %s4801_s21, %s4867_s24  ;;  %p147_p0 = scmp.ne.s32.totalorder %s4797_s20, %s4793_s19 }
   0x8   : > { %p135_p1 = scmp.eq.s32.totalorder %s134_s26, 0  ;;  %p148_p2 = scmp.eq.s32.totalorder %s4863_s22, 1 }
   0x9   : > { %p153_p3 = scmp.ne.s32.totalorder %s4793_s19, %s4789_s18  ;;  %p154_p4 = scmp.eq.s32.totalorder %s4580_s23, 1 }
   0xa   : > { %s4878_s27 = scalar_select %p135_p1, %s4797_s20, %s137_s25  }
   0xb   : > { %p4880_p5 = por %p148_p2, %p147_p0  ;;  %p4884_p6 = por %p154_p4, %p153_p3 }
   0xc   : > { %p4581_p7 = scmp.ge.s32.totalorder %s4801_s21, 1  ;;  %p161_p8 = scmp.lt.s32.totalorder %s4801_s21, 3 }
   0xd   : > { %p4622_p9 = scmp.eq.s32.totalorder %s4863_s22, 0  ;;  %s172_s8 = sshll.u32 %s6812_s1, 4  ;;  %s173_s8 = int_to_ptr.hbm [resolvable:$true] %s172_s8 }
   0xe   : > { %p4891_p10 = pnand %p4581_p7, %p161_p8  ;;  %s4803_s9 = smov [#allocation3]  }
   0xf   : > { %s174_s10 = sshll.u32 %s4803_s9, 4  ;;  %s186_s13 = sshll.u32 %s6813_s2, 4  ;;  %s175_s10 = int_to_ptr.vmem [resolvable:$true] %s174_s10  ;;  %s187_s13 = int_to_ptr.hbm [resolvable:$true] %s186_s13 }
  0x10   : > { %p4611_p11 = pneg %p4891_p10  ;;  %s4804_s14 = smov 128  }
  0x11   : > { %s4805_s15 = smov 8   ;;  %s4806_s16 = smov [#allocation6]  }
  0x12   : > { %p4612_p12 = pnand %p4622_p9, %p4611_p11  ;;  %s188_s17 = sshll.u32 %s4806_s16, 4  ;;  %s189_s17 = int_to_ptr.vmem [resolvable:$true] %s188_s17 }
  0x13   : > { %218 = sbr.rel (%p4891_p10) target bundleno = 978 (0x3d2), region = 40 }
  0x14   : > { %4614 = dma.hbm_to_vmem [thread:$0]  (!%p4612_p12), %s173_s8, 4608, %s175_s10, [#allocation4], %s4804_s14, %s4804_s14, %s4805_s15  }
  0x15   : > { %4617 = dma.hbm_to_vmem [thread:$0]  (!%p4612_p12), %s187_s13, 9216, %s189_s17, [#allocation7], %s4804_s14, %s4804_s14, %s4805_s15  }
  0x18   : > { %4776 = dma.done.wait (%p4622_p9), [#allocation4], 4608  }
  0x19   : > { %4778 = vsyncadd (%p4622_p9), [#allocation4], 4294962688 }
  0x1a   : > { %4780 = dma.done.wait (%p4622_p9), [#allocation7], 9216  }
  0x1b   : > { %4782 = vsyncadd (%p4622_p9), [#allocation7], 4294958080  ;;  %p252_p13 = scmp.lt.s32.totalorder %s4863_s22, 1  ;;  %vm269_vm0 = vcmask 261120   ;;  %s4807_s7 = smov 124   ;;  %v268_v3 = vld [vmem:[#allocation3 + $0x38] sm:$0xff] }
  0x1c   : > { %v267_v4 = vld [vmem:[#allocation3 + $0x30] sm:$0xff]  ;;  %v266_v5 = vld [vmem:[#allocation3 + $0x28] sm:$0xff]  ;;  %v4930_v6 = vand.u32 4294901760, %v268_v3  ;;  %v265_v7 = vld [vmem:[#allocation3 + $0x20] sm:$0xff]  ;;  %vm2017_vm1 = vcmask 654336   ;;  %vm2019_vm2 = vcmask 648192  }
  0x1d   : > { %s253_s23 = scalar_select %p252_p13, %s4863_s22, 1  ;;  %v4933_v9 = vand.u32 4294901760, %v267_v4  ;;  %v4935_v10 = vand.u32 4294901760, %v266_v5  ;;  %v4937_v11 = vand.u32 4294901760, %v265_v7  ;;  %v261_v13 = vld [vmem:[#allocation3 + $0x18] sm:$0xff]  ;;  %v260_v20 = vld [vmem:[#allocation3 + $0x10] sm:$0xff] }
  0x1e   : > { %v315_v15 = vsub.f32 %v268_v3, %v4930_v6  ;;  %386 = vmatpush.msra.mxu3 %v4930_v6  ;;  %286 = vmatpush.msra.mxu0 %v4930_v6  ;;  %v4960_v23 = vand.u32 4294901760, %v261_v13  ;;  %v259_v28 = vld [vmem:[#allocation3 + $0x8] sm:$0xff]  ;;  %v4972_v31 = vand.u32 4294901760, %v260_v20  ;;  %v258_v37 = vld [vmem:[#allocation3] sm:$0xff]  ;;  %v650_v52 = vld [vmem:[#allocation3 + $0x58] sm:$0xff]  ;;  %s4809_s10 = smov 8  }
  0x1f   : > { %s4600_s25 = sshll.u32 %s253_s23, 6  ;;  %v4945_v16 = vsub.f32 %v267_v4, %v4933_v9  ;;  %v4948_v17 = vsub.f32 %v266_v5, %v4935_v10  ;;  %v4952_v18 = vsub.f32 %v265_v7, %v4937_v11  ;;  %v4990_v40 = vand.u32 4294901760, %v259_v28  ;;  %v649_v58 = vld [vmem:[#allocation3 + $0x50] sm:$0xff]  ;;  %s4810_s11 = smov 112  }
  0x20   : > { %s4920_s6 = scalar_lea.vmem %s6811_s0, %s4600_s25  ;;  %v316_v22 = vand.u32 4294901760, %v315_v15  ;;  %357 = vmatpush.msra.mxu2 %v315_v15  ;;  %388 = vmatpush.msra.mxu3 %v4933_v9  ;;  %v4975_v32 = vsub.f32 %v261_v13, %v4960_v23  ;;  %v4993_v41 = vsub.f32 %v260_v20, %v4972_v31  ;;  %v4999_v47 = vand.u32 4294901760, %v258_v37  ;;  %v648_v13 = vld [vmem:[#allocation3 + $0x48] sm:$0xff]  ;;  %s4811_s12 = smov 120  }
  0x21   : > { %v257_v0 = vld [vmem:[%s4920_s6] sm:$0xff]  ;;  %v4591_v8 = vld [vmem:[%s4920_s6 + $0x10] sm:$0xff]  ;;  %v322_v24 = vand.u32 4294901760, %v4945_v16  ;;  %v328_v25 = vand.u32 4294901760, %v4948_v17  ;;  %v334_v26 = vand.u32 4294901760, %v4952_v18  ;;  %288 = vmatpush.msra.mxu0 %v4933_v9  ;;  %v5002_v48 = vsub.f32 %v259_v28, %v4990_v40  ;;  %s249_s30 = sand.u32 1, %s4793_s19  }
  0x22   : > { %v4924_v1 = vld [vmem:[%s4920_s6 + $0x1] sm:$0xff]  ;;  %651 = vrot.lane.b32.xlu0 %v257_v0, %s4807_s7  ;;  %v459_v2 = vsel %vm269_vm0, %v257_v0, 0  ;;  %v271_v12 = vsel %vm269_vm0, %v4591_v8, 0  ;;  %v317_v30 = vsub.f32 %v315_v15, %v316_v22  ;;  %360 = vmatpush.msra.mxu2 %v4945_v16  ;;  %v504_v39 = vand.u32 4294901760, %v4975_v32  ;;  %s4751_s26 = scalar_lea.hbm %s6816_s5, 16 }
  0x23   : > { %1823 = vrot.lane.b32.xlu1 %v4924_v1, %s4807_s7  ;;  %v4940_v14 = vand.u32 4294901760, %v459_v2  ;;  %v4954_v19 = vand.u32 4294901760, %v271_v12  ;;  %v4957_v21 = vld [vmem:[%s4920_s6 + $0x20] sm:$0xff]  ;;  %390 = vmatpush.msra.mxu3 %v4935_v10  ;;  %v323_v33 = vsub.f32 %v4945_v16, %v322_v24  ;;  %v329_v34 = vsub.f32 %v4948_v17, %v328_v25  ;;  %v647_v16 = vld [vmem:[#allocation3 + $0x40] sm:$0xff] }
  0x24   : > { %v335_v35 = vsub.f32 %v4952_v18, %v334_v26  ;;  %290 = vmatpush.msra.mxu0 %v4935_v10  ;;  %v318_v38 = vand.u32 4294901760, %v317_v30  ;;  %363 = vmatpush.msra.mxu2 %v4948_v17  ;;  %v505_v45 = vsub.f32 %v4975_v32, %v504_v39  ;;  %v510_v46 = vand.u32 4294901760, %v4993_v41 }
  0x25   : > { %v294_v27 = vsub.f32 %v271_v12, %v4954_v19  ;;  %v4968_v29 = vsub.f32 %v459_v2, %v4940_v14  ;;  %392 = vmatpush.msra.mxu3 %v4937_v11  ;;  %v324_v42 = vand.u32 4294901760, %v323_v33  ;;  %v330_v43 = vand.u32 4294901760, %v329_v34 }
  0x26   : > { %292 = vmatpush.msra.mxu0 %v4937_v11  ;;  %319 = vmatpush.msra.mxu1 %v318_v38  ;;  %v336_v49 = vand.u32 4294901760, %v335_v35  ;;  %v506_v53 = vand.u32 4294901760, %v505_v45  ;;  %v511_v54 = vsub.f32 %v4993_v41, %v510_v46  ;;  %v516_v55 = vand.u32 4294901760, %v5002_v48  ;;  %v844_v35 = vld [vmem:[#allocation3 + $0x60] sm:$0xff] }
  0x27   : > { %v295_v36 = vand.u32 4294901760, %v294_v27  ;;  %366 = vmatpush.msra.mxu2 %v4952_v18  ;;  %v483_v51 = vand.u32 4294901760, %v4968_v29  ;;  %v521_v56 = vsub.f32 %v258_v37, %v4999_v47  ;;  %v5014_v62 = vand.u32 4294901760, %v650_v52 }
  0x28   : > { %369 = vmatmul.f32.vlgmr.msra.gmra.mxu2 %v294_v27  ;;  %415 = vmatpush.msrb.mxu0 %v316_v22  ;;  %v512_v59 = vand.u32 4294901760, %v511_v54  ;;  %v517_v60 = vsub.f32 %v5002_v48, %v516_v55  ;;  %v5017_v3 = vand.u32 4294901760, %v649_v58  ;;  %v671_v15 = vand.u32 4294901760, %v648_v13  ;;  %v1042_v54 = vld [vmem:[#allocation3 + $0x90] sm:$0xff] }
  0x29   : > { %396 = vmatmul.f32.vlgmr.msra.gmra.mxu3 %v295_v36  ;;  %v296_v44 = vsub.f32 %v294_v27, %v295_v36  ;;  %325 = vmatpush.msra.mxu1 %v324_v42  ;;  %v484_v57 = vsub.f32 %v4968_v29, %v483_v51  ;;  %v522_v61 = vand.u32 4294901760, %v521_v56  ;;  %v697_v5 = vsub.f32 %v650_v52, %v5014_v62  ;;  %v846_v27 = vld [vmem:[#allocation3 + $0x70] sm:$0xff] }
  0x2a   : > { %1238 = vrot.lane.b32.xlu0 %v4957_v21, %s4807_s7  ;;  %474 = vmatpush.msrb.mxu2 %v4960_v23  ;;  %v518_v0 = vand.u32 4294901760, %v517_v60  ;;  %v703_v7 = vsub.f32 %v649_v58, %v5017_v3  ;;  %v709_v17 = vsub.f32 %v648_v13, %v671_v15  ;;  %v673_v18 = vand.u32 4294901760, %v647_v16  ;;  %v1040_v60 = vld [vmem:[#allocation3 + $0x80] sm:$0xff]  ;;  %s4597_s7 = sshll.u32 %s4863_s22, 3  ;;  %s4484_s22 = scalar_lea.sflag [#allocation5], %s249_s30 }
  0x2b   : > { %v297_v50 = vand.u32 4294901760, %v296_v44  ;;  %331 = vmatpush.msra.mxu1 %v330_v43  ;;  %507 = vmatpush.msrb.mxu3 %v506_v53  ;;  %v485_v63 = vand.u32 4294901760, %v484_v57  ;;  %v523_v2 = vsub.f32 %v521_v56, %v522_v61  ;;  %v5060_v30 = vand.u32 4294901760, %v846_v27 }
  0x2c   : > { %476 = vmatpush.msrb.mxu2 %v4972_v31  ;;  %419 = vmatpush.msrb.mxu0 %v322_v24  ;;  %v704_v8 = vand.u32 4294901760, %v703_v7  ;;  %v5073_v38 = vand.u32 4294901760, %v844_v35  ;;  %v5099_v57 = vand.u32 4294901760, %v1042_v54  ;;  %vm2025_vm3 = vcmask 588864  }
  0x2d   : > { %298 = vmatmul.f32.vlgmr.msra.gmra.mxu0 %v297_v50  ;;  %337 = vmatpush.msra.mxu1 %v336_v49  ;;  %v524_v4 = vand.u32 4294901760, %v523_v2  ;;  %v5067_v34 = vsub.f32 %v846_v27, %v5060_v30  ;;  %v849_v50 = vsel %vm269_vm0, %v4957_v21, 0  ;;  %vm2048_vm4 = vcmask 523264  }
  0x2e   : > { %478 = vmatpush.msrb.mxu2 %v4990_v40  ;;  %339 = vmatmul.f32.vlgmr.msra.gmra.mxu1 %v4954_v19  ;;  %v5083_v43 = vsub.f32 %v844_v35, %v5073_v38  ;;  %v5092_v52 = vand.u32 4294901760, %v849_v50 }
  0x2f   : > { %513 = vmatpush.msrb.mxu3 %v512_v59  ;;  %446 = vmatpush.msrb.mxu1 %v4930_v6  ;;  %v698_v6 = vand.u32 4294901760, %v697_v5  ;;  %v900_v37 = vand.u32 4294901760, %v5067_v34 }
  0x30   : > { %480 = vmatpush.msrb.mxu2 %v4999_v47  ;;  %423 = vmatpush.msrb.mxu0 %v328_v25 }
  0x31   : > { %519 = vmatpush.msrb.mxu3 %v518_v0  ;;  %486 = vmatmul.f32.vlgmr.msrb.gmra.mxu2 %v485_v63  ;;  %v5109_v63 = vsub.f32 %v1042_v54, %v5099_v57  ;;  %v1432_v54 = vld [vmem:[#allocation3 + $0xd0] sm:$0xff] }
  0x32   : > { %448 = vmatpush.msrb.mxu1 %v4933_v9  ;;  %603 = vmatpush.msra.mxu2 %v504_v39  ;;  %v699_v9 = vsub.f32 %v697_v5, %v698_v6 }
  0x33   : > { %525 = vmatpush.msrb.mxu3 %v524_v4  ;;  %427 = vmatpush.msrb.mxu0 %v334_v26 }
  0x34   : > { %450 = vmatpush.msrb.mxu1 %v4935_v10  ;;  %527 = vmatmul.f32.vlgmr.msrb.gmra.mxu3 %v4940_v14  ;;  %v705_v10 = vsub.f32 %v703_v7, %v704_v8 }
  0x35   : > { %607 = vmatpush.msra.mxu2 %v510_v46  ;;  %634 = vmatpush.msra.mxu3 %v4960_v23  ;;  %v912_v46 = vand.u32 4294901760, %v5083_v43 }
  0x36   : > { %452 = vmatpush.msrb.mxu1 %v4937_v11  ;;  %429 = vmatmul.f32.vlgmr.msrb.gmra.mxu0 %v4954_v19  ;;  %v700_v11 = vand.u32 4294901760, %v699_v9  ;;  %v706_v12 = vand.u32 4294901760, %v705_v10 }
  0x37   : > { %454 = vmatmul.f32.vlgmr.msrb.gmra.mxu1 %v4954_v19  ;;  %545 = vmatpush.msra.mxu0 %v4975_v32  ;;  %v715_v19 = vsub.f32 %v647_v16, %v673_v18 }
  0x38   : > { %574 = vmatpush.msra.mxu1 %v4960_v23  ;;  %611 = vmatpush.msra.mxu2 %v516_v55  ;;  %v847_v23 = vld [vmem:[#allocation3 + $0x78] sm:$0xff]  ;;  %v1041_v55 = vld [vmem:[#allocation3 + $0x88] sm:$0xff] }
  0x39   : > { %636 = vmatpush.msra.mxu3 %v4972_v31  ;;  %548 = vmatpush.msra.mxu0 %v4993_v41  ;;  %v716_v22 = vand.u32 4294901760, %v715_v19  ;;  %v5054_v26 = vand.u32 4294901760, %v847_v23  ;;  %v901_v41 = vsub.f32 %v5067_v34, %v900_v37  ;;  %v5104_v59 = vand.u32 4294901760, %v1041_v55 }
  0x3a   : > { %576 = vmatpush.msra.mxu1 %v4972_v31  ;;  %615 = vmatpush.msra.mxu2 %v522_v61  ;;  %v845_v31 = vld [vmem:[#allocation3 + $0x68] sm:$0xff] }
  0x3b   : > { %638 = vmatpush.msra.mxu3 %v4990_v40  ;;  %617 = vmatmul.f32.vlgmr.msra.gmra.mxu2 %v4940_v14  ;;  %v717_v25 = vsub.f32 %v715_v19, %v716_v22  ;;  %v5064_v33 = vand.u32 4294901760, %v845_v31  ;;  %v902_v44 = vand.u32 4294901760, %v901_v41  ;;  %v5117_v4 = vsub.f32 %v1041_v55, %v5104_v59 }
  0x3c   : > { %578 = vmatpush.msra.mxu1 %v4990_v40  ;;  %551 = vmatpush.msra.mxu0 %v5002_v48  ;;  %v913_v48 = vsub.f32 %v5083_v43, %v912_v46 }
  0x3d   : > { %640 = vmatpush.msra.mxu3 %v4999_v47  ;;  %739 = vmatpush.msrb.mxu2 %v697_v5  ;;  %v718_v28 = vand.u32 4294901760, %v717_v25  ;;  %v5076_v39 = vsub.f32 %v845_v31, %v5064_v33 }
  0x3e   : > { %580 = vmatpush.msra.mxu1 %v4999_v47  ;;  %642 = vmatmul.f32.vlgmr.msra.gmra.mxu3 %v4940_v14  ;;  %v710_v14 = vand.u32 4294901760, %v709_v17  ;;  %v914_v49 = vand.u32 4294901760, %v913_v48  ;;  %v1433_v48 = vld [vmem:[#allocation3 + $0xd8] sm:$0xff] }
  0x3f   : > { %584 = vmatmul.f32.vlgmr.msra.gmra.mxu1 %v483_v51  ;;  %554 = vmatpush.msra.mxu0 %v521_v56  ;;  %v906_v42 = vand.u32 4294901760, %v5076_v39  ;;  %v1043_v51 = vld [vmem:[#allocation3 + $0x98] sm:$0xff]  ;;  %v5097_v56 = vsub.f32 %v849_v50, %v5092_v52 }
  0x40   : > { %701 = vmatpush.msrb.mxu1 %v700_v11  ;;  %742 = vmatpush.msrb.mxu2 %v703_v7  ;;  %v711_v20 = vsub.f32 %v709_v17, %v710_v14  ;;  %v5094_v53 = vand.u32 4294901760, %v1043_v51  ;;  %v1102_v11 = vand.u32 4294901760, %v5117_v4 }
  0x41   : > { %768 = vmatpush.msrb.mxu3 %v5014_v62  ;;  %557 = vmatmul.f32.vlgmr.msra.gmra.mxu0 %v4968_v29  ;;  %v5058_v29 = vsub.f32 %v847_v23, %v5054_v26  ;;  %v907_v45 = vsub.f32 %v5076_v39, %v906_v42  ;;  %v873_v21 = vand.u32 4294901760, %v5097_v56  ;;  %v1236_v23 = vld [vmem:[#allocation3 + $0xb0] sm:$0xff] }
  0x42   : > { %707 = vmatpush.msrb.mxu1 %v706_v12  ;;  %668 = vmatpush.msrb.mxu0 %v5014_v62  ;;  %v712_v24 = vand.u32 4294901760, %v711_v20  ;;  %v5102_v58 = vsub.f32 %v1043_v51, %v5094_v53  ;;  %v1237_v12 = vld [vmem:[#allocation3 + $0xb8] sm:$0xff]  ;;  %v5157_v31 = vand.u32 4294901760, %v1236_v23 }
  0x43   : > { %770 = vmatpush.msrb.mxu3 %v5017_v3  ;;  %745 = vmatpush.msrb.mxu2 %v709_v17  ;;  %v894_v32 = vand.u32 4294901760, %v5058_v29  ;;  %v908_v47 = vand.u32 4294901760, %v907_v45  ;;  %v874_v7 = vsub.f32 %v5097_v56, %v873_v21  ;;  %v5141_v20 = vand.u32 4294901760, %v1237_v12 }
  0x44   : > { %670 = vmatpush.msrb.mxu0 %v5017_v3  ;;  %713 = vmatpush.msrb.mxu1 %v712_v24  ;;  %v1090_v2 = vand.u32 4294901760, %v5102_v58 }
  0x45   : > { %772 = vmatpush.msrb.mxu3 %v671_v15  ;;  %748 = vmatpush.msrb.mxu2 %v715_v19  ;;  %v895_v36 = vsub.f32 %v5058_v29, %v894_v32  ;;  %v4593_v19 = vld [vmem:[%s4920_s6 + $0x30] sm:$0xff] }
  0x46   : > { %672 = vmatpush.msrb.mxu0 %v671_v15  ;;  %719 = vmatpush.msrb.mxu1 %v718_v28  ;;  %v1091_v9 = vsub.f32 %v5102_v58, %v1090_v2  ;;  %v5155_v28 = vsub.f32 %v1237_v12, %v5141_v20 }
  0x47   : > { %774 = vmatpush.msrb.mxu3 %v673_v18  ;;  %864 = vmatpush.msra.mxu2 %v5054_v26  ;;  %v896_v40 = vand.u32 4294901760, %v895_v36  ;;  %v1234_v36 = vld [vmem:[#allocation3 + $0xa0] sm:$0xff] }
  0x48   : > { %674 = vmatpush.msrb.mxu0 %v673_v18  ;;  %828 = vmatpush.msra.mxu1 %v5014_v62  ;;  %v1285_v41 = vand.u32 4294901760, %v5155_v28 }
  0x49   : > { %866 = vmatpush.msra.mxu2 %v5060_v30  ;;  %897 = vmatpush.msra.mxu3 %v896_v40 }
  0x4a   : > { %797 = vmatpush.msra.mxu0 %v698_v6  ;;  %830 = vmatpush.msra.mxu1 %v5017_v3  ;;  %v5114_v3 = vand.u32 4294901760, %v1040_v60  ;;  %v1096_v6 = vand.u32 4294901760, %v5109_v63  ;;  %v1286_v45 = vsub.f32 %v5155_v28, %v1285_v41 }
  0x4b   : > { %868 = vmatpush.msra.mxu2 %v5064_v33  ;;  %903 = vmatpush.msra.mxu3 %v902_v44 }
  0x4c   : > { %801 = vmatpush.msra.mxu0 %v704_v8  ;;  %832 = vmatpush.msra.mxu1 %v671_v15  ;;  %v5130_v10 = vsub.f32 %v1040_v60, %v5114_v3  ;;  %v875_v15 = vand.u32 4294901760, %v874_v7  ;;  %v1097_v16 = vsub.f32 %v5109_v63, %v1096_v6  ;;  %v1287_v51 = vand.u32 4294901760, %v1286_v45 }
  0x4d   : > { %870 = vmatpush.msra.mxu2 %v5073_v38  ;;  %909 = vmatpush.msra.mxu3 %v908_v47  ;;  %v5217_v60 = vand.u32 4294901760, %v1433_v48 }
  0x4e   : > { %805 = vmatpush.msra.mxu0 %v710_v14  ;;  %834 = vmatpush.msra.mxu1 %v673_v18  ;;  %v1092_v18 = vand.u32 4294901760, %v1091_v9  ;;  %v1108_v14 = vand.u32 4294901760, %v5130_v10  ;;  %v1098_v25 = vand.u32 4294901760, %v1097_v16 }
  0x4f   : > { %915 = vmatpush.msra.mxu3 %v914_v49  ;;  %v5237_v7 = vsub.f32 %v1433_v48, %v5217_v60  ;;  %v1822_v48 = vld [vmem:[#allocation3 + $0x118] sm:$0xff] }
  0x50   : > { %809 = vmatpush.msra.mxu0 %v716_v22  ;;  %v1103_v22 = vsub.f32 %v5117_v4, %v1102_v11  ;;  %v1109_v27 = vsub.f32 %v5130_v10, %v1108_v14 }
  0x52   : > { %v1110_v40 = vand.u32 4294901760, %v1109_v27 }
  0x94   : > { %v652_v61 = vpop.permute.xlu0 %651 }
  0x95   : > { %v653_v62 = vsel %vm269_vm0, %v652_v61, 0  ;;  %v1431_v61 = vld [vmem:[#allocation3 + $0xc8] sm:$0xff] }
  0x96   : > { %v5111_v0 = vand.u32 4294901760, %v653_v62 }
  0x98   : > { %v676_v5 = vsub.f32 %v653_v62, %v5111_v0  ;;  %721 = vmatmul.f32.vlgmr.msrb.gmra.mxu1 %v5111_v0  ;;  %v5226_v62 = vand.u32 4294901760, %v1432_v54 }
  0x99   : > { %964 = vmatpush.msrb.mxu1 %v5054_v26 }
  0x9a   : > { %v677_v8 = vand.u32 4294901760, %v676_v5  ;;  %751 = vmatmul.f32.vlgmr.msrb.gmra.mxu2 %v676_v5  ;;  %v5245_v12 = vsub.f32 %v1432_v54, %v5226_v62 }
  0x9b   : > { %966 = vmatpush.msrb.mxu1 %v5060_v30  ;;  %993 = vmatpush.msrb.mxu2 %v894_v32  ;;  %v1235_v32 = vld [vmem:[#allocation3 + $0xa8] sm:$0xff] }
  0x9c   : > { %v678_v13 = vsub.f32 %v676_v5, %v677_v8  ;;  %778 = vmatmul.f32.vlgmr.msrb.gmra.mxu3 %v677_v8  ;;  %v1239_v24 = vpop.permute.xlu0 %1238  ;;  %v1430_v5 = vld [vmem:[#allocation3 + $0xc0] sm:$0xff]  ;;  %v5239_v8 = vand.u32 4294901760, %v1431_v61 }
  0x9d   : > { %968 = vmatpush.msrb.mxu1 %v5064_v33  ;;  %997 = vmatpush.msrb.mxu2 %v900_v37  ;;  %v5168_v37 = vand.u32 4294901760, %v1235_v32 }
  0x9e   : > { %v679_v17 = vand.u32 4294901760, %v678_v13  ;;  %1024 = vmatpush.msrb.mxu3 %v5054_v26  ;;  %v1045_v26 = vsel %vm269_vm0, %v4593_v19, 0  ;;  %v5247_v13 = vand.u32 4294901760, %v1430_v5  ;;  %v1435_v19 = vsel %vm269_vm0, %v4924_v1, 0 }
  0x9f   : > { %970 = vmatpush.msrb.mxu1 %v5073_v38  ;;  %1001 = vmatpush.msrb.mxu2 %v906_v42  ;;  %v5165_v35 = vand.u32 4294901760, %v1045_v26  ;;  %v5176_v42 = vsub.f32 %v1236_v23, %v5157_v31  ;;  %v5295_v27 = vand.u32 4294901760, %v1435_v19 }
  0xa0   : > { %680 = vmatmul.f32.vlgmr.msrb.gmra.mxu0 %v679_v17  ;;  %836 = vmatmul.f32.vlgmr.msra.gmra.mxu1 %v5111_v0  ;;  %v5255_v17 = vsub.f32 %v1431_v61, %v5239_v8 }
  0xa1   : > { %1026 = vmatpush.msrb.mxu3 %v5060_v30  ;;  %935 = vmatpush.msrb.mxu0 %v5058_v29  ;;  %v1104_v29 = vand.u32 4294901760, %v1103_v22  ;;  %v1240_v30 = vsel %vm269_vm0, %v1239_v24, 0  ;;  %v1627_v24 = vld [vmem:[#allocation3 + $0xf0] sm:$0xff] }
  0xa2   : > { %876 = vmatmul.f32.vlgmr.msra.gmra.mxu2 %v875_v15  ;;  %1093 = vmatpush.msra.mxu1 %v1092_v18 }
  0xa3   : > { %1005 = vmatpush.msrb.mxu2 %v912_v46  ;;  %1028 = vmatpush.msrb.mxu3 %v5064_v33  ;;  %v5172_v33 = vand.u32 4294901760, %v1240_v30  ;;  %v1291_v46 = vand.u32 4294901760, %v5176_v42 }
  0xa4   : > { %917 = vmatmul.f32.vlgmr.msra.gmra.mxu3 %v5092_v52  ;;  %938 = vmatpush.msrb.mxu0 %v5067_v34  ;;  %v5179_v34 = vand.u32 4294901760, %v1234_v36 }
  0xa5   : > { %1030 = vmatpush.msrb.mxu3 %v5073_v38  ;;  %1099 = vmatpush.msra.mxu1 %v1098_v25  ;;  %v1068_v38 = vsub.f32 %v1045_v26, %v5165_v35  ;;  %v5192_v44 = vsub.f32 %v1240_v30, %v5172_v33  ;;  %v4594_v25 = vld [vmem:[%s4920_s6 + $0x11] sm:$0xff] }
  0xa6   : > { %1131 = vmatpush.msra.mxu2 %v5102_v58  ;;  %941 = vmatpush.msrb.mxu0 %v5076_v39  ;;  %v5188_v39 = vsub.f32 %v1235_v32, %v5168_v37  ;;  %v1486_v58 = vand.u32 4294901760, %v5245_v12  ;;  %v1626_v26 = vld [vmem:[#allocation3 + $0xe8] sm:$0xff] }
  0xa7   : > { %1105 = vmatpush.msra.mxu1 %v1104_v29  ;;  %1160 = vmatpush.msra.mxu3 %v5094_v53  ;;  %v1069_v47 = vand.u32 4294901760, %v1068_v38  ;;  %v1264_v50 = vand.u32 4294901760, %v5192_v44  ;;  %v1625_v29 = vld [vmem:[#allocation3 + $0xe0] sm:$0xff]  ;;  %v5314_v30 = vand.u32 4294901760, %v1626_v26 }
  0xa8   : > { %811 = vmatmul.f32.vlgmr.msra.gmra.mxu0 %v5111_v0  ;;  %974 = vmatmul.f32.vlgmr.msrb.gmra.mxu1 %v873_v21  ;;  %v1297_v49 = vand.u32 4294901760, %v5188_v39  ;;  %v1487_v22 = vsub.f32 %v5245_v12, %v1486_v58 }
  0xa9   : > { %1134 = vmatpush.msra.mxu2 %v5109_v63  ;;  %944 = vmatpush.msrb.mxu0 %v5083_v43  ;;  %v5201_v43 = vsub.f32 %v1234_v36, %v5179_v34  ;;  %v1265_v0 = vsub.f32 %v5192_v44, %v1264_v50  ;;  %v1492_v63 = vand.u32 4294901760, %v5255_v17  ;;  %v1458_v36 = vsub.f32 %v1435_v19, %v5295_v27 }
  0xaa   : > { %1007 = vmatmul.f32.vlgmr.msrb.gmra.mxu2 %v5092_v52  ;;  %1111 = vmatpush.msra.mxu1 %v1110_v40  ;;  %v1298_v21 = vsub.f32 %v5188_v39, %v1297_v49  ;;  %v5332_v45 = vsub.f32 %v1626_v26, %v5314_v30 }
  0xab   : > { %1137 = vmatpush.msra.mxu2 %v5117_v4  ;;  %1162 = vmatpush.msra.mxu3 %v5099_v57  ;;  %v1303_v55 = vand.u32 4294901760, %v5201_v43  ;;  %v1266_v15 = vand.u32 4294901760, %v1265_v0 }
  0xac   : > { %1032 = vmatmul.f32.vlgmr.msrb.gmra.mxu3 %v5092_v52  ;;  %1060 = vmatpush.msra.mxu0 %v5094_v53  ;;  %v1292_v52 = vsub.f32 %v5176_v42, %v1291_v46 }
  0xad   : > { %1140 = vmatpush.msra.mxu2 %v5130_v10  ;;  %1164 = vmatpush.msra.mxu3 %v5104_v59  ;;  %v5299_v10 = vand.u32 4294901760, %v1627_v24 }
  0xae   : > { %1220 = vmatpush.msrb.mxu1 %v5094_v53  ;;  %1062 = vmatpush.msra.mxu0 %v5099_v57  ;;  %v1070_v53 = vsub.f32 %v1068_v38, %v1069_v47 }
  0xaf   : > { %1166 = vmatpush.msra.mxu3 %v5114_v3  ;;  %1255 = vmatpush.msrb.mxu2 %v5141_v20  ;;  %v5323_v40 = vsub.f32 %v1627_v24, %v5299_v10 }
  0xb0   : > { %947 = vmatmul.f32.vlgmr.msrb.gmra.mxu0 %v5097_v56  ;;  %1113 = vmatmul.f32.vlgmr.msra.gmra.mxu1 %v5165_v35  ;;  %v1293_v56 = vand.u32 4294901760, %v1292_v52  ;;  %v1071_v9 = vand.u32 4294901760, %v1070_v53  ;;  %v5361_v52 = vand.u32 4294901760, %v1822_v48  ;;  %v1820_v53 = vld [vmem:[#allocation3 + $0x108] sm:$0xff] }
  0xb1   : > { %1222 = vmatpush.msrb.mxu1 %v5099_v57  ;;  %1064 = vmatpush.msra.mxu0 %v5104_v59  ;;  %v1304_v57 = vsub.f32 %v5201_v43, %v1303_v55 }
  0xb2   : > { %1143 = vmatmul.f32.vlgmr.msra.gmra.mxu2 %v1068_v38  ;;  %1288 = vmatpush.msrb.mxu3 %v1287_v51  ;;  %v1821_v51 = vld [vmem:[#allocation3 + $0x110] sm:$0xff] }
  0xb3   : > { %1224 = vmatpush.msrb.mxu1 %v5104_v59  ;;  %1257 = vmatpush.msrb.mxu2 %v5157_v31  ;;  %v1299_v59 = vand.u32 4294901760, %v1298_v21  ;;  %v1305_v16 = vand.u32 4294901760, %v1304_v57  ;;  %v5373_v61 = vand.u32 4294901760, %v1821_v51  ;;  %v5384_v57 = vand.u32 4294901760, %v1820_v53 }
  0xb4   : > { %1170 = vmatmul.f32.vlgmr.msra.gmra.mxu3 %v1069_v47  ;;  %1066 = vmatpush.msra.mxu0 %v5114_v3  ;;  %v1687_v47 = vand.u32 4294901760, %v5332_v45 }
  0xb5   : > { %1226 = vmatpush.msrb.mxu1 %v5114_v3  ;;  %1259 = vmatpush.msrb.mxu2 %v5168_v37  ;;  %v1480_v3 = vand.u32 4294901760, %v5237_v7 }
  0xb6   : > { %1294 = vmatpush.msrb.mxu3 %v1293_v56  ;;  %1189 = vmatpush.msrb.mxu0 %v1090_v2  ;;  %v5262_v2 = vsub.f32 %v1430_v5, %v5247_v13  ;;  %v1819_v5 = vld [vmem:[#allocation3 + $0x100] sm:$0xff] }
  0xb7   : > { %1261 = vmatpush.msrb.mxu2 %v5179_v34  ;;  %1355 = vmatpush.msra.mxu1 %v5141_v20  ;;  %v1481_v18 = vsub.f32 %v5237_v7, %v1480_v3 }
  0xb8   : > { %1072 = vmatmul.f32.vlgmr.msra.gmra.mxu0 %v1071_v9  ;;  %1228 = vmatmul.f32.vlgmr.msrb.gmra.mxu1 %v5165_v35  ;;  %v1498_v23 = vand.u32 4294901760, %v5262_v2 }
  0xb9   : > { %1300 = vmatpush.msrb.mxu3 %v1299_v59  ;;  %1193 = vmatpush.msrb.mxu0 %v1096_v6  ;;  %v1628_v6 = vld [vmem:[#allocation3 + $0xf8] sm:$0xff]  ;;  %v1482_v1 = vand.u32 4294901760, %v1481_v18 }
  0xba   : > { %1267 = vmatmul.f32.vlgmr.msrb.gmra.mxu2 %v1266_v15  ;;  %1357 = vmatpush.msra.mxu1 %v5157_v31  ;;  %v5287_v4 = vand.u32 4294901760, %v1628_v6  ;;  %v1499_v32 = vsub.f32 %v5262_v2, %v1498_v23  ;;  %v5390_v15 = vsub.f32 %v1821_v51, %v5373_v61 }
  0xbb   : > { %1306 = vmatpush.msrb.mxu3 %v1305_v16  ;;  %1384 = vmatpush.msra.mxu2 %v1285_v41 }
  0xbc   : > { %1308 = vmatmul.f32.vlgmr.msrb.gmra.mxu3 %v5172_v33  ;;  %1197 = vmatpush.msrb.mxu0 %v1102_v11  ;;  %v1493_v11 = vsub.f32 %v5255_v17, %v1492_v63  ;;  %v1500_v41 = vand.u32 4294901760, %v1499_v32  ;;  %v299_v32 = vpop.f32.mrf.mxu0 }
  0xbd   : > { %1359 = vmatpush.msra.mxu1 %v5168_v37  ;;  %1388 = vmatpush.msra.mxu2 %v1291_v46 }
  0xbe   : > { %1415 = vmatpush.msra.mxu3 %v5141_v20  ;;  %1201 = vmatpush.msrb.mxu0 %v1108_v14  ;;  %v1630_v14 = vsel %vm269_vm0, %v4594_v25, 0  ;;  %v1488_v20 = vand.u32 4294901760, %v1487_v22 }
  0xbf   : > { %1361 = vmatpush.msra.mxu1 %v5179_v34  ;;  %1392 = vmatpush.msra.mxu2 %v1297_v49 }
  0xc0   : > { %1417 = vmatpush.msra.mxu3 %v5157_v31  ;;  %1203 = vmatmul.f32.vlgmr.msrb.gmra.mxu0 %v5165_v35  ;;  %v5312_v31 = vsub.f32 %v1628_v6, %v5287_v4  ;;  %v5317_v35 = vand.u32 4294901760, %v1630_v14  ;;  %v1876_v6 = vand.u32 4294901760, %v5390_v15 }
  0xc1   : > { %1365 = vmatmul.f32.vlgmr.msra.gmra.mxu1 %v1264_v50  ;;  %1326 = vmatpush.msra.mxu0 %v5155_v28  ;;  %v1494_v28 = vand.u32 4294901760, %v1493_v11 }
  0xc2   : > { %1396 = vmatpush.msra.mxu2 %v1303_v55  ;;  %1419 = vmatpush.msra.mxu3 %v5168_v37  ;;  %v5325_v37 = vand.u32 4294901760, %v1625_v29  ;;  %v1675_v38 = vand.u32 4294901760, %v5312_v31  ;;  %v1688_v55 = vsub.f32 %v5332_v45, %v1687_v47 }
  0xc3   : > { %1483 = vmatpush.msrb.mxu1 %v1482_v1  ;;  %1398 = vmatmul.f32.vlgmr.msra.gmra.mxu2 %v5172_v33 }
  0xc4   : > { %1329 = vmatpush.msra.mxu0 %v5176_v42  ;;  %1421 = vmatpush.msra.mxu3 %v5179_v34  ;;  %v5336_v42 = vsub.f32 %v1630_v14, %v5317_v35  ;;  %v1459_v34 = vand.u32 4294901760, %v1458_v36  ;;  %v1676_v46 = vsub.f32 %v5312_v31, %v1675_v38  ;;  %v1689_v9 = vand.u32 4294901760, %v1688_v55  ;;  %v340_v14 = vpop.f32.mrf.mxu1 }
  0xc5   : > { %1489 = vmatpush.msrb.mxu1 %v1488_v20  ;;  %1521 = vmatpush.msrb.mxu2 %v5237_v7  ;;  %v1824_v7 = vpop.permute.xlu1 %1823  ;;  %v370_v20 = vpop.f32.mrf.mxu2 }
  0xc6   : > { %1423 = vmatmul.f32.vlgmr.msra.gmra.mxu3 %v5172_v33  ;;  %1332 = vmatpush.msra.mxu0 %v5188_v39  ;;  %v1681_v33 = vand.u32 4294901760, %v5323_v40  ;;  %v5342_v39 = vsub.f32 %v1625_v29, %v5325_v37  ;;  %v1460_v49 = vsub.f32 %v1458_v36, %v1459_v34  ;;  %v1677_v54 = vand.u32 4294901760, %v1676_v46 }
  0xc7   : > { %1495 = vmatpush.msrb.mxu1 %v1494_v28  ;;  %1524 = vmatpush.msrb.mxu2 %v5245_v12  ;;  %v1877_v12 = vsub.f32 %v5390_v15, %v1876_v6  ;;  %v1825_v24 = vsel %vm269_vm0, %v1824_v7, 0  ;;  %v430_v28 = vpop.f32.mrf.mxu0 }
  0xc8   : > { %1550 = vmatpush.msrb.mxu3 %v5217_v60  ;;  %1335 = vmatpush.msra.mxu0 %v5201_v43  ;;  %v1654_v43 = vand.u32 4294901760, %v5336_v42  ;;  %v1693_v50 = vand.u32 4294901760, %v5342_v39  ;;  %v1461_v0 = vand.u32 4294901760, %v1460_v49  ;;  %v1847_v25 = vand.u32 4294901760, %v1825_v24 }
  0xc9   : > { %1501 = vmatpush.msrb.mxu1 %v1500_v41  ;;  %1527 = vmatpush.msrb.mxu2 %v5255_v17 }
  0xca   : > { %1552 = vmatpush.msrb.mxu3 %v5226_v62  ;;  %1338 = vmatmul.f32.vlgmr.msra.gmra.mxu0 %v5192_v44  ;;  %v1682_v44 = vsub.f32 %v5323_v40, %v1681_v33  ;;  %v1694_v56 = vsub.f32 %v5342_v39, %v1693_v50  ;;  %v1848_v1 = vsub.f32 %v1825_v24, %v1847_v25 }
  0xcb   : > { %1503 = vmatmul.f32.vlgmr.msrb.gmra.mxu1 %v5295_v27  ;;  %1450 = vmatpush.msrb.mxu0 %v5217_v60 }
  0xcc   : > { %1530 = vmatpush.msrb.mxu2 %v5262_v2  ;;  %1554 = vmatpush.msrb.mxu3 %v5239_v8  ;;  %v1683_v21 = vand.u32 4294901760, %v1682_v44  ;;  %v1695_v16 = vand.u32 4294901760, %v1694_v56  ;;  %v1878_v2 = vand.u32 4294901760, %v1877_v12  ;;  %v1849_v26 = vand.u32 4294901760, %v1848_v1  ;;  %v455_v29 = vpop.f32.mrf.mxu1 }
  0xcd   : > { %1610 = vmatpush.msra.mxu1 %v5217_v60  ;;  %1533 = vmatmul.f32.vlgmr.msrb.gmra.mxu2 %v1458_v36  ;;  %v1655_v60 = vsub.f32 %v5336_v42, %v1654_v43 }
  0xce   : > { %1452 = vmatpush.msrb.mxu0 %v5226_v62  ;;  %1556 = vmatpush.msrb.mxu3 %v5247_v13 }
  0xcf   : > { %1612 = vmatpush.msra.mxu1 %v5226_v62  ;;  %1645 = vmatpush.msra.mxu2 %v5287_v4  ;;  %v5382_v62 = vsub.f32 %v1822_v48, %v5361_v52  ;;  %v1656_v59 = vand.u32 4294901760, %v1655_v60 }
  0xd0   : > { %1560 = vmatmul.f32.vlgmr.msrb.gmra.mxu3 %v1459_v34  ;;  %1454 = vmatpush.msrb.mxu0 %v5239_v8 }
  0xd1   : > { %1614 = vmatpush.msra.mxu1 %v5239_v8  ;;  %1647 = vmatpush.msra.mxu2 %v5299_v10  ;;  %v5392_v8 = vand.u32 4294901760, %v1819_v5  ;;  %v1870_v18 = vand.u32 4294901760, %v5382_v62 }
  0xd2   : > { %1678 = vmatpush.msra.mxu3 %v1677_v54  ;;  %1456 = vmatpush.msrb.mxu0 %v5247_v13 }
  0xd3   : > { %1616 = vmatpush.msra.mxu1 %v5247_v13  ;;  %1649 = vmatpush.msra.mxu2 %v5314_v30  ;;  %v5399_v13 = vsub.f32 %v1820_v53, %v5384_v57  ;;  %v5405_v19 = vsub.f32 %v1819_v5, %v5392_v8 }
  0xd4   : > { %1684 = vmatpush.msra.mxu3 %v1683_v21  ;;  %1462 = vmatmul.f32.vlgmr.msrb.gmra.mxu0 %v1461_v0  ;;  %v341_v21 = vadd.f32 %v340_v14, %v299_v32 }
  0xd5   : > { %1618 = vmatmul.f32.vlgmr.msra.gmra.mxu1 %v5295_v27  ;;  %1579 = vmatpush.msra.mxu0 %v1480_v3  ;;  %v1871_v3 = vsub.f32 %v5382_v62, %v1870_v18  ;;  %v1882_v22 = vand.u32 4294901760, %v5399_v13 }
  0xd6   : > { %1651 = vmatpush.msra.mxu2 %v5325_v37  ;;  %1690 = vmatpush.msra.mxu3 %v1689_v9  ;;  %v371_v5 = vadd.f32 %v370_v20, %v341_v21 }
  0xd7   : > { %1745 = vmatpush.msrb.mxu1 %v5287_v4  ;;  %1657 = vmatmul.f32.vlgmr.msra.gmra.mxu2 %v1656_v59  ;;  %v1872_v17 = vand.u32 4294901760, %v1871_v3 }
  0xd8   : > { %1583 = vmatpush.msra.mxu0 %v1486_v58  ;;  %1696 = vmatpush.msra.mxu3 %v1695_v16  ;;  %v1888_v58 = vand.u32 4294901760, %v5405_v19 }
  0xd9   : > { %1747 = vmatpush.msrb.mxu1 %v5299_v10  ;;  %1774 = vmatpush.msrb.mxu2 %v1675_v38 }
  0xda   : > { %1698 = vmatmul.f32.vlgmr.msra.gmra.mxu3 %v5317_v35  ;;  %1587 = vmatpush.msra.mxu0 %v1492_v63  ;;  %v1883_v63 = vsub.f32 %v5399_v13, %v1882_v22 }
  0xdb   : > { %1749 = vmatpush.msrb.mxu1 %v5314_v30  ;;  %1778 = vmatpush.msrb.mxu2 %v1681_v33 }
  0xdc   : > { %1805 = vmatpush.msrb.mxu3 %v5287_v4  ;;  %1591 = vmatpush.msra.mxu0 %v1498_v23  ;;  %v1889_v23 = vsub.f32 %v5405_v19, %v1888_v58  ;;  %v1884_v4 = vand.u32 4294901760, %v1883_v63 }
  0xdd   : > { %1751 = vmatpush.msrb.mxu1 %v5325_v37  ;;  %1782 = vmatpush.msrb.mxu2 %v1687_v47 }
  0xde   : > { %1807 = vmatpush.msrb.mxu3 %v5299_v10  ;;  %1593 = vmatmul.f32.vlgmr.msra.gmra.mxu0 %v5295_v27  ;;  %v1890_v11 = vand.u32 4294901760, %v1889_v23  ;;  %v1850_v27 = vsub.f32 %v1848_v1, %v1849_v26  ;;  %v4808_v23 = vmov 0.0  }
  0xdf   : > { %1755 = vmatmul.f32.vlgmr.msrb.gmra.mxu1 %v1654_v43  ;;  %1716 = vmatpush.msrb.mxu0 %v5312_v31  ;;  %v397_v31 = vpop.f32.mrf.mxu3  ;;  %2018 = vst.msk [vmem:[#allocation2] sm:$0xff] %vm2017_vm1, %v4808_v23 }
  0xe0   : > { %1786 = vmatpush.msrb.mxu2 %v1693_v50  ;;  %1809 = vmatpush.msrb.mxu3 %v5314_v30  ;;  %v1851_v10 = vand.u32 4294901760, %v1850_v27  ;;  %v487_v30 = vpop.f32.mrf.mxu2  ;;  %2020 = vst.msk [vmem:[#allocation2 + $0x8] sm:$0x3] %vm2019_vm2, %v4808_v23 }
  0xe1   : > { %1873 = vmatpush.msra.mxu1 %v1872_v17  ;;  %1788 = vmatmul.f32.vlgmr.msrb.gmra.mxu2 %v5317_v35 }
  0xe2   : > { %1719 = vmatpush.msrb.mxu0 %v5323_v40  ;;  %1811 = vmatpush.msrb.mxu3 %v5325_v37  ;;  %v558_v37 = vpop.f32.mrf.mxu0 }
  0xe3   : > { %1879 = vmatpush.msra.mxu1 %v1878_v2  ;;  %1911 = vmatpush.msra.mxu2 %v5382_v62 }
  0xe4   : > { %1813 = vmatmul.f32.vlgmr.msrb.gmra.mxu3 %v5317_v35  ;;  %1722 = vmatpush.msrb.mxu0 %v5332_v45  ;;  %v585_v35 = vpop.f32.mrf.mxu1 }
  0xe5   : > { %1885 = vmatpush.msra.mxu1 %v1884_v4  ;;  %1914 = vmatpush.msra.mxu2 %v5390_v15 }
  0xe6   : > { %1940 = vmatpush.msra.mxu3 %v5361_v52  ;;  %1725 = vmatpush.msrb.mxu0 %v5342_v39 }
  0xe7   : > { %1891 = vmatpush.msra.mxu1 %v1890_v11  ;;  %1917 = vmatpush.msra.mxu2 %v5399_v13  ;;  %v528_v36 = vpop.f32.mrf.mxu3 }
  0xe8   : > { %1942 = vmatpush.msra.mxu3 %v5373_v61  ;;  %1728 = vmatmul.f32.vlgmr.msrb.gmra.mxu0 %v5336_v42  ;;  %v5470_v40 = vpop.f32.mrf.mxu2 }
  0xe9   : > { %1893 = vmatmul.f32.vlgmr.msra.gmra.mxu1 %v1847_v25  ;;  %1840 = vmatpush.msra.mxu0 %v5361_v52 }
  0xea   : > { %1920 = vmatpush.msra.mxu2 %v5405_v19  ;;  %1944 = vmatpush.msra.mxu3 %v5384_v57 }
  0xeb   : > { %2000 = vmatpush.msrb.mxu1 %v5361_v52  ;;  %1923 = vmatmul.f32.vlgmr.msra.gmra.mxu2 %v1848_v1 }
  0xec   : > { %1842 = vmatpush.msra.mxu0 %v5373_v61  ;;  %1946 = vmatpush.msra.mxu3 %v5392_v8 }
  0xed   : > { %2002 = vmatpush.msrb.mxu1 %v5373_v61  ;;  %1950 = vmatmul.f32.vlgmr.msra.gmra.mxu3 %v1849_v26 }
  0xee   : > { %1844 = vmatpush.msra.mxu0 %v5384_v57 }
  0xef   : > { %2004 = vmatpush.msrb.mxu1 %v5384_v57  ;;  %v5472_v38 = vpop.f32.mrf.mxu3  ;;  %v398_v57 = vadd.f32 %v397_v31, %v371_v5 }
  0xf0   : > { %1846 = vmatpush.msra.mxu0 %v5392_v8 }
  0xf1   : > { %2006 = vmatpush.msrb.mxu1 %v5392_v8  ;;  %1852 = vmatmul.f32.vlgmr.msra.gmra.mxu0 %v1851_v10  ;;  %v431_v59 = vadd.f32 %v430_v28, %v398_v57 }
  0xf2   : > { %2008 = vmatmul.f32.vlgmr.msrb.gmra.mxu1 %v1847_v25  ;;  %1969 = vmatpush.msrb.mxu0 %v1870_v18 }
  0xf3   : > { %v456_v18 = vadd.f32 %v455_v29, %v431_v59 }
  0xf4   : > { %1973 = vmatpush.msrb.mxu0 %v1876_v6 }
  0xf5   : > { %v488_v6 = vadd.f32 %v487_v30, %v456_v18 }
  0xf6   : > { %1977 = vmatpush.msrb.mxu0 %v1882_v22 }
  0xf7   : > { %v529_v3 = vadd.f32 %v528_v36, %v488_v6 }
  0xf8   : > { %1981 = vmatpush.msrb.mxu0 %v1888_v58 }
  0xf9   : > { %1983 = vmatmul.f32.vlgmr.msrb.gmra.mxu0 %v1847_v25  ;;  %v559_v24 = vadd.f32 %v558_v37, %v529_v3  ;;  %v2043_v3 = vld [vmem:[#allocation6 + $0x70] sm:$0xff] }
  0xfb   : > { %v586_v1 = vadd.f32 %v585_v35, %v559_v24 }
  0xfd   : > { %v619_v28 = vadd.f32 %v5470_v40, %v586_v1  ;;  %v2038_v1 = vld [vmem:[#allocation6 + $0x48] sm:$0xff] }
 0x115   : > { %v722_v41 = vpop.f32.mrf.mxu1 }
 0x11d   : > { %v681_v45 = vpop.f32.mrf.mxu0  ;;  %v752_v42 = vpop.f32.mrf.mxu2 }
 0x11e   : > { %v5474_v34 = vpop.f32.mrf.mxu1  ;;  %v723_v22 = vadd.f32 %v722_v41, %v681_v45 }
 0x11f   : > { %v779_v33 = vpop.f32.mrf.mxu3 }
 0x120   : > { %v753_v17 = vadd.f32 %v752_v42, %v723_v22  ;;  %v2042_v22 = vld [vmem:[#allocation6 + $0x68] sm:$0xff] }
 0x121   : > { %v5489_v24 = vand.u32 4294901760, %v2042_v22 }
 0x122   : > { %v780_v27 = vadd.f32 %v779_v33, %v753_v17  ;;  %v644_v33 = vadd.f32 %v5472_v38, %v619_v28  ;;  %v2041_v17 = vld [vmem:[#allocation6 + $0x60] sm:$0xff] }
 0x125   : > { %v812_v39 = vpop.f32.mrf.mxu0  ;;  %v877_v46 = vpop.f32.mrf.mxu2 }
 0x126   : > { %v975_v48 = vpop.f32.mrf.mxu1  ;;  %v813_v31 = vadd.f32 %v812_v39, %v780_v27  ;;  %v5504_v27 = vsub.f32 %v2042_v22, %v5489_v24 }
 0x127   : > { %v918_v47 = vpop.f32.mrf.mxu3 }
 0x128   : > { %v919_v58 = vadd.f32 %v918_v47, %v877_v46  ;;  %v838_v35 = vadd.f32 %v5474_v34, %v813_v31 }
 0x12d   : > { %v948_v43 = vpop.f32.mrf.mxu0  ;;  %v1008_v49 = vpop.f32.mrf.mxu2 }
 0x12e   : > { %v1114_v50 = vpop.f32.mrf.mxu1  ;;  %v949_v63 = vadd.f32 %v948_v43, %v919_v58  ;;  %v5487_v58 = vand.u32 4294901760, %v2043_v3 }
 0x12f   : > { %v1033_v44 = vpop.f32.mrf.mxu3 }
 0x130   : > { %v976_v11 = vadd.f32 %v975_v48, %v949_v63  ;;  %v2040_v63 = vld [vmem:[#allocation6 + $0x58] sm:$0xff] }
 0x131   : > { %v5493_v23 = vand.u32 4294901760, %v2040_v63 }
 0x132   : > { %v1009_v36 = vadd.f32 %v1008_v49, %v976_v11 }
 0x134   : > { %v1034_v48 = vadd.f32 %v1033_v44, %v1009_v36 }
 0x135   : > { %v1073_v51 = vpop.f32.mrf.mxu0  ;;  %v1144_v52 = vpop.f32.mrf.mxu2 }
 0x136   : > { %v5476_v55 = vpop.f32.mrf.mxu1  ;;  %v1115_v2 = vadd.f32 %v1114_v50, %v1073_v51 }
 0x137   : > { %v1171_v54 = vpop.f32.mrf.mxu3 }
 0x138   : > { %v1145_v10 = vadd.f32 %v1144_v52, %v1115_v2  ;;  %v5491_v2 = vand.u32 4294901760, %v2041_v17 }
 0x13a   : > { %v1172_v37 = vadd.f32 %v1171_v54, %v1145_v10  ;;  %v2037_v10 = vld [vmem:[#allocation6 + $0x40] sm:$0xff] }
 0x13d   : > { %v1204_v53 = vpop.f32.mrf.mxu0  ;;  %v1268_v60 = vpop.f32.mrf.mxu2 }
 0x13e   : > { %v1366_v0 = vpop.f32.mrf.mxu1  ;;  %v1205_v47 = vadd.f32 %v1204_v53, %v1172_v37 }
 0x13f   : > { %v1309_v61 = vpop.f32.mrf.mxu3 }
 0x140   : > { %v1310_v4 = vadd.f32 %v1309_v61, %v1268_v60  ;;  %v840_v60 = vadd.f32 %v838_v35, %v644_v33  ;;  %v1230_v40 = vadd.f32 %v5476_v55, %v1205_v47  ;;  %v4668_v55 = vld [vmem:[%s6814_s3] ss:$0 sm:$0xff]  ;;  %v2035_v33 = vld [vmem:[#allocation6 + $0x38] sm:$0xff] }
 0x142   : > { %v1036_v21 = vadd.f32 %v1034_v48, %v840_v60  ;;  %v2034_v48 = vld [vmem:[#allocation6 + $0x30] sm:$0xff] }
 0x144   : > { %v1232_v34 = vadd.f32 %v1230_v40, %v1036_v21 }
 0x146   : > { %v1399_v62 = vpop.f32.mrf.mxu2 }
 0x147   : > { %v1339_v56 = vpop.f32.mrf.mxu0 }
 0x148   : > { %v1504_v15 = vpop.f32.mrf.mxu1  ;;  %v1340_v14 = vadd.f32 %v1339_v56, %v1310_v4 }
 0x149   : > { %v1424_v9 = vpop.f32.mrf.mxu3 }
 0x14a   : > { %v1367_v41 = vadd.f32 %v1366_v0, %v1340_v14  ;;  %v5509_v14 = vsub.f32 %v2041_v17, %v5491_v2 }
 0x14c   : > { %v1400_v43 = vadd.f32 %v1399_v62, %v1367_v41  ;;  %v2112_v36 = vand.u32 4294901760, %v5509_v14  ;;  %v5526_v41 = vand.u32 4294901760, %v2037_v10 }
 0x14e   : > { %v1425_v0 = vadd.f32 %v1424_v9, %v1400_v43  ;;  %v2033_v43 = vld [vmem:[#allocation6 + $0x28] sm:$0xff]  ;;  %v5552_v40 = vsub.f32 %v2037_v10, %v5526_v41 }
 0x150   : > { %v1534_v16 = vpop.f32.mrf.mxu2  ;;  %v1427_v38 = vadd.f32 %v1425_v0, %v1232_v34 }
 0x151   : > { %v1463_v8 = vpop.f32.mrf.mxu0 }
 0x152   : > { %v1619_v19 = vpop.f32.mrf.mxu1  ;;  %v1505_v20 = vadd.f32 %v1504_v15, %v1463_v8 }
 0x153   : > { %v1561_v13 = vpop.f32.mrf.mxu3 }
 0x154   : > { %v1535_v45 = vadd.f32 %v1534_v16, %v1505_v20  ;;  %v5512_v20 = vsub.f32 %v2040_v63, %v5493_v23 }
 0x156   : > { %v1562_v50 = vadd.f32 %v1561_v13, %v1535_v45  ;;  %v2118_v35 = vand.u32 4294901760, %v5512_v20 }
 0x158   : > { %v2119_v0 = vsub.f32 %v5512_v20, %v2118_v35 }
 0x15a   : > { %v1658_v12 = vpop.f32.mrf.mxu2 }
 0x15b   : > { %v1594_v7 = vpop.f32.mrf.mxu0 }
 0x15c   : > { %v1756_v26 = vpop.f32.mrf.mxu1  ;;  %v1595_v49 = vadd.f32 %v1594_v7, %v1562_v50 }
 0x15d   : > { %v1699_v25 = vpop.f32.mrf.mxu3 }
 0x15e   : > { %v1700_v30 = vadd.f32 %v1699_v25, %v1658_v12  ;;  %v1620_v53 = vadd.f32 %v1619_v19, %v1595_v49  ;;  %v2044_v19 = vld [vmem:[#allocation6 + $0x78] sm:$0xff]  ;;  %v2039_v25 = vld [vmem:[#allocation6 + $0x50] sm:$0xff]  ;;  %v5555_v49 = vand.u32 4294901760, %v2035_v33 }
 0x15f   : > { %v5485_v12 = vand.u32 4294901760, %v2044_v19  ;;  %v5495_v4 = vand.u32 4294901760, %v2039_v25 }
 0x160   : > { %v1622_v15 = vadd.f32 %v1620_v53, %v1427_v38  ;;  %v5571_v34 = vsub.f32 %v2035_v33, %v5555_v49  ;;  %v2031_v33 = vld [vmem:[#allocation6 + $0x18] sm:$0xff] }
 0x161   : > { %v5498_v11 = vsub.f32 %v2044_v19, %v5485_v12  ;;  %2192 = vmatpush.msra.mxu1 %v5485_v12  ;;  %2060 = vmatpush.msrb.mxu2 %v5485_v12  ;;  %v5524_v37 = vsub.f32 %v2039_v25, %v5495_v4 }
 0x163   : > { %2155 = vmatpush.msra.mxu0 %v5498_v11  ;;  %2194 = vmatpush.msra.mxu1 %v5487_v58  ;;  %v2124_v60 = vand.u32 4294901760, %v5524_v37 }
 0x164   : > { %v1789_v29 = vpop.f32.mrf.mxu2  ;;  %2062 = vmatpush.msrb.mxu2 %v5487_v58 }
 0x165   : > { %v1729_v32 = vpop.f32.mrf.mxu0  ;;  %2196 = vmatpush.msra.mxu1 %v5489_v24 }
 0x166   : > { %v1730_v42 = vadd.f32 %v1729_v32, %v1700_v30  ;;  %v1894_v52 = vpop.f32.mrf.mxu1  ;;  %v5514_v32 = vand.u32 4294901760, %v2038_v1  ;;  %v2106_v30 = vand.u32 4294901760, %v5504_v27  ;;  %2064 = vmatpush.msrb.mxu2 %v5489_v24 }
 0x167   : > { %v1814_v46 = vpop.f32.mrf.mxu3  ;;  %2198 = vmatpush.msra.mxu1 %v5491_v2 }
 0x168   : > { %v1757_v51 = vadd.f32 %v1756_v26, %v1730_v42  ;;  %v5501_v26 = vsub.f32 %v2043_v3, %v5487_v58  ;;  %v5542_v47 = vsub.f32 %v2038_v1, %v5514_v32  ;;  %2066 = vmatpush.msrb.mxu2 %v5491_v2 }
 0x169   : > { %2200 = vmatpush.msra.mxu1 %v5493_v23 }
 0x16a   : > { %v1790_v56 = vadd.f32 %v1789_v29, %v1757_v51  ;;  %v2094_v29 = vand.u32 4294901760, %v5498_v11  ;;  %v2100_v31 = vand.u32 4294901760, %v5501_v26  ;;  %2158 = vmatpush.msra.mxu0 %v5501_v26  ;;  %2068 = vmatpush.msrb.mxu2 %v5493_v23 }
 0x16b   : > { %2202 = vmatpush.msra.mxu1 %v5495_v4 }
 0x16c   : > { %v1815_v44 = vadd.f32 %v1814_v46, %v1790_v56  ;;  %v2095_v45 = vsub.f32 %v5498_v11, %v2094_v29  ;;  %v2101_v42 = vsub.f32 %v5501_v26, %v2100_v31  ;;  %v2107_v46 = vsub.f32 %v5504_v27, %v2106_v30  ;;  %2161 = vmatpush.msra.mxu0 %v5504_v27 }
 0x16d   : > { %v2130_v56 = vand.u32 4294901760, %v5542_v47  ;;  %2070 = vmatpush.msrb.mxu2 %v5495_v4  ;;  %2204 = vmatpush.msra.mxu1 %v5514_v32 }
 0x16e   : > { %v1853_v39 = vpop.f32.mrf.mxu0  ;;  %v1924_v61 = vpop.f32.mrf.mxu2  ;;  %v1817_v18 = vadd.f32 %v1815_v44, %v1622_v15  ;;  %v2096_v50 = vand.u32 4294901760, %v2095_v45  ;;  %v2102_v51 = vand.u32 4294901760, %v2101_v42  ;;  %2164 = vmatpush.msra.mxu0 %v5509_v14  ;;  %v2108_v21 = vand.u32 4294901760, %v2107_v46 }
 0x16f   : > { %v1895_v54 = vadd.f32 %v1894_v52, %v1853_v39  ;;  %v2009_v16 = vpop.f32.mrf.mxu1  ;;  %v2032_v52 = vld [vmem:[#allocation6 + $0x20] sm:$0xff]  ;;  %v2113_v39 = vsub.f32 %v5509_v14, %v2112_v36  ;;  %v2136_v15 = vand.u32 4294901760, %v5552_v40  ;;  %2072 = vmatpush.msrb.mxu2 %v5514_v32  ;;  %2206 = vmatpush.msra.mxu1 %v5526_v41 }
 0x170   : > { %v1951_v57 = vpop.f32.mrf.mxu3  ;;  %2097 = vmatpush.msrb.mxu3 %v2096_v50  ;;  %2167 = vmatpush.msra.mxu0 %v5512_v20  ;;  %v2028_v14 = vld [vmem:[#allocation6] sm:$0xff] }
 0x171   : > { %v1925_v5 = vadd.f32 %v1924_v61, %v1895_v54  ;;  %v5557_v54 = vand.u32 4294901760, %v2034_v48  ;;  %v5559_v61 = vand.u32 4294901760, %v2033_v43  ;;  %v2137_v3 = vsub.f32 %v5552_v40, %v2136_v15  ;;  %2074 = vmatpush.msrb.mxu2 %v5526_v41 }
 0x172   : > { %2103 = vmatpush.msrb.mxu3 %v2102_v51  ;;  %2170 = vmatpush.msra.mxu0 %v5524_v37  ;;  %v5679_v20 = vand.u32 4294901760, %v2028_v14 }
 0x173   : > { %v1952_v62 = vadd.f32 %v1951_v57, %v1925_v5  ;;  %v5567_v5 = vand.u32 4294901760, %v2032_v52  ;;  %v5574_v53 = vsub.f32 %v2034_v48, %v5557_v54  ;;  %v5577_v57 = vsub.f32 %v2033_v43, %v5559_v61  ;;  %2225 = vmatpush.msra.mxu2 %v2094_v29 }
 0x174   : > { %2109 = vmatpush.msrb.mxu3 %v2108_v21  ;;  %2173 = vmatpush.msra.mxu0 %v5542_v47  ;;  %v2138_v45 = vand.u32 4294901760, %v2137_v3  ;;  %v5640_v48 = vand.u32 4294901760, %v2031_v33 }
 0x175   : > { %2229 = vmatpush.msra.mxu2 %v2100_v31 }
 0x176   : > { %v1984_v59 = vpop.f32.mrf.mxu0  ;;  %2176 = vmatpush.msra.mxu0 %v5552_v40 }
 0x177   : > { %v1985_v8 = vadd.f32 %v1984_v59, %v1952_v62  ;;  %v2114_v62 = vand.u32 4294901760, %v2113_v39  ;;  %v2125_v59 = vsub.f32 %v5524_v37, %v2124_v60  ;;  %2233 = vmatpush.msra.mxu2 %v2106_v30  ;;  %v2535_v39 = vld [vmem:[#allocation6 + $0xb8] sm:$0xff] }
 0x178   : > { %2299 = vmatpush.msrb.mxu0 %v5555_v49 }
 0x179   : > { %v2010_v13 = vadd.f32 %v2009_v16, %v1985_v8  ;;  %v5590_v8 = vsub.f32 %v2032_v52, %v5567_v5  ;;  %v2333_v16 = vand.u32 4294901760, %v5571_v34  ;;  %2115 = vmatpush.msrb.mxu3 %v2114_v62  ;;  %v2126_v19 = vand.u32 4294901760, %v2125_v59  ;;  %2237 = vmatpush.msra.mxu2 %v2112_v36  ;;  %v2534_v62 = vld [vmem:[#allocation6 + $0xb0] sm:$0xff] }
 0x17a   : > { %2301 = vmatpush.msrb.mxu0 %v5557_v54  ;;  %v5690_v36 = vsub.f32 %v2028_v14, %v5679_v20 }
 0x17b   : > { %v2012_v6 = vadd.f32 %v2010_v13, %v1817_v18  ;;  %v2120_v18 = vand.u32 4294901760, %v2119_v0  ;;  %v2131_v13 = vsub.f32 %v5542_v47, %v2130_v56  ;;  %2241 = vmatpush.msra.mxu2 %v2118_v35 }
 0x17c   : > { %2303 = vmatpush.msrb.mxu0 %v5559_v61  ;;  %v2375_v35 = vand.u32 4294901760, %v5690_v36 }
 0x17d   : > { %v2015_v9 = vadd.f32 %v4668_v55, %v2012_v6  ;;  %v2339_v55 = vand.u32 4294901760, %v5574_v53  ;;  %v2334_v6 = vsub.f32 %v5571_v34, %v2333_v16  ;;  %2121 = vmatpush.msrb.mxu3 %v2120_v18  ;;  %v2132_v25 = vand.u32 4294901760, %v2131_v13  ;;  %2245 = vmatpush.msra.mxu2 %v2124_v60  ;;  %v2533_v18 = vld [vmem:[#allocation6 + $0xa8] sm:$0xff] }
 0x17e   : > { %2305 = vmatpush.msrb.mxu0 %v5567_v5  ;;  %v2376_v43 = vsub.f32 %v5690_v36, %v2375_v35 }
 0x17f   : > { %v2016_v7 = vmax.f32 %v2015_v9, 0.0  ;;  %v2345_v9 = vand.u32 4294901760, %v5577_v57  ;;  %v2335_v22 = vand.u32 4294901760, %v2334_v6  ;;  %v2340_v17 = vsub.f32 %v5574_v53, %v2339_v55  ;;  %2127 = vmatpush.msrb.mxu3 %v2126_v19  ;;  %2249 = vmatpush.msra.mxu2 %v2130_v56  ;;  %v2532_v19 = vld [vmem:[#allocation6 + $0xa0] sm:$0xff] }
 0x180   : > { %2307 = vmatpush.msrb.mxu0 %v5640_v48  ;;  %v2377_v50 = vand.u32 4294901760, %v2376_v43  ;;  %v5709_v56 = vand.u32 4294901760, %v2535_v39 }
 0x181   : > { %2022 = vrot.lane.b32.xlu1 %v2016_v7, %s4809_s10  ;;  %v2351_v7 = vand.u32 4294901760, %v5590_v8  ;;  %v2346_v63 = vsub.f32 %v5577_v57, %v2345_v9  ;;  %2336 = vmatpush.msrb.mxu1 %v2335_v22  ;;  %v2341_v10 = vand.u32 4294901760, %v2340_v17  ;;  %v5723_v22 = vand.u32 4294901760, %v2533_v18 }
 0x182   : > { %2133 = vmatpush.msrb.mxu3 %v2132_v25  ;;  %2253 = vmatpush.msra.mxu2 %v2136_v15  ;;  %v5715_v15 = vand.u32 4294901760, %v2534_v62  ;;  %v5718_v6 = vsub.f32 %v2535_v39, %v5709_v56  ;;  %v2531_v25 = vld [vmem:[#allocation6 + $0x98] sm:$0xff]  ;;  %v2785_v39 = vld [vmem:[#allocation6 + $0xe8] sm:$0xff] }
 0x183   : > { %v2352_v1 = vsub.f32 %v5590_v8, %v2351_v7  ;;  %v2347_v42 = vand.u32 4294901760, %v2346_v63  ;;  %2342 = vmatpush.msrb.mxu1 %v2341_v10  ;;  %v5736_v10 = vand.u32 4294901760, %v2532_v19 }
 0x184   : > { %2139 = vmatpush.msrb.mxu3 %v2138_v45  ;;  %v5732_v63 = vsub.f32 %v2534_v62, %v5715_v15  ;;  %v2530_v45 = vld [vmem:[#allocation6 + $0x90] sm:$0xff]  ;;  %v2784_v62 = vld [vmem:[#allocation6 + $0xe0] sm:$0xff] }
 0x185   : > { %v2353_v46 = vand.u32 4294901760, %v2352_v1  ;;  %2348 = vmatpush.msrb.mxu1 %v2347_v42 }
 0x186   : > { %2268 = vmatpush.msra.mxu3 %v5485_v12  ;;  %v2030_v12 = vld [vmem:[#allocation6 + $0x10] sm:$0xff]  ;;  %v2589_v42 = vand.u32 4294901760, %v5732_v63 }
 0x187   : > { %2354 = vmatpush.msrb.mxu1 %v2353_v46  ;;  %v2529_v46 = vld [vmem:[#allocation6 + $0x88] sm:$0xff] }
 0x188   : > { %2270 = vmatpush.msra.mxu3 %v5487_v58  ;;  %v5662_v58 = vand.u32 4294901760, %v2030_v12 }
 0x18a   : > { %2272 = vmatpush.msra.mxu3 %v5489_v24  ;;  %v5665_v24 = vsub.f32 %v2031_v33, %v5640_v48  ;;  %2309 = vmatpush.msrb.mxu0 %v5662_v58  ;;  %v5672_v11 = vsub.f32 %v2030_v12, %v5662_v58  ;;  %v2528_v12 = vld [vmem:[#allocation6 + $0x80] sm:$0xff] }
 0x18c   : > { %2274 = vmatpush.msra.mxu3 %v5491_v2  ;;  %v2029_v2 = vld [vmem:[#allocation6 + $0x8] sm:$0xff]  ;;  %v2363_v27 = vand.u32 4294901760, %v5672_v11 }
 0x18e   : > { %2276 = vmatpush.msra.mxu3 %v5493_v23  ;;  %v2357_v23 = vand.u32 4294901760, %v5665_v24  ;;  %v2364_v31 = vsub.f32 %v5672_v11, %v2363_v27 }
 0x190   : > { %2278 = vmatpush.msra.mxu3 %v5495_v4  ;;  %v5669_v4 = vand.u32 4294901760, %v2029_v2  ;;  %v2358_v26 = vsub.f32 %v5665_v24, %v2357_v23  ;;  %v2365_v37 = vand.u32 4294901760, %v2364_v31 }
 0x192   : > { %2280 = vmatpush.msra.mxu3 %v5514_v32  ;;  %2311 = vmatpush.msrb.mxu0 %v5669_v4  ;;  %v5682_v32 = vsub.f32 %v2029_v2, %v5669_v4  ;;  %v2359_v29 = vand.u32 4294901760, %v2358_v26  ;;  %v5774_v2 = vand.u32 4294901760, %v2529_v46 }
 0x194   : > { %2282 = vmatpush.msra.mxu3 %v5526_v41  ;;  %2313 = vmatpush.msrb.mxu0 %v5679_v20  ;;  %v2369_v30 = vand.u32 4294901760, %v5682_v32 }
 0x195   : > { %2360 = vmatpush.msrb.mxu1 %v2359_v29 }
 0x196   : > { %v2370_v41 = vsub.f32 %v5682_v32, %v2369_v30 }
 0x197   : > { %2366 = vmatpush.msrb.mxu1 %v2365_v37  ;;  %v2787_v37 = vld [vmem:[#allocation6 + $0xf8] sm:$0xff] }
 0x198   : > { %v2371_v47 = vand.u32 4294901760, %v2370_v41 }
 0x19a   : > { %2372 = vmatpush.msrb.mxu1 %v2371_v47 }
 0x19c   : > { %2378 = vmatpush.msrb.mxu1 %v2377_v50  ;;  %v5826_v50 = vand.u32 4294901760, %v2787_v37 }
 0x1f3   : > { %v2023_v28 = vpop.permute.xlu1 %2022 }
 0x1f4   : > { %2026 = vst.msk [vmem:[#allocation2 + $0x1] sm:$0xff] %vm2025_vm3, %v2023_v28 }
 0x1fb   : > { %v5579_v38 = vld [vmem:[#allocation2 + $0x1] sm:$0xff] }
 0x1fc   : > { %v5581_v44 = vld [vmem:[#allocation2] sm:$0xff]  ;;  %3289 = vrot.lane.b32.xlu1 %v5579_v38, %s4810_s11  ;;  %3038 = vrot.lane.b32.xlu0 %v5579_v38, %s4811_s12 }
 0x1fd   : > { %2046 = vrot.lane.b32.xlu2 %v5581_v44, %s4811_s12  ;;  %v3531_v28 = vld [vmem:[#allocation2 + $0x2] sm:$0xff]  ;;  %v2288_v51 = vsel %vm2048_vm4, %v5581_v44, 0 }
 0x1fe   : > { %v5701_v52 = vand.u32 4294901760, %v2288_v51 }
 0x200   : > { %v5704_v40 = vsub.f32 %v2288_v51, %v5701_v52 }
 0x204   : > { %4042 = vrot.lane.b32.xlu0 %v3531_v28, %s4810_s11 }
 0x205   : > { %2536 = vrot.lane.b32.xlu2 %v5581_v44, %s4810_s11  ;;  %v2316_v44 = vand.u32 4294901760, %v5704_v40 }
 0x207   : > { %v2317_v17 = vsub.f32 %v5704_v40, %v2316_v44 }
 0x20d   : > { %3791 = vrot.lane.b32.xlu2 %v3531_v28, %s4811_s12  ;;  %v5745_v28 = vand.u32 4294901760, %v2531_v25  ;;  %s4494_s12 = scalar_lea.hbm %s6816_s5, %s4597_s7 }
 0x20e   : > { %s4498_s15 = sshll.u32 %s4494_s12, 4  ;;  %s4499_s15 = int_to_ptr.hbm [resolvable:$true] %s4498_s15 }
 0x20f   : > { %s4745_s16 = sshra.s32 %s4499_s15, 4  ;;  %s4746_s16 = int_to_ptr.hbm [resolvable:$true] %s4745_s16 }
 0x210   : > { %s4747_s17 = scalar_lea.hbm %s4746_s16, 8  ;;  %p4752_p3 = scmp.lt.s32.totalorder %s4746_s16, %s6816_s5 }
 0x211   : > { %p4748_p0 = scmp.ne.s32.totalorder %s4746_s16, %s4747_s17  ;;  %p4753_p4 = scmp.lt.s32.totalorder %s4751_s26, %s4747_s17 }
 0x213   : > { %p4749_p1 = pnand %p4748_p0, %p4880_p5  ;;  %p4754_p7 = por %p4753_p4, %p4752_p3 }
 0x215   : > { %p4750_p2 = pneg %p4749_p1 }
 0x217   : > { %p4755_p8 = pnand %p4754_p7, %p4750_p2 }
 0x257   : > { %v2047_v60 = vpop.permute.xlu2 %2046 }
 0x258   : > { %v2049_v21 = vsel %vm2048_vm4, %v2047_v60, 0 }
 0x259   : > { %v5707_v0 = vand.u32 4294901760, %v2049_v21 }
 0x25b   : > { %v2076_v59 = vsub.f32 %v2049_v21, %v5707_v0  ;;  %2141 = vmatmul.f32.vlgmr.msrb.gmra.mxu3 %v5707_v0 }
 0x25c   : > { %2431 = vmatpush.msrb.mxu3 %v5555_v49 }
 0x25d   : > { %v2077_v13 = vand.u32 4294901760, %v2076_v59  ;;  %2179 = vmatmul.f32.vlgmr.msra.gmra.mxu0 %v2076_v59 }
 0x25e   : > { %2433 = vmatpush.msrb.mxu3 %v5557_v54  ;;  %2464 = vmatpush.msra.mxu0 %v2333_v16  ;;  %v2583_v16 = vand.u32 4294901760, %v5718_v6 }
 0x25f   : > { %v2078_v3 = vsub.f32 %v2076_v59, %v2077_v13  ;;  %2210 = vmatmul.f32.vlgmr.msra.gmra.mxu1 %v2077_v13  ;;  %v2537_v43 = vpop.permute.xlu2 %2536  ;;  %v5847_v59 = vand.u32 4294901760, %v2785_v39  ;;  %v2783_v13 = vld [vmem:[#allocation6 + $0xd8] sm:$0xff] }
 0x260   : > { %2435 = vmatpush.msrb.mxu3 %v5559_v61  ;;  %2468 = vmatpush.msra.mxu0 %v2339_v55  ;;  %v5743_v55 = vsub.f32 %v2533_v18, %v5723_v22  ;;  %v2538_v60 = vsel %vm2048_vm4, %v2537_v43, 0 }
 0x261   : > { %v2079_v1 = vand.u32 4294901760, %v2078_v3  ;;  %2507 = vmatpush.msra.mxu1 %v5555_v49  ;;  %v2318_v49 = vand.u32 4294901760, %v2317_v17  ;;  %v2782_v17 = vld [vmem:[#allocation6 + $0xd0] sm:$0xff] }
 0x262   : > { %2437 = vmatpush.msrb.mxu3 %v5567_v5  ;;  %2472 = vmatpush.msra.mxu0 %v2345_v9  ;;  %v5757_v9 = vsub.f32 %v2532_v19, %v5736_v10  ;;  %v2595_v33 = vand.u32 4294901760, %v5743_v55  ;;  %v5858_v19 = vand.u32 4294901760, %v2784_v62 }
 0x263   : > { %2509 = vmatpush.msra.mxu1 %v5557_v54  ;;  %2080 = vmatmul.f32.vlgmr.msrb.gmra.mxu2 %v2079_v1  ;;  %v2584_v54 = vsub.f32 %v5718_v6, %v2583_v16  ;;  %v5867_v1 = vand.u32 4294901760, %v2783_v13 }
 0x264   : > { %2284 = vmatmul.f32.vlgmr.msra.gmra.mxu3 %v5707_v0  ;;  %2394 = vmatpush.msrb.mxu2 %v5571_v34  ;;  %v5760_v34 = vand.u32 4294901760, %v2530_v45  ;;  %v2601_v26 = vand.u32 4294901760, %v5757_v9 }
 0x265   : > { %2439 = vmatpush.msrb.mxu3 %v5640_v48  ;;  %2476 = vmatpush.msra.mxu0 %v2351_v7  ;;  %v5766_v7 = vsub.f32 %v2531_v25, %v5745_v28  ;;  %v5865_v25 = vsub.f32 %v2785_v39, %v5847_v59 }
 0x266   : > { %2511 = vmatpush.msra.mxu1 %v5559_v61  ;;  %2319 = vmatmul.f32.vlgmr.msrb.gmra.mxu0 %v2318_v49  ;;  %v2590_v61 = vsub.f32 %v5732_v63, %v2589_v42  ;;  %v5875_v49 = vsub.f32 %v2784_v62, %v5858_v19 }
 0x267   : > { %2397 = vmatpush.msrb.mxu2 %v5574_v53  ;;  %2441 = vmatpush.msrb.mxu3 %v5662_v58  ;;  %v2585_v53 = vand.u32 4294901760, %v2584_v54  ;;  %v2607_v14 = vand.u32 4294901760, %v5766_v7  ;;  %v5877_v54 = vand.u32 4294901760, %v2782_v17 }
 0x268   : > { %2480 = vmatpush.msra.mxu0 %v2357_v23  ;;  %2513 = vmatpush.msra.mxu1 %v5567_v5  ;;  %v5783_v5 = vsub.f32 %v2530_v45, %v5760_v34  ;;  %v5785_v23 = vand.u32 4294901760, %v2528_v12 }
 0x269   : > { %2400 = vmatpush.msrb.mxu2 %v5577_v57  ;;  %2443 = vmatpush.msrb.mxu3 %v5669_v4  ;;  %v2596_v57 = vsub.f32 %v5743_v55, %v2595_v33 }
 0x26a   : > { %2484 = vmatpush.msra.mxu0 %v2363_v27  ;;  %2515 = vmatpush.msra.mxu1 %v5640_v48  ;;  %v2591_v48 = vand.u32 4294901760, %v2590_v61  ;;  %v5797_v27 = vsub.f32 %v2529_v46, %v5774_v2  ;;  %v2613_v29 = vand.u32 4294901760, %v5783_v5  ;;  %v5808_v31 = vsub.f32 %v2528_v12, %v5785_v23  ;;  %v2781_v46 = vld [vmem:[#allocation6 + $0xc8] sm:$0xff] }
 0x26b   : > { %2380 = vmatmul.f32.vlgmr.msrb.gmra.mxu1 %v5701_v52  ;;  %2403 = vmatpush.msrb.mxu2 %v5590_v8  ;;  %v2602_v8 = vsub.f32 %v5757_v9, %v2601_v26  ;;  %v2789_v61 = vsel %vm2048_vm4, %v5579_v38, 0  ;;  %v5896_v38 = vand.u32 4294901760, %v2781_v46 }
 0x26c   : > { %2445 = vmatpush.msrb.mxu3 %v5679_v20  ;;  %2488 = vmatpush.msra.mxu0 %v2369_v30  ;;  %v2608_v30 = vsub.f32 %v5766_v7, %v2607_v14  ;;  %v2619_v41 = vand.u32 4294901760, %v5797_v27 }
 0x26d   : > { %2517 = vmatpush.msra.mxu1 %v5662_v58  ;;  %2255 = vmatmul.f32.vlgmr.msra.gmra.mxu2 %v5707_v0  ;;  %v2597_v58 = vand.u32 4294901760, %v2596_v57  ;;  %v2603_v47 = vand.u32 4294901760, %v2602_v8  ;;  %v5844_v0 = vsub.f32 %v2787_v37, %v5826_v50  ;;  %v5889_v57 = vsub.f32 %v2783_v13, %v5867_v1 }
 0x26e   : > { %2586 = vmatpush.msra.mxu3 %v2585_v53  ;;  %2406 = vmatpush.msrb.mxu2 %v5665_v24  ;;  %v2786_v24 = vld [vmem:[#allocation6 + $0xf0] sm:$0xff]  ;;  %v2609_v51 = vand.u32 4294901760, %v2608_v30  ;;  %v2846_v53 = vand.u32 4294901760, %v5865_v25  ;;  %v2852_v30 = vand.u32 4294901760, %v5875_v49  ;;  %v5902_v37 = vsub.f32 %v2782_v17, %v5877_v54 }
 0x26f   : > { %2449 = vmatmul.f32.vlgmr.msrb.gmra.mxu3 %v2316_v44  ;;  %2492 = vmatpush.msra.mxu0 %v2375_v35  ;;  %v2614_v35 = vsub.f32 %v5783_v5, %v2613_v29  ;;  %v2834_v3 = vand.u32 4294901760, %v5844_v0  ;;  %v5918_v39 = vsub.f32 %v2781_v46, %v5896_v38 }
 0x270   : > { %2519 = vmatpush.msra.mxu1 %v5669_v4  ;;  %2592 = vmatpush.msra.mxu3 %v2591_v48  ;;  %v2625_v4 = vand.u32 4294901760, %v5808_v31  ;;  %v2780_v48 = vld [vmem:[#allocation6 + $0xc0] sm:$0xff] }
 0x271   : > { %2644 = vmatpush.msrb.mxu0 %v5718_v6  ;;  %2409 = vmatpush.msrb.mxu2 %v5672_v11  ;;  %v2620_v11 = vsub.f32 %v5797_v27, %v2619_v41  ;;  %v2615_v21 = vand.u32 4294901760, %v2614_v35  ;;  %v2835_v12 = vsub.f32 %v5844_v0, %v2834_v3  ;;  %v5907_v43 = vand.u32 4294901760, %v2780_v48 }
 0x272   : > { %2494 = vmatmul.f32.vlgmr.msra.gmra.mxu0 %v5701_v52  ;;  %2521 = vmatpush.msra.mxu1 %v5679_v20  ;;  %v5834_v20 = vand.u32 4294901760, %v2786_v24  ;;  %v2858_v35 = vand.u32 4294901760, %v5889_v57  ;;  %v2870_v13 = vand.u32 4294901760, %v5918_v39 }
 0x273   : > { %2598 = vmatpush.msra.mxu3 %v2597_v58  ;;  %2647 = vmatpush.msrb.mxu0 %v5732_v63  ;;  %v2621_v44 = vand.u32 4294901760, %v2620_v11 }
 0x274   : > { %2681 = vmatpush.msrb.mxu1 %v5709_v56  ;;  %2412 = vmatpush.msrb.mxu2 %v5682_v32  ;;  %v2626_v32 = vsub.f32 %v5808_v31, %v2625_v4  ;;  %v5854_v18 = vsub.f32 %v2786_v24, %v5834_v20  ;;  %v2836_v24 = vand.u32 4294901760, %v2835_v12  ;;  %v2859_v62 = vsub.f32 %v5889_v57, %v2858_v35 }
 0x275   : > { %2523 = vmatmul.f32.vlgmr.msra.gmra.mxu1 %v5701_v52  ;;  %2604 = vmatpush.msra.mxu3 %v2603_v47  ;;  %v5849_v52 = vand.u32 4294901760, %v2538_v60  ;;  %v5904_v47 = vand.u32 4294901760, %v2789_v61 }
 0x276   : > { %2650 = vmatpush.msrb.mxu0 %v5743_v55  ;;  %2683 = vmatpush.msrb.mxu1 %v5715_v15  ;;  %v2840_v45 = vand.u32 4294901760, %v5854_v18  ;;  %v2860_v46 = vand.u32 4294901760, %v2859_v62  ;;  %v3287_v62 = vld [vmem:[#allocation6 + $0x170] sm:$0xff] }
 0x277   : > { %2415 = vmatpush.msrb.mxu2 %v5690_v36  ;;  %2610 = vmatpush.msra.mxu3 %v2609_v51  ;;  %v2627_v36 = vand.u32 4294901760, %v2626_v32  ;;  %v5930_v32 = vsub.f32 %v2780_v48, %v5907_v43 }
 0x278   : > { %2653 = vmatpush.msrb.mxu0 %v5757_v9  ;;  %2685 = vmatpush.msrb.mxu1 %v5723_v22  ;;  %v2841_v58 = vsub.f32 %v5854_v18, %v2840_v45  ;;  %v3034_v9 = vld [vmem:[#allocation6 + $0x120] sm:$0xff] }
 0x279   : > { %2549 = vmatpush.msra.mxu2 %v5709_v56  ;;  %2616 = vmatpush.msra.mxu3 %v2615_v21  ;;  %v5926_v21 = vsub.f32 %v2789_v61, %v5904_v47 }
 0x27a   : > { %2418 = vmatmul.f32.vlgmr.msrb.gmra.mxu2 %v5704_v40  ;;  %2656 = vmatpush.msrb.mxu0 %v5766_v7  ;;  %v2565_v40 = vsub.f32 %v2538_v60, %v5849_v52  ;;  %v2842_v11 = vand.u32 4294901760, %v2841_v58  ;;  %v2864_v60 = vand.u32 4294901760, %v5902_v37  ;;  %v3033_v7 = vld [vmem:[#allocation6 + $0x118] sm:$0xff]  ;;  %v3032_v58 = vld [vmem:[#allocation6 + $0x110] sm:$0xff] }
 0x27b   : > { %2551 = vmatpush.msra.mxu2 %v5715_v15  ;;  %2687 = vmatpush.msrb.mxu1 %v5736_v10  ;;  %v2817_v17 = vand.u32 4294901760, %v5926_v21 }
 0x27c   : > { %2622 = vmatpush.msra.mxu3 %v2621_v44  ;;  %2659 = vmatpush.msrb.mxu0 %v5783_v5  ;;  %v2566_v8 = vand.u32 4294901760, %v2565_v40 }
 0x27d   : > { %2553 = vmatpush.msra.mxu2 %v5723_v22  ;;  %2689 = vmatpush.msrb.mxu1 %v5745_v28  ;;  %v2818_v6 = vsub.f32 %v5926_v21, %v2817_v17 }
 0x27e   : > { %2628 = vmatpush.msra.mxu3 %v2627_v36  ;;  %2662 = vmatpush.msrb.mxu0 %v5797_v27  ;;  %v2567_v51 = vsub.f32 %v2565_v40, %v2566_v8 }
 0x27f   : > { %2555 = vmatpush.msra.mxu2 %v5736_v10  ;;  %2691 = vmatpush.msrb.mxu1 %v5760_v34  ;;  %v2819_v61 = vand.u32 4294901760, %v2818_v6 }
 0x280   : > { %2630 = vmatmul.f32.vlgmr.msra.gmra.mxu3 %v5849_v52  ;;  %2665 = vmatpush.msrb.mxu0 %v5808_v31  ;;  %v2568_v44 = vand.u32 4294901760, %v2567_v51 }
 0x281   : > { %2557 = vmatpush.msra.mxu2 %v5745_v28  ;;  %2757 = vmatpush.msrb.mxu3 %v5709_v56  ;;  %v2847_v56 = vsub.f32 %v5865_v25, %v2846_v53 }
 0x282   : > { %2693 = vmatpush.msrb.mxu1 %v5774_v2  ;;  %2668 = vmatmul.f32.vlgmr.msrb.gmra.mxu0 %v2565_v40  ;;  %v2876_v40 = vand.u32 4294901760, %v5930_v32 }
 0x283   : > { %2759 = vmatpush.msrb.mxu3 %v5715_v15  ;;  %2800 = vmatpush.msra.mxu0 %v5826_v50  ;;  %v2853_v15 = vsub.f32 %v5875_v49, %v2852_v30 }
 0x284   : > { %2559 = vmatpush.msra.mxu2 %v5760_v34  ;;  %2695 = vmatpush.msrb.mxu1 %v5785_v23 }
 0x285   : > { %2699 = vmatmul.f32.vlgmr.msrb.gmra.mxu1 %v2566_v8  ;;  %2761 = vmatpush.msrb.mxu3 %v5723_v22  ;;  %v2848_v22 = vand.u32 4294901760, %v2847_v56  ;;  %v2854_v36 = vand.u32 4294901760, %v2853_v15  ;;  %v5994_v8 = vand.u32 4294901760, %v3034_v9  ;;  %v3288_v15 = vld [vmem:[#allocation6 + $0x178] sm:$0xff] }
 0x286   : > { %2802 = vmatpush.msra.mxu0 %v5834_v20  ;;  %2837 = vmatpush.msra.mxu1 %v2836_v24 }
 0x287   : > { %2561 = vmatpush.msra.mxu2 %v5774_v2  ;;  %2763 = vmatpush.msrb.mxu3 %v5736_v10  ;;  %v2865_v10 = vsub.f32 %v5902_v37, %v2864_v60 }
 0x288   : > { %2804 = vmatpush.msra.mxu0 %v5847_v59  ;;  %2843 = vmatpush.msra.mxu1 %v2842_v11 }
 0x289   : > { %2563 = vmatpush.msra.mxu2 %v5785_v23  ;;  %2765 = vmatpush.msrb.mxu3 %v5745_v28  ;;  %v2871_v28 = vsub.f32 %v5918_v39, %v2870_v13  ;;  %v2866_v12 = vand.u32 4294901760, %v2865_v10  ;;  %v3286_v10 = vld [vmem:[#allocation6 + $0x168] sm:$0xff] }
 0x28a   : > { %2569 = vmatmul.f32.vlgmr.msra.gmra.mxu2 %v2568_v44  ;;  %2806 = vmatpush.msra.mxu0 %v5858_v19  ;;  %v3039_v44 = vpop.permute.xlu0 %3038 }
 0x28b   : > { %2714 = vmatpush.msrb.mxu2 %v2583_v16  ;;  %2849 = vmatpush.msra.mxu1 %v2848_v22  ;;  %v2877_v16 = vsub.f32 %v5930_v32, %v2876_v40  ;;  %v2872_v63 = vand.u32 4294901760, %v2871_v28  ;;  %v3285_v28 = vld [vmem:[#allocation6 + $0x160] sm:$0xff] }
 0x28c   : > { %2767 = vmatpush.msrb.mxu3 %v5760_v34  ;;  %2808 = vmatpush.msra.mxu0 %v5867_v1  ;;  %v3037_v34 = vld [vmem:[#allocation6 + $0x138] sm:$0xff] }
 0x28d   : > { %2718 = vmatpush.msrb.mxu2 %v2589_v42  ;;  %2855 = vmatpush.msra.mxu1 %v2854_v36  ;;  %v3036_v42 = vld [vmem:[#allocation6 + $0x130] sm:$0xff]  ;;  %v2878_v55 = vand.u32 4294901760, %v2877_v16 }
 0x28e   : > { %2769 = vmatpush.msrb.mxu3 %v5774_v2  ;;  %2810 = vmatpush.msra.mxu0 %v5877_v54  ;;  %v5970_v2 = vand.u32 4294901760, %v3037_v34 }
 0x28f   : > { %2722 = vmatpush.msrb.mxu2 %v2595_v33  ;;  %2861 = vmatpush.msra.mxu1 %v2860_v46  ;;  %v3035_v33 = vld [vmem:[#allocation6 + $0x128] sm:$0xff] }
 0x290   : > { %2771 = vmatpush.msrb.mxu3 %v5785_v23  ;;  %2812 = vmatpush.msra.mxu0 %v5896_v38  ;;  %v5977_v23 = vand.u32 4294901760, %v3036_v42  ;;  %v5985_v48 = vand.u32 4294901760, %v3035_v33 }
 0x291   : > { %2726 = vmatpush.msrb.mxu2 %v2601_v26  ;;  %2867 = vmatpush.msra.mxu1 %v2866_v12  ;;  %v5983_v26 = vsub.f32 %v3037_v34, %v5970_v2  ;;  %v6111_v12 = vand.u32 4294901760, %v3286_v10  ;;  %v3284_v34 = vld [vmem:[#allocation6 + $0x158] sm:$0xff] }
 0x292   : > { %2773 = vmatmul.f32.vlgmr.msrb.gmra.mxu3 %v5849_v52  ;;  %2814 = vmatpush.msra.mxu0 %v5907_v43 }
 0x293   : > { %2932 = vmatpush.msra.mxu3 %v5826_v50  ;;  %2730 = vmatpush.msrb.mxu2 %v2607_v14  ;;  %v5992_v14 = vsub.f32 %v3036_v42, %v5977_v23  ;;  %v3085_v5 = vand.u32 4294901760, %v5983_v26 }
 0x294   : > { %2873 = vmatpush.msra.mxu1 %v2872_v63  ;;  %2820 = vmatmul.f32.vlgmr.msra.gmra.mxu0 %v2819_v61  ;;  %v6122_v63 = vand.u32 4294901760, %v3285_v28  ;;  %v6129_v61 = vsub.f32 %v3286_v10, %v6111_v12 }
 0x295   : > { %2934 = vmatpush.msra.mxu3 %v5834_v20  ;;  %2965 = vmatpush.msrb.mxu0 %v2834_v3  ;;  %v6006_v3 = vand.u32 4294901760, %v3033_v7  ;;  %v3091_v27 = vand.u32 4294901760, %v5992_v14  ;;  %v3086_v31 = vsub.f32 %v5983_v26, %v3085_v5 }
 0x296   : > { %2734 = vmatpush.msrb.mxu2 %v2613_v29  ;;  %2879 = vmatpush.msra.mxu1 %v2878_v55  ;;  %v6004_v29 = vsub.f32 %v3035_v33, %v5985_v48  ;;  %v6131_v55 = vand.u32 4294901760, %v3284_v34  ;;  %v3290_v33 = vpop.permute.xlu1 %3289 }
 0x297   : > { %2881 = vmatmul.f32.vlgmr.msra.gmra.mxu1 %v5904_v47  ;;  %2936 = vmatpush.msra.mxu3 %v5847_v59 }
 0x298   : > { %2969 = vmatpush.msrb.mxu0 %v2840_v45  ;;  %3008 = vmatpush.msrb.mxu1 %v5826_v50  ;;  %v3031_v50 = vld [vmem:[#allocation6 + $0x108] sm:$0xff]  ;;  %v6021_v45 = vand.u32 4294901760, %v3032_v58 }
 0x299   : > { %2738 = vmatpush.msrb.mxu2 %v2619_v41  ;;  %2938 = vmatpush.msra.mxu3 %v5858_v19  ;;  %v6016_v41 = vsub.f32 %v3034_v9, %v5994_v8 }
 0x29a   : > { %2973 = vmatpush.msrb.mxu0 %v2846_v53  ;;  %3010 = vmatpush.msrb.mxu1 %v5834_v20  ;;  %v6030_v20 = vsub.f32 %v3033_v7, %v6006_v3  ;;  %v3030_v53 = vld [vmem:[#allocation6 + $0x100] sm:$0xff] }
 0x29b   : > { %2742 = vmatpush.msrb.mxu2 %v2625_v4  ;;  %2940 = vmatpush.msra.mxu3 %v5867_v1  ;;  %v3097_v4 = vand.u32 4294901760, %v6004_v29  ;;  %v6049_v24 = vand.u32 4294901760, %v3030_v53 }
 0x29c   : > { %2744 = vmatmul.f32.vlgmr.msrb.gmra.mxu2 %v5849_v52  ;;  %2977 = vmatpush.msrb.mxu0 %v2852_v30  ;;  %v6035_v52 = vand.u32 4294901760, %v3031_v50  ;;  %v6047_v30 = vsub.f32 %v3032_v58, %v6021_v45  ;;  %v3109_v56 = vand.u32 4294901760, %v6030_v20  ;;  %v6139_v58 = vsub.f32 %v3285_v28, %v6122_v63 }
 0x29d   : > { %2895 = vmatpush.msra.mxu2 %v5844_v0  ;;  %3012 = vmatpush.msrb.mxu1 %v5847_v59  ;;  %v3092_v0 = vsub.f32 %v5992_v14, %v3091_v27  ;;  %v3103_v59 = vand.u32 4294901760, %v6016_v41  ;;  %v6074_v11 = vsub.f32 %v3030_v53, %v6049_v24 }
 0x29e   : > { %2942 = vmatpush.msra.mxu3 %v5877_v54  ;;  %2981 = vmatpush.msrb.mxu0 %v2858_v35  ;;  %v6061_v35 = vsub.f32 %v3031_v50, %v6035_v52  ;;  %v3115_v51 = vand.u32 4294901760, %v6047_v30 }
 0x29f   : > { %2898 = vmatpush.msra.mxu2 %v5854_v18  ;;  %3014 = vmatpush.msrb.mxu1 %v5858_v19  ;;  %v3087_v18 = vand.u32 4294901760, %v3086_v31  ;;  %v3098_v19 = vsub.f32 %v6004_v29, %v3097_v4  ;;  %v3282_v31 = vld [vmem:[#allocation6 + $0x148] sm:$0xff] }
 0x2a0   : > { %2944 = vmatpush.msra.mxu3 %v5896_v38  ;;  %2985 = vmatpush.msrb.mxu0 %v2864_v60  ;;  %v3121_v60 = vand.u32 4294901760, %v6061_v35 }
 0x2a1   : > { %2901 = vmatpush.msra.mxu2 %v5865_v25  ;;  %3016 = vmatpush.msrb.mxu1 %v5867_v1  ;;  %v3093_v25 = vand.u32 4294901760, %v3092_v0  ;;  %v3104_v1 = vsub.f32 %v6016_v41, %v3103_v59  ;;  %v3291_v0 = vsel %vm2048_vm4, %v3290_v33, 0 }
 0x2a2   : > { %2946 = vmatpush.msra.mxu3 %v5907_v43  ;;  %2989 = vmatpush.msrb.mxu0 %v2870_v13  ;;  %v6090_v13 = vand.u32 4294901760, %v3288_v15 }
 0x2a3   : > { %2904 = vmatpush.msra.mxu2 %v5875_v49  ;;  %3018 = vmatpush.msrb.mxu1 %v5877_v54  ;;  %v3099_v49 = vand.u32 4294901760, %v3098_v19  ;;  %v3110_v54 = vsub.f32 %v6030_v20, %v3109_v56  ;;  %v3105_v22 = vand.u32 4294901760, %v3104_v1  ;;  %v6152_v19 = vsub.f32 %v3284_v34, %v6131_v55 }
 0x2a4   : > { %2950 = vmatmul.f32.vlgmr.msra.gmra.mxu3 %v2817_v17  ;;  %2993 = vmatpush.msrb.mxu0 %v2876_v40  ;;  %v3040_v17 = vsel %vm2048_vm4, %v3039_v44, 0  ;;  %v6108_v46 = vsub.f32 %v3288_v15, %v6090_v13  ;;  %v3354_v15 = vand.u32 4294901760, %v6139_v58 }
 0x2a5   : > { %3088 = vmatpush.msrb.mxu3 %v3087_v18  ;;  %2907 = vmatpush.msra.mxu2 %v5889_v57  ;;  %v3116_v57 = vsub.f32 %v6047_v30, %v3115_v51  ;;  %v3111_v36 = vand.u32 4294901760, %v3110_v54  ;;  %v3348_v18 = vand.u32 4294901760, %v6129_v61  ;;  %v6159_v54 = vand.u32 4294901760, %v3282_v31 }
 0x2a6   : > { %3020 = vmatpush.msrb.mxu1 %v5896_v38  ;;  %2995 = vmatmul.f32.vlgmr.msrb.gmra.mxu0 %v5904_v47  ;;  %v3127_v38 = vand.u32 4294901760, %v6074_v11  ;;  %v3336_v42 = vand.u32 4294901760, %v6108_v46 }
 0x2a7   : > { %3094 = vmatpush.msrb.mxu3 %v3093_v25  ;;  %3146 = vmatpush.msra.mxu0 %v5983_v26  ;;  %v3281_v25 = vld [vmem:[#allocation6 + $0x140] sm:$0xff] }
 0x2a8   : > { %2910 = vmatpush.msra.mxu2 %v5902_v37  ;;  %3022 = vmatpush.msrb.mxu1 %v5907_v43  ;;  %v3122_v37 = vsub.f32 %v6061_v35, %v3121_v60  ;;  %v6098_v43 = vand.u32 4294901760, %v3287_v62  ;;  %v3128_v40 = vsub.f32 %v6074_v11, %v3127_v38  ;;  %v3337_v53 = vsub.f32 %v6108_v46, %v3336_v42 }
 0x2a9   : > { %3024 = vmatmul.f32.vlgmr.msrb.gmra.mxu1 %v5904_v47  ;;  %3100 = vmatpush.msrb.mxu3 %v3099_v49  ;;  %v3117_v47 = vand.u32 4294901760, %v3116_v57  ;;  %v6170_v57 = vand.u32 4294901760, %v3281_v25 }
 0x2aa   : > { %3149 = vmatpush.msra.mxu0 %v5992_v14  ;;  %3183 = vmatpush.msra.mxu1 %v5970_v2  ;;  %v3123_v6 = vand.u32 4294901760, %v3122_v37  ;;  %v6118_v16 = vsub.f32 %v3287_v62, %v6098_v43  ;;  %v6167_v62 = vand.u32 4294901760, %v3291_v0  ;;  %v3338_v44 = vand.u32 4294901760, %v3337_v53 }
 0x2ab   : > { %2913 = vmatpush.msra.mxu2 %v5918_v39  ;;  %3106 = vmatpush.msrb.mxu3 %v3105_v22  ;;  %v6113_v39 = vand.u32 4294901760, %v3040_v17  ;;  %v6193_v28 = vsub.f32 %v3281_v25, %v6170_v57 }
 0x2ac   : > { %3152 = vmatpush.msra.mxu0 %v6004_v29  ;;  %3185 = vmatpush.msra.mxu1 %v5977_v23  ;;  %v3342_v7 = vand.u32 4294901760, %v6118_v16 }
 0x2ad   : > { %2916 = vmatpush.msra.mxu2 %v5930_v32  ;;  %3112 = vmatpush.msrb.mxu3 %v3111_v36  ;;  %v3129_v32 = vand.u32 4294901760, %v3128_v40  ;;  %v3067_v9 = vsub.f32 %v3040_v17, %v6113_v39  ;;  %v3360_v36 = vand.u32 4294901760, %v6152_v19  ;;  %v6181_v17 = vsub.f32 %v3282_v31, %v6159_v54 }
 0x2ae   : > { %2919 = vmatmul.f32.vlgmr.msra.gmra.mxu2 %v5926_v21  ;;  %3155 = vmatpush.msra.mxu0 %v6016_v41  ;;  %v3283_v21 = vld [vmem:[#allocation6 + $0x150] sm:$0xff]  ;;  %v3343_v49 = vsub.f32 %v6118_v16, %v3342_v7  ;;  %v6189_v40 = vsub.f32 %v3291_v0, %v6167_v62  ;;  %v3537_v41 = vld [vmem:[#allocation6 + $0x1a0] sm:$0xff] }
 0x2af   : > { %3051 = vmatpush.msrb.mxu2 %v5970_v2  ;;  %3187 = vmatpush.msra.mxu1 %v5985_v48  ;;  %v6141_v50 = vand.u32 4294901760, %v3283_v21  ;;  %v3068_v1 = vand.u32 4294901760, %v3067_v9 }
 0x2b0   : > { %3118 = vmatpush.msrb.mxu3 %v3117_v47  ;;  %3158 = vmatpush.msra.mxu0 %v6030_v20  ;;  %v3344_v10 = vand.u32 4294901760, %v3343_v49  ;;  %v3319_v33 = vand.u32 4294901760, %v6189_v40  ;;  %v3536_v20 = vld [vmem:[#allocation6 + $0x198] sm:$0xff]  ;;  %v3535_v49 = vld [vmem:[#allocation6 + $0x190] sm:$0xff] }
 0x2b1   : > { %3053 = vmatpush.msrb.mxu2 %v5977_v23  ;;  %3189 = vmatpush.msra.mxu1 %v5994_v8  ;;  %v6165_v22 = vsub.f32 %v3283_v21, %v6141_v50  ;;  %v3069_v37 = vsub.f32 %v3067_v9, %v3068_v1 }
 0x2b2   : > { %3124 = vmatpush.msrb.mxu3 %v3123_v6  ;;  %3161 = vmatpush.msra.mxu0 %v6047_v30  ;;  %v3361_v6 = vsub.f32 %v6152_v19, %v3360_v36  ;;  %v3320_v26 = vsub.f32 %v6189_v40, %v3319_v33 }
 0x2b3   : > { %3055 = vmatpush.msrb.mxu2 %v5985_v48  ;;  %3191 = vmatpush.msra.mxu1 %v6006_v3  ;;  %v3366_v47 = vand.u32 4294901760, %v6165_v22  ;;  %v3070_v34 = vand.u32 4294901760, %v3069_v37 }
 0x2b4   : > { %3130 = vmatpush.msrb.mxu3 %v3129_v32  ;;  %3164 = vmatpush.msra.mxu0 %v6061_v35  ;;  %v3372_v32 = vand.u32 4294901760, %v6181_v17  ;;  %v3362_v31 = vand.u32 4294901760, %v3361_v6  ;;  %v3321_v0 = vand.u32 4294901760, %v3320_v26  ;;  %v3789_v6 = vld [vmem:[#allocation6 + $0x1f0] sm:$0xff] }
 0x2b5   : > { %3057 = vmatpush.msrb.mxu2 %v5994_v8  ;;  %3193 = vmatpush.msra.mxu1 %v6021_v45 }
 0x2b6   : > { %3132 = vmatmul.f32.vlgmr.msrb.gmra.mxu3 %v6113_v39  ;;  %3167 = vmatpush.msra.mxu0 %v6074_v11 }
 0x2b7   : > { %3259 = vmatpush.msra.mxu3 %v5970_v2  ;;  %3059 = vmatpush.msrb.mxu2 %v6006_v3  ;;  %v3349_v2 = vsub.f32 %v6129_v61, %v3348_v18 }
 0x2b8   : > { %3195 = vmatpush.msra.mxu1 %v6035_v52  ;;  %3170 = vmatmul.f32.vlgmr.msra.gmra.mxu0 %v3067_v9  ;;  %v3378_v9 = vand.u32 4294901760, %v6193_v28 }
 0x2b9   : > { %3261 = vmatpush.msra.mxu3 %v5977_v23  ;;  %3302 = vmatpush.msrb.mxu0 %v6090_v13  ;;  %v3355_v23 = vsub.f32 %v6139_v58, %v3354_v15 }
 0x2ba   : > { %3061 = vmatpush.msrb.mxu2 %v6021_v45  ;;  %3197 = vmatpush.msra.mxu1 %v6049_v24 }
 0x2bb   : > { %3201 = vmatmul.f32.vlgmr.msra.gmra.mxu1 %v3068_v1  ;;  %3263 = vmatpush.msra.mxu3 %v5985_v48  ;;  %v3350_v48 = vand.u32 4294901760, %v3349_v2  ;;  %v3356_v21 = vand.u32 4294901760, %v3355_v23  ;;  %v6257_v1 = vand.u32 4294901760, %v3537_v41  ;;  %v3790_v23 = vld [vmem:[#allocation6 + $0x1f8] sm:$0xff] }
 0x2bc   : > { %3304 = vmatpush.msrb.mxu0 %v6098_v43  ;;  %3339 = vmatpush.msrb.mxu1 %v3338_v44 }
 0x2bd   : > { %3063 = vmatpush.msrb.mxu2 %v6035_v52  ;;  %3265 = vmatpush.msra.mxu3 %v5994_v8  ;;  %v3367_v8 = vsub.f32 %v6165_v22, %v3366_v47 }
 0x2be   : > { %3306 = vmatpush.msrb.mxu0 %v6111_v12  ;;  %3345 = vmatpush.msrb.mxu1 %v3344_v10 }
 0x2bf   : > { %3065 = vmatpush.msrb.mxu2 %v6049_v24  ;;  %3267 = vmatpush.msra.mxu3 %v6006_v3  ;;  %v3373_v3 = vsub.f32 %v6181_v17, %v3372_v32  ;;  %v3368_v53 = vand.u32 4294901760, %v3367_v8  ;;  %v4670_v8 = vld [vmem:[#allocation2 + $0x2] sm:$0xff] }
 0x2c0   : > { %3071 = vmatmul.f32.vlgmr.msrb.gmra.mxu2 %v3070_v34  ;;  %3308 = vmatpush.msrb.mxu0 %v6122_v63 }
 0x2c1   : > { %3216 = vmatpush.msra.mxu2 %v3085_v5  ;;  %3351 = vmatpush.msrb.mxu1 %v3350_v48  ;;  %v3379_v5 = vsub.f32 %v6193_v28, %v3378_v9  ;;  %v3374_v14 = vand.u32 4294901760, %v3373_v3  ;;  %v3787_v3 = vld [vmem:[#allocation6 + $0x1e0] sm:$0xff] }
 0x2c2   : > { %3269 = vmatpush.msra.mxu3 %v6021_v45  ;;  %3310 = vmatpush.msrb.mxu0 %v6131_v55  ;;  %v3540_v45 = vld [vmem:[#allocation6 + $0x1b8] sm:$0xff] }
 0x2c3   : > { %3220 = vmatpush.msra.mxu2 %v3091_v27  ;;  %3357 = vmatpush.msrb.mxu1 %v3356_v21  ;;  %v3539_v27 = vld [vmem:[#allocation6 + $0x1b0] sm:$0xff]  ;;  %v3380_v29 = vand.u32 4294901760, %v3379_v5  ;;  %v3788_v21 = vld [vmem:[#allocation6 + $0x1e8] sm:$0xff] }
 0x2c4   : > { %3271 = vmatpush.msra.mxu3 %v6035_v52  ;;  %3312 = vmatpush.msrb.mxu0 %v6141_v50  ;;  %v6233_v52 = vand.u32 4294901760, %v3540_v45 }
 0x2c5   : > { %3224 = vmatpush.msra.mxu2 %v3097_v4  ;;  %3363 = vmatpush.msrb.mxu1 %v3362_v31  ;;  %v3538_v4 = vld [vmem:[#allocation6 + $0x1a8] sm:$0xff] }
 0x2c6   : > { %3273 = vmatpush.msra.mxu3 %v6049_v24  ;;  %3314 = vmatpush.msrb.mxu0 %v6159_v54  ;;  %v6240_v24 = vand.u32 4294901760, %v3539_v27  ;;  %v6248_v25 = vand.u32 4294901760, %v3538_v4 }
 0x2c7   : > { %3228 = vmatpush.msra.mxu2 %v3103_v59  ;;  %3369 = vmatpush.msrb.mxu1 %v3368_v53  ;;  %v6246_v59 = vsub.f32 %v3540_v45, %v6233_v52  ;;  %v6374_v53 = vand.u32 4294901760, %v3788_v21  ;;  %v3786_v45 = vld [vmem:[#allocation6 + $0x1d8] sm:$0xff] }
 0x2c8   : > { %3275 = vmatmul.f32.vlgmr.msra.gmra.mxu3 %v6113_v39  ;;  %3316 = vmatpush.msrb.mxu0 %v6170_v57 }
 0x2c9   : > { %3434 = vmatpush.msrb.mxu3 %v6090_v13  ;;  %3232 = vmatpush.msra.mxu2 %v3109_v56  ;;  %v6255_v56 = vsub.f32 %v3539_v27, %v6240_v24  ;;  %v3587_v30 = vand.u32 4294901760, %v6246_v59 }
 0x2ca   : > { %3375 = vmatpush.msrb.mxu1 %v3374_v14  ;;  %3322 = vmatmul.f32.vlgmr.msrb.gmra.mxu0 %v3321_v0  ;;  %v6385_v14 = vand.u32 4294901760, %v3787_v3  ;;  %v3785_v0 = vld [vmem:[#allocation6 + $0x1d0] sm:$0xff] }
 0x2cb   : > { %3436 = vmatpush.msrb.mxu3 %v6098_v43  ;;  %3467 = vmatpush.msra.mxu0 %v3336_v42  ;;  %v6269_v42 = vand.u32 4294901760, %v3536_v20  ;;  %v3593_v35 = vand.u32 4294901760, %v6255_v56  ;;  %v3588_v11 = vsub.f32 %v6246_v59, %v3587_v30 }
 0x2cc   : > { %3236 = vmatpush.msra.mxu2 %v3115_v51  ;;  %3381 = vmatpush.msrb.mxu1 %v3380_v29  ;;  %v6267_v51 = vsub.f32 %v3538_v4, %v6248_v25  ;;  %v6392_v4 = vsub.f32 %v3788_v21, %v6374_v53 }
 0x2cd   : > { %3383 = vmatmul.f32.vlgmr.msrb.gmra.mxu1 %v6167_v62  ;;  %3438 = vmatpush.msrb.mxu3 %v6111_v12 }
 0x2ce   : > { %3471 = vmatpush.msra.mxu0 %v3342_v7  ;;  %3510 = vmatpush.msra.mxu1 %v6090_v13  ;;  %v3534_v13 = vld [vmem:[#allocation6 + $0x188] sm:$0xff]  ;;  %v6284_v7 = vand.u32 4294901760, %v3535_v49 }
 0x2cf   : > { %3240 = vmatpush.msra.mxu2 %v3121_v60  ;;  %3440 = vmatpush.msrb.mxu3 %v6122_v63  ;;  %v6279_v60 = vsub.f32 %v3537_v41, %v6257_v1  ;;  %v6394_v41 = vand.u32 4294901760, %v3786_v45 }
 0x2d0   : > { %3475 = vmatpush.msra.mxu0 %v3348_v18  ;;  %3512 = vmatpush.msra.mxu1 %v6098_v43  ;;  %v6293_v43 = vsub.f32 %v3536_v20, %v6269_v42  ;;  %v3533_v18 = vld [vmem:[#allocation6 + $0x180] sm:$0xff] }
 0x2d1   : > { %3244 = vmatpush.msra.mxu2 %v3127_v38  ;;  %3442 = vmatpush.msrb.mxu3 %v6131_v55  ;;  %v3599_v38 = vand.u32 4294901760, %v6267_v51  ;;  %v6312_v44 = vand.u32 4294901760, %v3533_v18 }
 0x2d2   : > { %3246 = vmatmul.f32.vlgmr.msra.gmra.mxu2 %v6113_v39  ;;  %3479 = vmatpush.msra.mxu0 %v3354_v15  ;;  %v6298_v39 = vand.u32 4294901760, %v3534_v13  ;;  %v6310_v15 = vsub.f32 %v3535_v49, %v6284_v7  ;;  %v3611_v2 = vand.u32 4294901760, %v6293_v43 }
 0x2d3   : > { %3397 = vmatpush.msrb.mxu2 %v6108_v46  ;;  %3514 = vmatpush.msra.mxu1 %v6111_v12  ;;  %v3594_v46 = vsub.f32 %v6255_v56, %v3593_v35  ;;  %v3605_v12 = vand.u32 4294901760, %v6279_v60  ;;  %v6337_v10 = vsub.f32 %v3533_v18, %v6312_v44 }
 0x2d4   : > { %3444 = vmatpush.msrb.mxu3 %v6141_v50  ;;  %3483 = vmatpush.msra.mxu0 %v3360_v36  ;;  %v6324_v36 = vsub.f32 %v3534_v13, %v6298_v39  ;;  %v3617_v37 = vand.u32 4294901760, %v6310_v15  ;;  %v3792_v13 = vpop.permute.xlu2 %3791 }
 0x2d5   : > { %3400 = vmatpush.msrb.mxu2 %v6118_v16  ;;  %3516 = vmatpush.msra.mxu1 %v6122_v63  ;;  %v3589_v16 = vand.u32 4294901760, %v3588_v11  ;;  %v3600_v63 = vsub.f32 %v6267_v51, %v3599_v38  ;;  %v3629_v34 = vand.u32 4294901760, %v6337_v10 }
 0x2d6   : > { %3446 = vmatpush.msrb.mxu3 %v6159_v54  ;;  %3487 = vmatpush.msra.mxu0 %v3366_v47  ;;  %v3623_v47 = vand.u32 4294901760, %v6324_v36 }
 0x2d7   : > { %3403 = vmatpush.msrb.mxu2 %v6129_v61  ;;  %3518 = vmatpush.msra.mxu1 %v6131_v55  ;;  %v3595_v61 = vand.u32 4294901760, %v3594_v46  ;;  %v3606_v55 = vsub.f32 %v6279_v60, %v3605_v12  ;;  %v6402_v46 = vsub.f32 %v3787_v3, %v6385_v14 }
 0x2d8   : > { %3448 = vmatpush.msrb.mxu3 %v6170_v57  ;;  %3491 = vmatpush.msra.mxu0 %v3372_v32 }
 0x2d9   : > { %3406 = vmatpush.msrb.mxu2 %v6139_v58  ;;  %3520 = vmatpush.msra.mxu1 %v6141_v50  ;;  %v3601_v58 = vand.u32 4294901760, %v3600_v63  ;;  %v3612_v50 = vsub.f32 %v6293_v43, %v3611_v2  ;;  %v3607_v48 = vand.u32 4294901760, %v3606_v55  ;;  %v3784_v63 = vld [vmem:[#allocation6 + $0x1c8] sm:$0xff] }
 0x2da   : > { %3452 = vmatmul.f32.vlgmr.msrb.gmra.mxu3 %v3319_v33  ;;  %3495 = vmatpush.msra.mxu0 %v3378_v9  ;;  %v3542_v33 = vsel %vm2048_vm4, %v4670_v8, 0  ;;  %v3630_v9 = vsub.f32 %v6337_v10, %v3629_v34  ;;  %v2180_v18 = vpop.f32.mrf.mxu0  ;;  %v6422_v21 = vand.u32 4294901760, %v3784_v63  ;;  %v3856_v8 = vand.u32 4294901760, %v6402_v46 }
 0x2db   : > { %3590 = vmatpush.msra.mxu3 %v3589_v16  ;;  %3409 = vmatpush.msrb.mxu2 %v6152_v19  ;;  %v3618_v19 = vsub.f32 %v6310_v15, %v3617_v37  ;;  %v3613_v32 = vand.u32 4294901760, %v3612_v50  ;;  %v6404_v16 = vand.u32 4294901760, %v3785_v0  ;;  %v3793_v50 = vsel %vm2048_vm4, %v3792_v13, 0 }
 0x2dc   : > { %3522 = vmatpush.msra.mxu1 %v6159_v54  ;;  %3497 = vmatmul.f32.vlgmr.msra.gmra.mxu0 %v6167_v62  ;;  %v6353_v54 = vand.u32 4294901760, %v3790_v23 }
 0x2dd   : > { %3596 = vmatpush.msra.mxu3 %v3595_v61  ;;  %3648 = vmatpush.msrb.mxu0 %v6246_v59 }
 0x2de   : > { %3412 = vmatpush.msrb.mxu2 %v6165_v22  ;;  %3524 = vmatpush.msra.mxu1 %v6170_v57  ;;  %v3624_v22 = vsub.f32 %v6324_v36, %v3623_v47  ;;  %v6361_v57 = vand.u32 4294901760, %v3789_v6  ;;  %v6371_v31 = vsub.f32 %v3790_v23, %v6353_v54  ;;  %v3850_v23 = vand.u32 4294901760, %v6392_v4 }
 0x2df   : > { %3526 = vmatmul.f32.vlgmr.msra.gmra.mxu1 %v6167_v62  ;;  %3602 = vmatpush.msra.mxu3 %v3601_v58  ;;  %v3619_v62 = vand.u32 4294901760, %v3618_v19  ;;  %v2211_v58 = vpop.f32.mrf.mxu1 }
 0x2e0   : > { %3651 = vmatpush.msrb.mxu0 %v6255_v56  ;;  %3685 = vmatpush.msrb.mxu1 %v6233_v52  ;;  %v3625_v26 = vand.u32 4294901760, %v3624_v22  ;;  %v6381_v5 = vsub.f32 %v3789_v6, %v6361_v57  ;;  %v3838_v27 = vand.u32 4294901760, %v6371_v31  ;;  %v3783_v6 = vld [vmem:[#allocation6 + $0x1c0] sm:$0xff] }
 0x2e1   : > { %3415 = vmatpush.msrb.mxu2 %v6181_v17  ;;  %3608 = vmatpush.msra.mxu3 %v3607_v48  ;;  %v6376_v17 = vand.u32 4294901760, %v3542_v33  ;;  %v6415_v48 = vsub.f32 %v3786_v45, %v6394_v41  ;;  %v6433_v3 = vand.u32 4294901760, %v3783_v6 }
 0x2e2   : > { %3654 = vmatpush.msrb.mxu0 %v6267_v51  ;;  %3687 = vmatpush.msrb.mxu1 %v6240_v24  ;;  %v3844_v11 = vand.u32 4294901760, %v6381_v5  ;;  %v3839_v55 = vsub.f32 %v6371_v31, %v3838_v27 }
 0x2e3   : > { %3418 = vmatpush.msrb.mxu2 %v6193_v28  ;;  %3614 = vmatpush.msra.mxu3 %v3613_v32  ;;  %v3631_v28 = vand.u32 4294901760, %v3630_v9  ;;  %v3569_v49 = vsub.f32 %v3542_v33, %v6376_v17  ;;  %v6428_v33 = vsub.f32 %v3785_v0, %v6404_v16 }
 0x2e4   : > { %3421 = vmatmul.f32.vlgmr.msrb.gmra.mxu2 %v6189_v40  ;;  %3657 = vmatpush.msrb.mxu0 %v6279_v60  ;;  %v2142_v40 = vpop.f32.mrf.mxu3  ;;  %v3845_v22 = vsub.f32 %v6381_v5, %v3844_v11  ;;  %v3840_v9 = vand.u32 4294901760, %v3839_v55 }
 0x2e5   : > { %3553 = vmatpush.msra.mxu2 %v6233_v52  ;;  %3689 = vmatpush.msrb.mxu1 %v6248_v25  ;;  %v3570_v32 = vand.u32 4294901760, %v3569_v49  ;;  %v3868_v0 = vand.u32 4294901760, %v6428_v33 }
 0x2e6   : > { %3620 = vmatpush.msra.mxu3 %v3619_v62  ;;  %3660 = vmatpush.msrb.mxu0 %v6293_v43  ;;  %v2081_v29 = vpop.f32.mrf.mxu2  ;;  %v6430_v62 = vand.u32 4294901760, %v3793_v50  ;;  %v3846_v45 = vand.u32 4294901760, %v3845_v22 }
 0x2e7   : > { %3555 = vmatpush.msra.mxu2 %v6240_v24  ;;  %3691 = vmatpush.msrb.mxu1 %v6257_v1  ;;  %v2143_v20 = vadd.f32 %v2142_v40, %v2081_v29  ;;  %v6444_v40 = vsub.f32 %v3784_v63, %v6422_v21 }
 0x2e8   : > { %3626 = vmatpush.msra.mxu3 %v3625_v26  ;;  %3663 = vmatpush.msrb.mxu0 %v6310_v15  ;;  %v3862_v26 = vand.u32 4294901760, %v6415_v48 }
 0x2e9   : > { %3557 = vmatpush.msra.mxu2 %v6248_v25  ;;  %3693 = vmatpush.msrb.mxu1 %v6269_v42  ;;  %v2181_v61 = vadd.f32 %v2180_v18, %v2143_v20  ;;  %v6452_v20 = vsub.f32 %v3793_v50, %v6430_v62  ;;  %v3874_v55 = vand.u32 4294901760, %v6444_v40 }
 0x2ea   : > { %3632 = vmatpush.msra.mxu3 %v3631_v28  ;;  %3666 = vmatpush.msrb.mxu0 %v6324_v36  ;;  %v3571_v28 = vsub.f32 %v3569_v49, %v3570_v32  ;;  %v3863_v18 = vsub.f32 %v6415_v48, %v3862_v26 }
 0x2eb   : > { %3559 = vmatpush.msra.mxu2 %v6257_v1  ;;  %3695 = vmatpush.msrb.mxu1 %v6284_v7  ;;  %v2212_v19 = vadd.f32 %v2211_v58, %v2181_v61 }
 0x2ec   : > { %3634 = vmatmul.f32.vlgmr.msra.gmra.mxu3 %v6376_v17  ;;  %3669 = vmatpush.msrb.mxu0 %v6337_v10  ;;  %v2285_v63 = vpop.f32.mrf.mxu3  ;;  %v3572_v61 = vand.u32 4294901760, %v3571_v28 }
 0x2ed   : > { %3761 = vmatpush.msrb.mxu3 %v6233_v52  ;;  %3561 = vmatpush.msra.mxu2 %v6269_v42  ;;  %v3851_v52 = vsub.f32 %v6392_v4, %v3850_v23 }
 0x2ee   : > { %3697 = vmatpush.msrb.mxu1 %v6298_v39  ;;  %3672 = vmatmul.f32.vlgmr.msrb.gmra.mxu0 %v3569_v49  ;;  %v6456_v49 = vsub.f32 %v3783_v6, %v6433_v3  ;;  %v2320_v6 = vpop.f32.mrf.mxu0 }
 0x2ef   : > { %3763 = vmatpush.msrb.mxu3 %v6240_v24  ;;  %3804 = vmatpush.msra.mxu0 %v6353_v54  ;;  %v3857_v24 = vsub.f32 %v6402_v46, %v3856_v8 }
 0x2f0   : > { %3563 = vmatpush.msra.mxu2 %v6284_v7  ;;  %3699 = vmatpush.msrb.mxu1 %v6312_v44  ;;  %v2256_v29 = vpop.f32.mrf.mxu2 }
 0x2f1   : > { %3703 = vmatmul.f32.vlgmr.msrb.gmra.mxu1 %v3570_v32  ;;  %3765 = vmatpush.msrb.mxu3 %v6248_v25  ;;  %v2257_v13 = vadd.f32 %v2256_v29, %v2212_v19  ;;  %v3852_v25 = vand.u32 4294901760, %v3851_v52  ;;  %v3858_v50 = vand.u32 4294901760, %v3857_v24  ;;  %v3821_v19 = vand.u32 4294901760, %v6452_v20 }
 0x2f2   : > { %3806 = vmatpush.msra.mxu0 %v6361_v57  ;;  %3841 = vmatpush.msra.mxu1 %v3840_v9  ;;  %v3880_v32 = vand.u32 4294901760, %v6456_v49  ;;  %v3864_v9 = vand.u32 4294901760, %v3863_v18  ;;  %v3875_v52 = vsub.f32 %v6444_v40, %v3874_v55  ;;  %v4038_v18 = vld [vmem:[#allocation6 + $0x220] sm:$0xff] }
 0x2f3   : > { %3565 = vmatpush.msra.mxu2 %v6298_v39  ;;  %3767 = vmatpush.msrb.mxu3 %v6257_v1  ;;  %v2286_v58 = vadd.f32 %v2285_v63, %v2257_v13  ;;  %v3869_v1 = vsub.f32 %v6428_v33, %v3868_v0  ;;  %v3822_v59 = vsub.f32 %v6452_v20, %v3821_v19 }
 0x2f4   : > { %3808 = vmatpush.msra.mxu0 %v6374_v53  ;;  %3847 = vmatpush.msra.mxu1 %v3846_v45  ;;  %v3876_v56 = vand.u32 4294901760, %v3875_v52 }
 0x2f5   : > { %3567 = vmatpush.msra.mxu2 %v6312_v44  ;;  %3769 = vmatpush.msrb.mxu3 %v6269_v42  ;;  %v2321_v22 = vadd.f32 %v2320_v6, %v2286_v58  ;;  %v2381_v42 = vpop.f32.mrf.mxu1  ;;  %v3870_v28 = vand.u32 4294901760, %v3869_v1  ;;  %v3823_v13 = vand.u32 4294901760, %v3822_v59 }
 0x2f6   : > { %3573 = vmatmul.f32.vlgmr.msra.gmra.mxu2 %v3572_v61  ;;  %3810 = vmatpush.msra.mxu0 %v6385_v14 }
 0x2f7   : > { %3718 = vmatpush.msrb.mxu2 %v3587_v30  ;;  %3853 = vmatpush.msra.mxu1 %v3852_v25  ;;  %v2382_v45 = vadd.f32 %v2381_v42, %v2321_v22  ;;  %v3881_v30 = vsub.f32 %v6456_v49, %v3880_v32  ;;  %v4036_v22 = vld [vmem:[#allocation6 + $0x210] sm:$0xff] }
 0x2f8   : > { %3771 = vmatpush.msrb.mxu3 %v6284_v7  ;;  %3812 = vmatpush.msra.mxu0 %v6394_v41  ;;  %v4041_v7 = vld [vmem:[#allocation6 + $0x238] sm:$0xff] }
 0x2f9   : > { %3722 = vmatpush.msrb.mxu2 %v3593_v35  ;;  %3859 = vmatpush.msra.mxu1 %v3858_v50  ;;  %v4040_v35 = vld [vmem:[#allocation6 + $0x230] sm:$0xff]  ;;  %v3882_v51 = vand.u32 4294901760, %v3881_v30 }
 0x2fa   : > { %3773 = vmatpush.msrb.mxu3 %v6298_v39  ;;  %3814 = vmatpush.msra.mxu0 %v6404_v16  ;;  %v6496_v39 = vand.u32 4294901760, %v4041_v7  ;;  %v6503_v25 = vand.u32 4294901760, %v4040_v35 }
 0x2fb   : > { %3726 = vmatpush.msrb.mxu2 %v3599_v38  ;;  %3865 = vmatpush.msra.mxu1 %v3864_v9  ;;  %v2450_v38 = vpop.f32.mrf.mxu3 }
 0x2fc   : > { %3775 = vmatpush.msrb.mxu3 %v6312_v44  ;;  %3816 = vmatpush.msra.mxu0 %v6422_v21  ;;  %v4039_v44 = vld [vmem:[#allocation6 + $0x228] sm:$0xff]  ;;  %v6509_v63 = vsub.f32 %v4041_v7, %v6496_v39  ;;  %v6518_v50 = vsub.f32 %v4040_v35, %v6503_v25  ;;  %v4043_v35 = vpop.permute.xlu0 %4042 }
 0x2fd   : > { %v2419_v24 = vpop.f32.mrf.mxu2  ;;  %3730 = vmatpush.msrb.mxu2 %v3605_v12  ;;  %3871 = vmatpush.msra.mxu1 %v3870_v28  ;;  %v2495_v12 = vpop.f32.mrf.mxu0  ;;  %v6511_v61 = vand.u32 4294901760, %v4039_v44 }
 0x2fe   : > { %v2420_v29 = vadd.f32 %v2419_v24, %v2382_v45  ;;  %3777 = vmatmul.f32.vlgmr.msrb.gmra.mxu3 %v6376_v17  ;;  %3818 = vmatpush.msra.mxu0 %v6433_v3  ;;  %v2524_v43 = vpop.f32.mrf.mxu1  ;;  %v4089_v15 = vand.u32 4294901760, %v6509_v63  ;;  %v4095_v36 = vand.u32 4294901760, %v6518_v50 }
 0x2ff   : > { %3936 = vmatpush.msra.mxu3 %v6353_v54  ;;  %3734 = vmatpush.msrb.mxu2 %v3611_v2  ;;  %v4037_v2 = vld [vmem:[#allocation6 + $0x218] sm:$0xff] }
 0x300   : > { %v2451_v60 = vadd.f32 %v2450_v38, %v2420_v29  ;;  %3877 = vmatpush.msra.mxu1 %v3876_v56  ;;  %3824 = vmatmul.f32.vlgmr.msra.gmra.mxu0 %v3823_v13  ;;  %v6534_v6 = vand.u32 4294901760, %v4037_v2  ;;  %v4090_v10 = vsub.f32 %v6509_v63, %v4089_v15  ;;  %v4595_v38 = vld [vmem:[%s4920_s6 + $0x30] sm:$0xff]  ;;  %s4588_s6 = sshll.u32 %s249_s30, 3 }
 0x301   : > { %3938 = vmatpush.msra.mxu3 %v6361_v57  ;;  %3969 = vmatpush.msrb.mxu0 %v3838_v27  ;;  %v6520_v27 = vand.u32 4294901760, %v4038_v18  ;;  %s251_s13 = scalar_lea.vmem [#allocation8], %s4588_s6 }
 0x302   : > { %v2496_v58 = vadd.f32 %v2495_v12, %v2451_v60  ;;  %3738 = vmatpush.msrb.mxu2 %v3617_v37  ;;  %3883 = vmatpush.msra.mxu1 %v3882_v51  ;;  %v6532_v37 = vsub.f32 %v4039_v44, %v6511_v61  ;;  %v4290_v51 = vld [vmem:[%s6815_s4 + $0x10] sm:$0xff]  ;;  %s4496_s14 = sshll.u32 %s251_s13, 4  ;;  %s4497_s14 = int_to_ptr.vmem [resolvable:$true] %s4496_s14 }
 0x303   : > { %3885 = vmatmul.f32.vlgmr.msra.gmra.mxu1 %v6430_v62  ;;  %3940 = vmatpush.msra.mxu3 %v6374_v53  ;;  %v2631_v42 = vpop.f32.mrf.mxu3  ;;  %v6643_v12 = vand.u32 4294901760, %v4290_v51 }
 0x304   : > { %v6522_v1 = vadd.f32 %v2524_v43, %v2496_v58  ;;  %3973 = vmatpush.msrb.mxu0 %v3844_v11  ;;  %4012 = vmatpush.msrb.mxu1 %v6353_v54  ;;  %v4035_v54 = vld [vmem:[#allocation6 + $0x208] sm:$0xff]  ;;  %v6549_v11 = vand.u32 4294901760, %v4036_v22  ;;  %v4288_v43 = vld [vmem:[%s6815_s4] sm:$0xff] }
 0x305   : > { %3742 = vmatpush.msrb.mxu2 %v3623_v47  ;;  %3942 = vmatpush.msra.mxu3 %v6385_v14  ;;  %v6544_v47 = vsub.f32 %v4038_v18, %v6520_v27  ;;  %v2669_v28 = vpop.f32.mrf.mxu0  ;;  %v4293_v18 = vsel %vm269_vm0, %v4595_v38, 0 }
 0x306   : > { %3977 = vmatpush.msrb.mxu0 %v3850_v23  ;;  %4014 = vmatpush.msrb.mxu1 %v6361_v57  ;;  %v6558_v57 = vsub.f32 %v4037_v2, %v6534_v6  ;;  %v4034_v23 = vld [vmem:[#allocation6 + $0x200] sm:$0xff]  ;;  %v2700_v7 = vpop.f32.mrf.mxu1 }
 0x307   : > { %3746 = vmatpush.msrb.mxu2 %v3629_v34  ;;  %3944 = vmatpush.msra.mxu3 %v6394_v41  ;;  %v4101_v34 = vand.u32 4294901760, %v6532_v37 }
 0x308   : > { %3748 = vmatmul.f32.vlgmr.msrb.gmra.mxu2 %v6376_v17  ;;  %3981 = vmatpush.msrb.mxu0 %v3856_v8  ;;  %v6563_v17 = vand.u32 4294901760, %v4035_v54  ;;  %v6575_v8 = vsub.f32 %v4036_v22, %v6549_v11  ;;  %v4113_v9 = vand.u32 4294901760, %v6558_v57 }
 0x309   : > { %3899 = vmatpush.msra.mxu2 %v6371_v31  ;;  %4016 = vmatpush.msrb.mxu1 %v6374_v53  ;;  %v4096_v31 = vsub.f32 %v6518_v50, %v4095_v36  ;;  %v4107_v53 = vand.u32 4294901760, %v6544_v47 }
 0x30a   : > { %3946 = vmatpush.msra.mxu3 %v6404_v16  ;;  %3985 = vmatpush.msrb.mxu0 %v3862_v26  ;;  %v6577_v26 = vand.u32 4294901760, %v4034_v23  ;;  %v4114_v30 = vsub.f32 %v6558_v57, %v4113_v9 }
 0x30b   : > { %3902 = vmatpush.msra.mxu2 %v6381_v5  ;;  %4018 = vmatpush.msrb.mxu1 %v6385_v14  ;;  %v4091_v5 = vand.u32 4294901760, %v4090_v10  ;;  %v4102_v14 = vsub.f32 %v6532_v37, %v4101_v34  ;;  %v4108_v45 = vsub.f32 %v6544_v47, %v4107_v53  ;;  %v6665_v10 = vsub.f32 %v4290_v51, %v6643_v12 }
 0x30c   : > { %3948 = vmatpush.msra.mxu3 %v6422_v21  ;;  %3989 = vmatpush.msrb.mxu0 %v3868_v0  ;;  %v6589_v0 = vsub.f32 %v4035_v54, %v6563_v17  ;;  %v6602_v59 = vsub.f32 %v4034_v23, %v6577_v26  ;;  %v4115_v29 = vand.u32 4294901760, %v4114_v30  ;;  %v6667_v23 = vand.u32 4294901760, %v4288_v43 }
 0x30d   : > { %3905 = vmatpush.msra.mxu2 %v6392_v4  ;;  %4020 = vmatpush.msrb.mxu1 %v6394_v41  ;;  %v2570_v52 = vpop.f32.mrf.mxu2  ;;  %v4097_v41 = vand.u32 4294901760, %v4096_v31 }
 0x30e   : > { %3950 = vmatpush.msra.mxu3 %v6433_v3  ;;  %3993 = vmatpush.msrb.mxu0 %v3874_v55  ;;  %v2632_v4 = vadd.f32 %v2631_v42, %v2570_v52  ;;  %v4119_v55 = vand.u32 4294901760, %v6575_v8  ;;  %v4131_v24 = vand.u32 4294901760, %v6602_v59  ;;  %v4344_v52 = vand.u32 4294901760, %v6665_v10 }
 0x30f   : > { %3908 = vmatpush.msra.mxu2 %v6402_v46  ;;  %4022 = vmatpush.msrb.mxu1 %v6404_v16  ;;  %v4103_v16 = vand.u32 4294901760, %v4102_v14 }
 0x310   : > { %3954 = vmatmul.f32.vlgmr.msra.gmra.mxu3 %v3821_v19  ;;  %3997 = vmatpush.msrb.mxu0 %v3880_v32  ;;  %v2670_v46 = vadd.f32 %v2669_v28, %v2632_v4  ;;  %v4125_v19 = vand.u32 4294901760, %v6589_v0  ;;  %v4291_v32 = vld [vmem:[%s6815_s4 + $0x18] sm:$0xff]  ;;  %v4132_v60 = vsub.f32 %v6602_v59, %v4131_v24 }
 0x311   : > { %4092 = vmatpush.msrb.mxu3 %v4091_v5  ;;  %3911 = vmatpush.msra.mxu2 %v6415_v48  ;;  %v4109_v48 = vand.u32 4294901760, %v4108_v45  ;;  %v6622_v13 = vand.u32 4294901760, %v4291_v32 }
 0x312   : > { %4024 = vmatpush.msrb.mxu1 %v6422_v21  ;;  %3999 = vmatmul.f32.vlgmr.msrb.gmra.mxu0 %v6430_v62  ;;  %v2701_v56 = vadd.f32 %v2700_v7, %v2670_v46  ;;  %v4120_v21 = vsub.f32 %v6575_v8, %v4119_v55  ;;  %v4133_v54 = vand.u32 4294901760, %v4132_v60 }
 0x313   : > { %4098 = vmatpush.msrb.mxu3 %v4097_v41  ;;  %4150 = vmatpush.msra.mxu0 %v6509_v63  ;;  %v6685_v41 = vsub.f32 %v4288_v43, %v6667_v23 }
 0x314   : > { %3914 = vmatpush.msra.mxu2 %v6428_v33  ;;  %4026 = vmatpush.msrb.mxu1 %v6433_v3  ;;  %v4044_v33 = vsel %vm2048_vm4, %v4043_v35, 0  ;;  %v4126_v3 = vsub.f32 %v6589_v0, %v4125_v19  ;;  %v4121_v44 = vand.u32 4294901760, %v4120_v21 }
 0x315   : > { %4028 = vmatmul.f32.vlgmr.msrb.gmra.mxu1 %v6430_v62  ;;  %4104 = vmatpush.msrb.mxu3 %v4103_v16  ;;  %v4289_v62 = vld [vmem:[%s6815_s4 + $0x8] sm:$0xff]  ;;  %v6646_v58 = vand.u32 4294901760, %v4044_v33  ;;  %v2774_v28 = vpop.f32.mrf.mxu3  ;;  %v4356_v35 = vand.u32 4294901760, %v6685_v41 }
 0x316   : > { %4153 = vmatpush.msra.mxu0 %v6518_v50  ;;  %4187 = vmatpush.msra.mxu1 %v6496_v39  ;;  %v4127_v2 = vand.u32 4294901760, %v4126_v3  ;;  %v6657_v22 = vand.u32 4294901760, %v4289_v62  ;;  %v2821_v3 = vpop.f32.mrf.mxu0 }
 0x317   : > { %3917 = vmatpush.msra.mxu2 %v6444_v40  ;;  %4110 = vmatpush.msrb.mxu3 %v4109_v48  ;;  %v6650_v40 = vsub.f32 %v4291_v32, %v6622_v13  ;;  %v4345_v32 = vsub.f32 %v6665_v10, %v4344_v52 }
 0x318   : > { %4156 = vmatpush.msra.mxu0 %v6532_v37  ;;  %4189 = vmatpush.msra.mxu1 %v6503_v25  ;;  %v6675_v5 = vsub.f32 %v4289_v62, %v6657_v22  ;;  %v2882_v62 = vpop.f32.mrf.mxu1 }
 0x319   : > { %3920 = vmatpush.msra.mxu2 %v6456_v49  ;;  %4116 = vmatpush.msrb.mxu3 %v4115_v29  ;;  %v6661_v49 = vand.u32 4294901760, %v4293_v18  ;;  %v4338_v31 = vand.u32 4294901760, %v6650_v40  ;;  %v4357_v29 = vsub.f32 %v6685_v41, %v4356_v35 }
 0x31a   : > { %3923 = vmatmul.f32.vlgmr.msra.gmra.mxu2 %v6452_v20  ;;  %4159 = vmatpush.msra.mxu0 %v6544_v47  ;;  %v4071_v20 = vsub.f32 %v4044_v33, %v6646_v58  ;;  %v4350_v16 = vand.u32 4294901760, %v6675_v5 }
 0x31b   : > { %4055 = vmatpush.msrb.mxu2 %v6496_v39  ;;  %4191 = vmatpush.msra.mxu1 %v6511_v61  ;;  %v6680_v42 = vsub.f32 %v4293_v18, %v6661_v49  ;;  %v4339_v46 = vsub.f32 %v6650_v40, %v4338_v31  ;;  %v4358_v33 = vand.u32 4294901760, %v4357_v29 }
 0x31c   : > { %4122 = vmatpush.msrb.mxu3 %v4121_v44  ;;  %4162 = vmatpush.msra.mxu0 %v6558_v57  ;;  %v4072_v45 = vand.u32 4294901760, %v4071_v20  ;;  %v4351_v21 = vsub.f32 %v6675_v5, %v4350_v16 }
 0x31d   : > { %4057 = vmatpush.msrb.mxu2 %v6503_v25  ;;  %4193 = vmatpush.msra.mxu1 %v6520_v27  ;;  %v4317_v7 = vand.u32 4294901760, %v6680_v42 }
 0x31e   : > { %4128 = vmatpush.msrb.mxu3 %v4127_v2  ;;  %4165 = vmatpush.msra.mxu0 %v6575_v8  ;;  %v4073_v48 = vsub.f32 %v4071_v20, %v4072_v45 }
 0x31f   : > { %4059 = vmatpush.msrb.mxu2 %v6511_v61  ;;  %4195 = vmatpush.msra.mxu1 %v6534_v6  ;;  %v2745_v14 = vpop.f32.mrf.mxu2 }
 0x320   : > { %4134 = vmatpush.msrb.mxu3 %v4133_v54  ;;  %4168 = vmatpush.msra.mxu0 %v6589_v0  ;;  %v2746_v4 = vadd.f32 %v2745_v14, %v2701_v56  ;;  %v4074_v51 = vand.u32 4294901760, %v4073_v48 }
 0x321   : > { %4061 = vmatpush.msrb.mxu2 %v6520_v27  ;;  %4197 = vmatpush.msra.mxu1 %v6549_v11 }
 0x322   : > { %4136 = vmatmul.f32.vlgmr.msrb.gmra.mxu3 %v6646_v58  ;;  %4171 = vmatpush.msra.mxu0 %v6602_v59  ;;  %v2775_v30 = vadd.f32 %v2774_v28, %v2746_v4 }
 0x323   : > { %4263 = vmatpush.msra.mxu3 %v6496_v39  ;;  %4063 = vmatpush.msrb.mxu2 %v6534_v6  ;;  %v4340_v39 = vand.u32 4294901760, %v4339_v46 }
 0x324   : > { %4199 = vmatpush.msra.mxu1 %v6563_v17  ;;  %4174 = vmatmul.f32.vlgmr.msra.gmra.mxu0 %v4071_v20  ;;  %v6703_v56 = vadd.f32 %v2775_v30, %v6522_v1  ;;  %v4318_v1 = vsub.f32 %v6680_v42, %v4317_v7 }
 0x325   : > { %4265 = vmatpush.msra.mxu3 %v6503_v25  ;;  %4065 = vmatpush.msrb.mxu2 %v6549_v11  ;;  %v4346_v25 = vand.u32 4294901760, %v4345_v32 }
 0x326   : > { %4201 = vmatpush.msra.mxu1 %v6577_v26  ;;  %4308 = vmatpush.msrb.mxu0 %v6622_v13  ;;  %v4319_v38 = vand.u32 4294901760, %v4318_v1  ;;  %v3025_v47 = vpop.f32.mrf.mxu1 }
 0x327   : > { %4205 = vmatmul.f32.vlgmr.msra.gmra.mxu1 %v4072_v45  ;;  %4267 = vmatpush.msra.mxu3 %v6511_v61  ;;  %v4352_v61 = vand.u32 4294901760, %v4351_v21 }
 0x328   : > { %4067 = vmatpush.msrb.mxu2 %v6563_v17  ;;  %4310 = vmatpush.msrb.mxu0 %v6643_v12 }
 0x329   : > { %4269 = vmatpush.msra.mxu3 %v6520_v27  ;;  %4341 = vmatpush.msrb.mxu1 %v4340_v39  ;;  %v2883_v27 = vadd.f32 %v2882_v62, %v2821_v3 }
 0x32a   : > { %4069 = vmatpush.msrb.mxu2 %v6577_v26  ;;  %4312 = vmatpush.msrb.mxu0 %v6657_v22 }
 0x32b   : > { %4075 = vmatmul.f32.vlgmr.msrb.gmra.mxu2 %v4074_v51  ;;  %4271 = vmatpush.msra.mxu3 %v6534_v6  ;;  %v2996_v6 = vpop.f32.mrf.mxu0 }
 0x32c   : > { %4220 = vmatpush.msra.mxu2 %v4089_v15  ;;  %4347 = vmatpush.msrb.mxu1 %v4346_v25  ;;  %v2951_v15 = vpop.f32.mrf.mxu3 }
 0x32d   : > { %4273 = vmatpush.msra.mxu3 %v6549_v11  ;;  %4314 = vmatpush.msrb.mxu0 %v6667_v23 }
 0x32e   : > { %4224 = vmatpush.msra.mxu2 %v4095_v36  ;;  %4353 = vmatpush.msrb.mxu1 %v4352_v61 }
 0x32f   : > { %4275 = vmatpush.msra.mxu3 %v6563_v17  ;;  %4320 = vmatmul.f32.vlgmr.msrb.gmra.mxu0 %v4319_v38 }
 0x330   : > { %4228 = vmatpush.msra.mxu2 %v4101_v34  ;;  %4359 = vmatpush.msrb.mxu1 %v4358_v33 }
 0x331   : > { %4277 = vmatpush.msra.mxu3 %v6577_v26  ;;  %4379 = vmatpush.msra.mxu0 %v6650_v40  ;;  %v2920_v63 = vpop.f32.mrf.mxu2 }
 0x332   : > { %4232 = vmatpush.msra.mxu2 %v4107_v53  ;;  %4279 = vmatmul.f32.vlgmr.msra.gmra.mxu3 %v6646_v58  ;;  %v2921_v50 = vadd.f32 %v2920_v63, %v2883_v27 }
 0x333   : > { %4361 = vmatmul.f32.vlgmr.msrb.gmra.mxu1 %v6661_v49  ;;  %4382 = vmatpush.msra.mxu0 %v6665_v10 }
 0x334   : > { %4236 = vmatpush.msra.mxu2 %v4113_v9  ;;  %4408 = vmatpush.msra.mxu1 %v6622_v13  ;;  %v2952_v37 = vadd.f32 %v2951_v15, %v2921_v50 }
 0x335   : > { %4385 = vmatpush.msra.mxu0 %v6675_v5  ;;  %4468 = vmatpush.msrb.mxu3 %v6622_v13  ;;  %v3171_v57 = vpop.f32.mrf.mxu0 }
 0x336   : > { %4240 = vmatpush.msra.mxu2 %v4119_v55  ;;  %4410 = vmatpush.msra.mxu1 %v6643_v12  ;;  %v2997_v36 = vadd.f32 %v2996_v6, %v2952_v37 }
 0x337   : > { %4388 = vmatpush.msra.mxu0 %v6685_v41  ;;  %4470 = vmatpush.msrb.mxu3 %v6643_v12 }
 0x338   : > { %4244 = vmatpush.msra.mxu2 %v4125_v19  ;;  %4412 = vmatpush.msra.mxu1 %v6657_v22  ;;  %v3026_v11 = vadd.f32 %v3025_v47, %v2997_v36  ;;  %v3202_v17 = vpop.f32.mrf.mxu1 }
 0x339   : > { %4391 = vmatmul.f32.vlgmr.msra.gmra.mxu0 %v6680_v42  ;;  %4472 = vmatpush.msrb.mxu3 %v6657_v22  ;;  %v3133_v8 = vpop.f32.mrf.mxu3 }
 0x33a   : > { %4248 = vmatpush.msra.mxu2 %v4131_v24  ;;  %4414 = vmatpush.msra.mxu1 %v6667_v23  ;;  %v3028_v34 = vadd.f32 %v3026_v11, %v6703_v56 }
 0x33b   : > { %4250 = vmatmul.f32.vlgmr.msra.gmra.mxu2 %v6646_v58  ;;  %4418 = vmatmul.f32.vlgmr.msra.gmra.mxu1 %v4317_v7 }
 0x33c   : > { %4437 = vmatpush.msrb.mxu2 %v4338_v31  ;;  %4474 = vmatpush.msrb.mxu3 %v6667_v23 }
 0x33d   : > { %4476 = vmatmul.f32.vlgmr.msrb.gmra.mxu3 %v6661_v49 }
 0x33e   : > { %4441 = vmatpush.msrb.mxu2 %v4344_v52 }
 0x340   : > { %4445 = vmatpush.msrb.mxu2 %v4350_v16 }
 0x342   : > { %4449 = vmatpush.msrb.mxu2 %v4356_v35 }
 0x343   : > { %4451 = vmatmul.f32.vlgmr.msrb.gmra.mxu2 %v6661_v49  ;;  %v3072_v53 = vpop.f32.mrf.mxu2 }
 0x344   : > { %v3134_v10 = vadd.f32 %v3133_v8, %v3072_v53  ;;  %v4669_v8 = vld [vmem:[%s6814_s3 + $0x1] ss:$0 sm:$0xff] }
 0x346   : > { %v3172_v5 = vadd.f32 %v3171_v57, %v3134_v10 }
 0x347   : > { %v3323_v26 = vpop.f32.mrf.mxu0 }
 0x348   : > { %v3203_v45 = vadd.f32 %v3202_v17, %v3172_v5 }
 0x34a   : > { %v3384_v9 = vpop.f32.mrf.mxu1 }
 0x34b   : > { %v3276_v55 = vpop.f32.mrf.mxu3  ;;  %v3385_v31 = vadd.f32 %v3384_v9, %v3323_v26 }
 0x355   : > { %v3247_v0 = vpop.f32.mrf.mxu2 }
 0x356   : > { %v3248_v32 = vadd.f32 %v3247_v0, %v3203_v45 }
 0x358   : > { %v3277_v1 = vadd.f32 %v3276_v55, %v3248_v32 }
 0x359   : > { %v3498_v59 = vpop.f32.mrf.mxu0 }
 0x35a   : > { %v3279_v38 = vadd.f32 %v3277_v1, %v3028_v34 }
 0x35c   : > { %v3527_v19 = vpop.f32.mrf.mxu1 }
 0x35d   : > { %v3453_v13 = vpop.f32.mrf.mxu3 }
 0x367   : > { %v3422_v24 = vpop.f32.mrf.mxu2 }
 0x368   : > { %v3423_v14 = vadd.f32 %v3422_v24, %v3385_v31 }
 0x36a   : > { %v3454_v28 = vadd.f32 %v3453_v13, %v3423_v14 }
 0x36b   : > { %v3673_v44 = vpop.f32.mrf.mxu0 }
 0x36c   : > { %v3499_v35 = vadd.f32 %v3498_v59, %v3454_v28 }
 0x36e   : > { %v3704_v60 = vpop.f32.mrf.mxu1  ;;  %v3528_v51 = vadd.f32 %v3527_v19, %v3499_v35 }
 0x36f   : > { %v3635_v18 = vpop.f32.mrf.mxu3 }
 0x370   : > { %v3530_v15 = vadd.f32 %v3528_v51, %v3279_v38 }
 0x379   : > { %v3574_v12 = vpop.f32.mrf.mxu2 }
 0x37a   : > { %v3636_v42 = vadd.f32 %v3635_v18, %v3574_v12 }
 0x37c   : > { %v3674_v46 = vadd.f32 %v3673_v44, %v3636_v42 }
 0x37d   : > { %v3825_v58 = vpop.f32.mrf.mxu0 }
 0x37e   : > { %v3705_v48 = vadd.f32 %v3704_v60, %v3674_v46 }
 0x380   : > { %v3886_v40 = vpop.f32.mrf.mxu1 }
 0x381   : > { %v3778_v2 = vpop.f32.mrf.mxu3  ;;  %v3887_v4 = vadd.f32 %v3886_v40, %v3825_v58 }
 0x38b   : > { %v3749_v43 = vpop.f32.mrf.mxu2 }
 0x38c   : > { %v3750_v25 = vadd.f32 %v3749_v43, %v3705_v48 }
 0x38e   : > { %v3779_v33 = vadd.f32 %v3778_v2, %v3750_v25 }
 0x38f   : > { %v4000_v22 = vpop.f32.mrf.mxu0 }
 0x390   : > { %v3781_v36 = vadd.f32 %v3779_v33, %v3530_v15 }
 0x392   : > { %v4029_v49 = vpop.f32.mrf.mxu1 }
 0x393   : > { %v3955_v23 = vpop.f32.mrf.mxu3 }
 0x39d   : > { %v3924_v54 = vpop.f32.mrf.mxu2 }
 0x39e   : > { %v3925_v16 = vadd.f32 %v3924_v54, %v3887_v4 }
 0x3a0   : > { %v3956_v39 = vadd.f32 %v3955_v23, %v3925_v16 }
 0x3a1   : > { %v4175_v20 = vpop.f32.mrf.mxu0 }
 0x3a2   : > { %v4001_v61 = vadd.f32 %v4000_v22, %v3956_v39 }
 0x3a4   : > { %v4206_v52 = vpop.f32.mrf.mxu1  ;;  %v4030_v37 = vadd.f32 %v4029_v49, %v4001_v61 }
 0x3a5   : > { %v4137_v30 = vpop.f32.mrf.mxu3 }
 0x3a6   : > { %v4032_v17 = vadd.f32 %v4030_v37, %v3781_v36 }
 0x3ac   : > { %v4321_v7 = vpop.f32.mrf.mxu0 }
 0x3ae   : > { %v4076_v41 = vpop.f32.mrf.mxu2 }
 0x3af   : > { %v4138_v56 = vadd.f32 %v4137_v30, %v4076_v41 }
 0x3b0   : > { %v4362_v21 = vpop.f32.mrf.mxu1 }
 0x3b1   : > { %v4176_v29 = vadd.f32 %v4175_v20, %v4138_v56  ;;  %v4363_v62 = vadd.f32 %v4362_v21, %v4321_v7 }
 0x3b3   : > { %v4207_v27 = vadd.f32 %v4206_v52, %v4176_v29 }
 0x3b5   : > { %v4280_v3 = vpop.f32.mrf.mxu3 }
 0x3b6   : > { %v4392_v63 = vpop.f32.mrf.mxu0 }
 0x3b7   : > { %v4393_v47 = vadd.f32 %v4392_v63, %v4363_v62 }
 0x3b8   : > { %v4419_v57 = vpop.f32.mrf.mxu1 }
 0x3b9   : > { %v4420_v34 = vadd.f32 %v4419_v57, %v4393_v47 }
 0x3be   : > { %v4251_v50 = vpop.f32.mrf.mxu2 }
 0x3bf   : > { %v4252_v6 = vadd.f32 %v4251_v50, %v4207_v27 }
 0x3c0   : > { %v4477_v9 = vpop.f32.mrf.mxu3 }
 0x3c1   : > { %v4281_v11 = vadd.f32 %v4280_v3, %v4252_v6 }
 0x3c3   : > { %v4283_v53 = vadd.f32 %v4281_v11, %v4032_v17 }
 0x3c5   : > { %v4286_v55 = vadd.f32 %v4669_v8, %v4283_v53 }
 0x3c6   : > { %v4452_v26 = vpop.f32.mrf.mxu2 }
 0x3c7   : > { %v4453_v0 = vadd.f32 %v4452_v26, %v4420_v34 }
 0x3c9   : > { %v4478_v59 = vadd.f32 %v4477_v9, %v4453_v0 }
 0x3cb   : > { %v4480_v19 = vadd.f32 %v4478_v59, %v4286_v55 }
 0x3cd   : > { %v4481_v24 = vmax.f32 %v4480_v19, 0.0 }
 0x3cf   : > { %4482 = vst.msk [vmem:[%s251_s13] sm:$0xff] %vm2048_vm4, %v4481_v24 }
 0x3d0   : > { %4758 = shalt.err (!%p4755_p8)
}
 0x3d1   : > { %4609 = dma.vmem_to_hbm [thread:$0]  (%p4880_p5), %s4497_s14, 128, %s4499_s15, %s4484_s22  }
 0x3d2 PF: > { %p4626_p9 = scmp.ge.s32.totalorder %s4801_s21, 2  ;;  %s4510_s30 = sand.u32 1, %s4789_s18  }
 0x3d3   : > { %s4511_s8 = scalar_lea.sflag [#allocation5], %s4510_s30 }
 0x3d4   : > { %p4619_p10 = pnand %p4626_p9, %p4884_p6 }
 0x3d6   : > { %p4620_p11 = pneg %p4619_p10 }
 0x3d8   : > { %4784 = dma.done.wait (%p4620_p11), %s4511_s8, 128  }
 0x3d9   : > { %4786 = vsyncadd (%p4620_p11), %s4511_s8, 4294967168  ;;  %p17_p12 = scmp.ge.s32.totalorder %s4867_s24, 4   ;;  %s6820_s18 = smov %s4793_s19 }
 0x3da   : > { %s6821_s19 = smov %s4797_s20  ;;  %s6822_s20 = smov %s4878_s27 }
 0x3db   : > { %s6823_s21 = smov %s4867_s24  ;;  %19 = sbr.rel (!%p17_p12) target bundleno = 5 (0x5), region = 103 }
 0x3e0   :  { %4517 = vsyncpa [#allocation4], 1 }
 0x3e1   :  { %4519 = vsyncpa [#allocation4 + $0x1], 1 }
 0x3e2   :  { %4520 = vsyncpa [#allocation7], 1 }
 0x3e3   :  { %4521 = vsyncpa [#allocation5], 1 }
 0x3e4   :  { %4523 = vsyncpa [#allocation5 + $0x1], 1 }

</bundles_post_ra>
